<compile_context>
chip_gen: v5e
topology: v5e:2x2
jax: 0.10.0
libtpu: 0.0.40
codegen_flags: <defaults>
</compile_context>

<pallas_src>
import math

import jax
import jax.numpy as jnp
from jax import lax
from jax.experimental import pallas as pl
from jax.experimental.pallas import tpu as pltpu


DILATIONS = (1, 3, 9)
PADMAX = 32  # >= 3 * max(dilation) = 27 and >= final-conv padding; 8-aligned centre offset


def _make_encoder_block_kernel(T, Cin, Cout, stride, T_out):
    K = 2 * stride
    pad_f = math.ceil(stride / 2)

    def kernel(x_ref,
               a1_ref, w7_ref, b7_ref, a2_ref, w1_ref, b1_ref,
               fa_ref, fw_ref, fb_ref,
               o_ref, xpad_ref):
        # Re-zero the padded scratch each step (tiny) so the borders are always zero,
        # independent of which core runs which grid step.
        xpad_ref[...] = jnp.zeros_like(xpad_ref)

        def snake(v, alpha):
            # snake(x) = x + (1/(alpha+eps)) * sin(alpha*x)^2  (eps = 1e-9)
            s = jnp.sin(alpha * v)
            return v + (s * s) * (1.0 / (alpha + 1e-9))

        cur = x_ref[0].astype(jnp.float32)  # (T, Cin)

        # --- three ResidualUnits (dilations 1, 3, 9) -------------------------------
        for i, dil in enumerate(DILATIONS):
            h = snake(cur, a1_ref[i])                    # (T, Cin)
            xpad_ref[PADMAX:PADMAX + T, :] = h           # centre write; borders stay zero

            # dilated k=7 conv == 7 shifted (T,Cin)@(Cin,Cin) matmuls
            off0 = PADMAX - 3 * dil
            acc = jnp.dot(xpad_ref[off0:off0 + T, :], w7_ref[i, 0],
                          preferred_element_type=jnp.float32)
            for k in range(1, 7):
                off = off0 + k * dil
                acc = acc + jnp.dot(xpad_ref[off:off + T, :], w7_ref[i, k],
                                    preferred_element_type=jnp.float32)
            acc = acc + b7_ref[i]

            acc = snake(acc, a2_ref[i])
            acc = jnp.dot(acc, w1_ref[i],
                          preferred_element_type=jnp.float32) + b1_ref[i]
            cur = cur + acc                              # residual add (lengths match)

        # --- final Snake + strided conv (kernel=2*stride, pad=ceil(stride/2)) ------
        h = snake(cur, fa_ref[...])
        xpad_ref[PADMAX:PADMAX + T, :] = h
        base = PADMAX - pad_f
        out = jnp.zeros((T_out, Cout), jnp.float32)
        for k in range(K):
            start = base + k
            if stride == 1:
                xs = xpad_ref[pl.ds(start, T_out), :]
            else:
                xs = xpad_ref[pl.ds(start, T_out, stride=stride), :]
            out = out + jnp.dot(xs, fw_ref[k], preferred_element_type=jnp.float32)
        out = out + fb_ref[...]
        o_ref[0] = out.astype(o_ref.dtype)

    return kernel


def encoder_block_forward(x_ncw, params, stride):
    """x_ncw: (B, dim//2, T) float32 (torch NCW). Returns (B, dim, T_out) float32 (NCW)."""
    B, Cin, T = x_ncw.shape
    Cout = params["f_w"].shape[0]
    K = 2 * stride
    pad_f = math.ceil(stride / 2)
    T_out = (T + 2 * pad_f - K) // stride + 1

    # One-time layout work in the wrapper (channels-last input, matmul-oriented weights).
    x = jnp.transpose(x_ncw, (0, 2, 1)).astype(jnp.float32)           # (B, T, Cin)
    a1 = params["ru_alpha1"][:, 0, :, 0][:, None, :]                  # (3, 1, Cin)
    a2 = params["ru_alpha2"][:, 0, :, 0][:, None, :]                  # (3, 1, Cin)
    w7 = jnp.transpose(params["ru_w7"], (0, 3, 2, 1))                 # (3, 7, Cin, Cin)
    b7 = params["ru_b7"][:, None, :]                                  # (3, 1, Cin)
    w1 = jnp.transpose(params["ru_w1"][..., 0], (0, 2, 1))            # (3, Cin, Cin)
    b1 = params["ru_b1"][:, None, :]                                  # (3, 1, Cin)
    fa = params["f_alpha"][:, :, 0]                                   # (1, Cin)
    fw = jnp.transpose(params["f_w"], (2, 1, 0))                      # (K, Cin, Cout)
    fb = params["f_b"][None, :]                                       # (1, Cout)

    kernel = _make_encoder_block_kernel(T, Cin, Cout, stride, T_out)

    out = pl.pallas_call(
        kernel,
        out_shape=jax.ShapeDtypeStruct((B, T_out, Cout), jnp.float32),
        grid_spec=pltpu.PrefetchScalarGridSpec(
            num_scalar_prefetch=0,
            grid=(B,),
            in_specs=[
                pl.BlockSpec((1, T, Cin), lambda b: (b, 0, 0)),            # x (per-batch tile)
                pl.BlockSpec((3, 1, Cin), lambda b: (0, 0, 0)),            # snake alpha 1
                pl.BlockSpec((3, 7, Cin, Cin), lambda b: (0, 0, 0, 0)),    # dilated conv weights
                pl.BlockSpec((3, 1, Cin), lambda b: (0, 0, 0)),            # dilated conv bias
                pl.BlockSpec((3, 1, Cin), lambda b: (0, 0, 0)),            # snake alpha 2
                pl.BlockSpec((3, Cin, Cin), lambda b: (0, 0, 0)),          # 1x1 conv weights
                pl.BlockSpec((3, 1, Cin), lambda b: (0, 0, 0)),            # 1x1 conv bias
                pl.BlockSpec((1, Cin), lambda b: (0, 0)),                  # final snake alpha
                pl.BlockSpec((K, Cin, Cout), lambda b: (0, 0, 0)),         # final conv weight
                pl.BlockSpec((1, Cout), lambda b: (0, 0)),                 # final conv bias
            ],
            out_specs=pl.BlockSpec((1, T_out, Cout), lambda b: (b, 0, 0)),
            scratch_shapes=[pltpu.VMEM((T + 2 * PADMAX, Cin), jnp.float32)],
        ),
        compiler_params=pltpu.CompilerParams(
            dimension_semantics=("parallel",)),
    )(x, a1, w7, b7, a2, w1, b1, fa, fw, fb)

    return jnp.transpose(out, (0, 2, 1))  # back to NCW (B, Cout, T_out)


# ------------------------------ parameters ---------------------------------------


def _wn_conv(key, cout, cin, ksize):
    """weight_norm(Conv1d) with weight-norm folded into an effective weight."""
    k_v, k_g, k_b = jax.random.split(key, 3)
    fan_in = cin * ksize
    bound = 1.0 / math.sqrt(fan_in)
    v = jax.random.uniform(k_v, (cout, cin, ksize), jnp.float32, -bound, bound)
    g = 1.0 + 0.1 * jax.random.normal(k_g, (cout, 1, 1), jnp.float32)
    norm = jnp.sqrt(jnp.sum(v * v, axis=(1, 2), keepdims=True))
    w = g * v / jnp.maximum(norm, 1e-12)
    b = jax.random.uniform(k_b, (cout,), jnp.float32, -bound, bound)
    return w, b


def init_params(key, dim, stride):
    C = dim // 2
    ks = jax.random.split(key, 4)
    ru_a1, ru_w7, ru_b7, ru_a2, ru_w1, ru_b1 = [], [], [], [], [], []
    for i in range(3):
        k_a1, k_c7, k_a2, k_c1 = jax.random.split(ks[i], 4)
        ru_a1.append(jax.random.uniform(k_a1, (1, C, 1), jnp.float32, 0.5, 1.5))
        w7, b7 = _wn_conv(k_c7, C, C, 7)
        ru_w7.append(w7); ru_b7.append(b7)
        ru_a2.append(jax.random.uniform(k_a2, (1, C, 1), jnp.float32, 0.5, 1.5))
        w1, b1 = _wn_conv(k_c1, C, C, 1)
        ru_w1.append(w1); ru_b1.append(b1)
    k_fa, k_fc = jax.random.split(ks[3], 2)
    f_alpha = jax.random.uniform(k_fa, (1, C, 1), jnp.float32, 0.5, 1.5)
    f_w, f_b = _wn_conv(k_fc, dim, C, 2 * stride)
    return {
        "ru_alpha1": jnp.stack(ru_a1), "ru_w7": jnp.stack(ru_w7), "ru_b7": jnp.stack(ru_b7),
        "ru_alpha2": jnp.stack(ru_a2), "ru_w1": jnp.stack(ru_w1), "ru_b1": jnp.stack(ru_b1),
        "f_alpha": f_alpha, "f_w": f_w, "f_b": f_b,
    }


# ------------------------------ pure-JAX reference --------------------------------


def _snake_ref(x, alpha):
    return x + (1.0 / (alpha + 1e-9)) * jnp.sin(alpha * x) ** 2


def _conv1d_ref(x, w, b, stride=1, padding=0, dilation=1):
    y = lax.conv_general_dilated(
        x, w, window_strides=(stride,), padding=[(padding, padding)],
        rhs_dilation=(dilation,), dimension_numbers=("NCH", "OIH", "NCH"))
    return y + b[None, :, None]


def reference(x_ncw, params, stride):
    h = x_ncw.astype(jnp.float32)
    for i, dil in enumerate(DILATIONS):
        y = _snake_ref(h, params["ru_alpha1"][i])
        y = _conv1d_ref(y, params["ru_w7"][i], params["ru_b7"][i],
                        padding=3 * dil, dilation=dil)
        y = _snake_ref(y, params["ru_alpha2"][i])
        y = _conv1d_ref(y, params["ru_w1"][i], params["ru_b1"][i])
        pad = (h.shape[-1] - y.shape[-1]) // 2
        if pad > 0:
            h = h[..., pad:-pad]
        h = h + y
    y = _snake_ref(h, params["f_alpha"])
    return _conv1d_ref(y, params["f_w"], params["f_b"],
                       stride=stride, padding=math.ceil(stride / 2))


if __name__ == "__main__":
    # Small shapes consistent with EncoderBlock: input channels = dim // 2.
    B, dim, stride, T = 2, 32, 2, 16

    key = jax.random.PRNGKey(0)
    k_x, k_p = jax.random.split(key)
    x = jax.random.normal(k_x, (B, dim // 2, T), jnp.float32)
    params = init_params(k_p, dim, stride)

    out = encoder_block_forward(x, params, stride)
    out = jax.block_until_ready(out)

    K = 2 * stride
    T_out = (T + 2 * math.ceil(stride / 2) - K) // stride + 1
    assert out.shape == (B, dim, T_out), out.shape
    assert out.dtype == jnp.float32

    ref = jax.block_until_ready(reference(x, params, stride))
    assert ref.shape == out.shape
    assert bool(jnp.allclose(out, ref, rtol=1e-3, atol=1e-3)), (
        f"max abs err {float(jnp.max(jnp.abs(out - ref)))}")

    print("KERNEL_OK")
</pallas_src>

<mosaic_0001>
module attributes {stable_mosaic.version = 11 : i64} {
  func.func @kernel(%arg0: i32, %arg1: memref<1x16x16xf32, #tpu.memory_space<vmem>>, %arg2: memref<3x1x16xf32, #tpu.memory_space<vmem>>, %arg3: memref<3x7x16x16xf32, #tpu.memory_space<vmem>>, %arg4: memref<3x1x16xf32, #tpu.memory_space<vmem>>, %arg5: memref<3x1x16xf32, #tpu.memory_space<vmem>>, %arg6: memref<3x16x16xf32, #tpu.memory_space<vmem>>, %arg7: memref<3x1x16xf32, #tpu.memory_space<vmem>>, %arg8: memref<1x16xf32, #tpu.memory_space<vmem>>, %arg9: memref<4x16x32xf32, #tpu.memory_space<vmem>>, %arg10: memref<1x32xf32, #tpu.memory_space<vmem>>, %arg11: memref<1x8x32xf32, #tpu.memory_space<vmem>>, %arg12: memref<80x16xf32, #tpu.memory_space<vmem>>) attributes {dimension_semantics = [#tpu.dimension_semantics<parallel>], iteration_bounds = array<i64: 2>, scalar_prefetch = 0 : i64, scratch_operands = 1 : i64, tpu.core_type = #tpu.core_type<tc>, window_params = [{transform_indices = @transform_0, window_bounds = array<i64: 1, 16, 16>}, {pipeline_mode = #tpu.pipeline_mode<synchronous>, transform_indices = @transform_1, window_bounds = array<i64: 3, 1, 16>}, {pipeline_mode = #tpu.pipeline_mode<synchronous>, transform_indices = @transform_2, window_bounds = array<i64: 3, 7, 16, 16>}, {pipeline_mode = #tpu.pipeline_mode<synchronous>, transform_indices = @transform_3, window_bounds = array<i64: 3, 1, 16>}, {pipeline_mode = #tpu.pipeline_mode<synchronous>, transform_indices = @transform_4, window_bounds = array<i64: 3, 1, 16>}, {pipeline_mode = #tpu.pipeline_mode<synchronous>, transform_indices = @transform_5, window_bounds = array<i64: 3, 16, 16>}, {pipeline_mode = #tpu.pipeline_mode<synchronous>, transform_indices = @transform_6, window_bounds = array<i64: 3, 1, 16>}, {pipeline_mode = #tpu.pipeline_mode<synchronous>, transform_indices = @transform_7, window_bounds = array<i64: 1, 16>}, {pipeline_mode = #tpu.pipeline_mode<synchronous>, transform_indices = @transform_8, window_bounds = array<i64: 4, 16, 32>}, {pipeline_mode = #tpu.pipeline_mode<synchronous>, transform_indices = @transform_9, window_bounds = array<i64: 1, 32>}, {transform_indices = @transform_10, window_bounds = array<i64: 1, 8, 32>}]} {
    %cst = arith.constant 0.000000e+00 : f32
    %0 = vector.broadcast %cst : f32 to vector<80x16xf32>
    %c0 = arith.constant 0 : index
    %c0_0 = arith.constant 0 : index
    %1 = vector.load %arg12[%c0, %c0_0] : memref<80x16xf32, #tpu.memory_space<vmem>>, vector<80x16xf32>
    tpu.vector_store %arg12[%c0, %c0_0], %0 {strides = array<i32>} : memref<80x16xf32, #tpu.memory_space<vmem>>, vector<80x16xf32>,
    %c0_1 = arith.constant 0 : index
    %c0_2 = arith.constant 0 : index
    %c0_3 = arith.constant 0 : index
    %2 = vector.load %arg1[%c0_1, %c0_2, %c0_3] : memref<1x16x16xf32, #tpu.memory_space<vmem>>, vector<1x16x16xf32>
    %3 = vector.shape_cast %2 : vector<1x16x16xf32> to vector<16x16xf32>
    %c0_4 = arith.constant 0 : index
    %c0_5 = arith.constant 0 : index
    %c0_6 = arith.constant 0 : index
    %4 = vector.load %arg2[%c0_4, %c0_5, %c0_6] : memref<3x1x16xf32, #tpu.memory_space<vmem>>, vector<1x1x16xf32>
    %5 = vector.shape_cast %4 : vector<1x1x16xf32> to vector<1x16xf32>
    %6 = vector.broadcast %5 : vector<1x16xf32> to vector<16x16xf32>
    %7 = arith.mulf %6, %3 : vector<16x16xf32>
    %8 = math.sin %7 : vector<16x16xf32>
    %9 = arith.mulf %8, %8 : vector<16x16xf32>
    %cst_7 = arith.constant 9.99999971E-10 : f32
    %10 = vector.broadcast %cst_7 : f32 to vector<1x16xf32>
    %11 = arith.addf %5, %10 : vector<1x16xf32>
    %cst_8 = arith.constant 1.000000e+00 : f32
    %12 = vector.broadcast %cst_8 : f32 to vector<1x16xf32>
    %13 = arith.divf %12, %11 : vector<1x16xf32>
    %14 = vector.broadcast %13 : vector<1x16xf32> to vector<16x16xf32>
    %15 = arith.mulf %9, %14 : vector<16x16xf32>
    %16 = arith.addf %3, %15 : vector<16x16xf32>
    %c32 = arith.constant 32 : index
    %c0_9 = arith.constant 0 : index
    %17 = vector.load %arg12[%c32, %c0_9] : memref<80x16xf32, #tpu.memory_space<vmem>>, vector<16x16xf32>
    tpu.vector_store %arg12[%c32, %c0_9], %16 {strides = array<i32>} : memref<80x16xf32, #tpu.memory_space<vmem>>, vector<16x16xf32>,
    %c29 = arith.constant 29 : index
    %c0_10 = arith.constant 0 : index
    %18 = vector.load %arg12[%c29, %c0_10] : memref<80x16xf32, #tpu.memory_space<vmem>>, vector<16x16xf32>
    %c0_11 = arith.constant 0 : index
    %c0_12 = arith.constant 0 : index
    %c0_13 = arith.constant 0 : index
    %c0_14 = arith.constant 0 : index
    %19 = vector.load %arg3[%c0_11, %c0_12, %c0_13, %c0_14] : memref<3x7x16x16xf32, #tpu.memory_space<vmem>>, vector<1x1x16x16xf32>
    %20 = vector.shape_cast %19 : vector<1x1x16x16xf32> to vector<16x16xf32>
    %cst_15 = arith.constant dense<0.000000e+00> : vector<16x16xf32>
    %21 = tpu.matmul %18, %20, %cst_15 {dimension_numbers = #tpu.dot_dimension_numbers<[1], [0], [0], [1], [0, 0, 1, 1], [], []>} : vector<16x16xf32>, vector<16x16xf32>, vector<16x16xf32> -> vector<16x16xf32>
    %c30 = arith.constant 30 : index
    %c0_16 = arith.constant 0 : index
    %22 = vector.load %arg12[%c30, %c0_16] : memref<80x16xf32, #tpu.memory_space<vmem>>, vector<16x16xf32>
    %c0_17 = arith.constant 0 : index
    %c1 = arith.constant 1 : index
    %c0_18 = arith.constant 0 : index
    %c0_19 = arith.constant 0 : index
    %23 = vector.load %arg3[%c0_17, %c1, %c0_18, %c0_19] : memref<3x7x16x16xf32, #tpu.memory_space<vmem>>, vector<1x1x16x16xf32>
    %24 = vector.shape_cast %23 : vector<1x1x16x16xf32> to vector<16x16xf32>
    %cst_20 = arith.constant dense<0.000000e+00> : vector<16x16xf32>
    %25 = tpu.matmul %22, %24, %cst_20 {dimension_numbers = #tpu.dot_dimension_numbers<[1], [0], [0], [1], [0, 0, 1, 1], [], []>} : vector<16x16xf32>, vector<16x16xf32>, vector<16x16xf32> -> vector<16x16xf32>
    %26 = arith.addf %21, %25 : vector<16x16xf32>
    %c31 = arith.constant 31 : index
    %c0_21 = arith.constant 0 : index
    %27 = vector.load %arg12[%c31, %c0_21] : memref<80x16xf32, #tpu.memory_space<vmem>>, vector<16x16xf32>
    %c0_22 = arith.constant 0 : index
    %c2 = arith.constant 2 : index
    %c0_23 = arith.constant 0 : index
    %c0_24 = arith.constant 0 : index
    %28 = vector.load %arg3[%c0_22, %c2, %c0_23, %c0_24] : memref<3x7x16x16xf32, #tpu.memory_space<vmem>>, vector<1x1x16x16xf32>
    %29 = vector.shape_cast %28 : vector<1x1x16x16xf32> to vector<16x16xf32>
    %cst_25 = arith.constant dense<0.000000e+00> : vector<16x16xf32>
    %30 = tpu.matmul %27, %29, %cst_25 {dimension_numbers = #tpu.dot_dimension_numbers<[1], [0], [0], [1], [0, 0, 1, 1], [], []>} : vector<16x16xf32>, vector<16x16xf32>, vector<16x16xf32> -> vector<16x16xf32>
    %31 = arith.addf %26, %30 : vector<16x16xf32>
    %c32_26 = arith.constant 32 : index
    %c0_27 = arith.constant 0 : index
    %32 = vector.load %arg12[%c32_26, %c0_27] : memref<80x16xf32, #tpu.memory_space<vmem>>, vector<16x16xf32>
    %c0_28 = arith.constant 0 : index
    %c3 = arith.constant 3 : index
    %c0_29 = arith.constant 0 : index
    %c0_30 = arith.constant 0 : index
    %33 = vector.load %arg3[%c0_28, %c3, %c0_29, %c0_30] : memref<3x7x16x16xf32, #tpu.memory_space<vmem>>, vector<1x1x16x16xf32>
    %34 = vector.shape_cast %33 : vector<1x1x16x16xf32> to vector<16x16xf32>
    %cst_31 = arith.constant dense<0.000000e+00> : vector<16x16xf32>
    %35 = tpu.matmul %32, %34, %cst_31 {dimension_numbers = #tpu.dot_dimension_numbers<[1], [0], [0], [1], [0, 0, 1, 1], [], []>} : vector<16x16xf32>, vector<16x16xf32>, vector<16x16xf32> -> vector<16x16xf32>
    %36 = arith.addf %31, %35 : vector<16x16xf32>
    %c33 = arith.constant 33 : index
    %c0_32 = arith.constant 0 : index
    %37 = vector.load %arg12[%c33, %c0_32] : memref<80x16xf32, #tpu.memory_space<vmem>>, vector<16x16xf32>
    %c0_33 = arith.constant 0 : index
    %c4 = arith.constant 4 : index
    %c0_34 = arith.constant 0 : index
    %c0_35 = arith.constant 0 : index
    %38 = vector.load %arg3[%c0_33, %c4, %c0_34, %c0_35] : memref<3x7x16x16xf32, #tpu.memory_space<vmem>>, vector<1x1x16x16xf32>
    %39 = vector.shape_cast %38 : vector<1x1x16x16xf32> to vector<16x16xf32>
    %cst_36 = arith.constant dense<0.000000e+00> : vector<16x16xf32>
    %40 = tpu.matmul %37, %39, %cst_36 {dimension_numbers = #tpu.dot_dimension_numbers<[1], [0], [0], [1], [0, 0, 1, 1], [], []>} : vector<16x16xf32>, vector<16x16xf32>, vector<16x16xf32> -> vector<16x16xf32>
    %41 = arith.addf %36, %40 : vector<16x16xf32>
    %c34 = arith.constant 34 : index
    %c0_37 = arith.constant 0 : index
    %42 = vector.load %arg12[%c34, %c0_37] : memref<80x16xf32, #tpu.memory_space<vmem>>, vector<16x16xf32>
    %c0_38 = arith.constant 0 : index
    %c5 = arith.constant 5 : index
    %c0_39 = arith.constant 0 : index
    %c0_40 = arith.constant 0 : index
    %43 = vector.load %arg3[%c0_38, %c5, %c0_39, %c0_40] : memref<3x7x16x16xf32, #tpu.memory_space<vmem>>, vector<1x1x16x16xf32>
    %44 = vector.shape_cast %43 : vector<1x1x16x16xf32> to vector<16x16xf32>
    %cst_41 = arith.constant dense<0.000000e+00> : vector<16x16xf32>
    %45 = tpu.matmul %42, %44, %cst_41 {dimension_numbers = #tpu.dot_dimension_numbers<[1], [0], [0], [1], [0, 0, 1, 1], [], []>} : vector<16x16xf32>, vector<16x16xf32>, vector<16x16xf32> -> vector<16x16xf32>
    %46 = arith.addf %41, %45 : vector<16x16xf32>
    %c35 = arith.constant 35 : index
    %c0_42 = arith.constant 0 : index
    %47 = vector.load %arg12[%c35, %c0_42] : memref<80x16xf32, #tpu.memory_space<vmem>>, vector<16x16xf32>
    %c0_43 = arith.constant 0 : index
    %c6 = arith.constant 6 : index
    %c0_44 = arith.constant 0 : index
    %c0_45 = arith.constant 0 : index
    %48 = vector.load %arg3[%c0_43, %c6, %c0_44, %c0_45] : memref<3x7x16x16xf32, #tpu.memory_space<vmem>>, vector<1x1x16x16xf32>
    %49 = vector.shape_cast %48 : vector<1x1x16x16xf32> to vector<16x16xf32>
    %cst_46 = arith.constant dense<0.000000e+00> : vector<16x16xf32>
    %50 = tpu.matmul %47, %49, %cst_46 {dimension_numbers = #tpu.dot_dimension_numbers<[1], [0], [0], [1], [0, 0, 1, 1], [], []>} : vector<16x16xf32>, vector<16x16xf32>, vector<16x16xf32> -> vector<16x16xf32>
    %51 = arith.addf %46, %50 : vector<16x16xf32>
    %c0_47 = arith.constant 0 : index
    %c0_48 = arith.constant 0 : index
    %c0_49 = arith.constant 0 : index
    %52 = vector.load %arg4[%c0_47, %c0_48, %c0_49] : memref<3x1x16xf32, #tpu.memory_space<vmem>>, vector<1x1x16xf32>
    %53 = vector.shape_cast %52 : vector<1x1x16xf32> to vector<1x16xf32>
    %54 = vector.broadcast %53 : vector<1x16xf32> to vector<16x16xf32>
    %55 = arith.addf %51, %54 : vector<16x16xf32>
    %c0_50 = arith.constant 0 : index
    %c0_51 = arith.constant 0 : index
    %c0_52 = arith.constant 0 : index
    %56 = vector.load %arg5[%c0_50, %c0_51, %c0_52] : memref<3x1x16xf32, #tpu.memory_space<vmem>>, vector<1x1x16xf32>
    %57 = vector.shape_cast %56 : vector<1x1x16xf32> to vector<1x16xf32>
    %58 = vector.broadcast %57 : vector<1x16xf32> to vector<16x16xf32>
    %59 = arith.mulf %58, %55 : vector<16x16xf32>
    %60 = math.sin %59 : vector<16x16xf32>
    %61 = arith.mulf %60, %60 : vector<16x16xf32>
    %cst_53 = arith.constant 9.99999971E-10 : f32
    %62 = vector.broadcast %cst_53 : f32 to vector<1x16xf32>
    %63 = arith.addf %57, %62 : vector<1x16xf32>
    %cst_54 = arith.constant 1.000000e+00 : f32
    %64 = vector.broadcast %cst_54 : f32 to vector<1x16xf32>
    %65 = arith.divf %64, %63 : vector<1x16xf32>
    %66 = vector.broadcast %65 : vector<1x16xf32> to vector<16x16xf32>
    %67 = arith.mulf %61, %66 : vector<16x16xf32>
    %68 = arith.addf %55, %67 : vector<16x16xf32>
    %c0_55 = arith.constant 0 : index
    %c0_56 = arith.constant 0 : index
    %c0_57 = arith.constant 0 : index
    %69 = vector.load %arg6[%c0_55, %c0_56, %c0_57] : memref<3x16x16xf32, #tpu.memory_space<vmem>>, vector<1x16x16xf32>
    %70 = vector.shape_cast %69 : vector<1x16x16xf32> to vector<16x16xf32>
    %cst_58 = arith.constant dense<0.000000e+00> : vector<16x16xf32>
    %71 = tpu.matmul %68, %70, %cst_58 {dimension_numbers = #tpu.dot_dimension_numbers<[1], [0], [0], [1], [0, 0, 1, 1], [], []>} : vector<16x16xf32>, vector<16x16xf32>, vector<16x16xf32> -> vector<16x16xf32>
    %c0_59 = arith.constant 0 : index
    %c0_60 = arith.constant 0 : index
    %c0_61 = arith.constant 0 : index
    %72 = vector.load %arg7[%c0_59, %c0_60, %c0_61] : memref<3x1x16xf32, #tpu.memory_space<vmem>>, vector<1x1x16xf32>
    %73 = vector.shape_cast %72 : vector<1x1x16xf32> to vector<1x16xf32>
    %74 = vector.broadcast %73 : vector<1x16xf32> to vector<16x16xf32>
    %75 = arith.addf %71, %74 : vector<16x16xf32>
    %76 = arith.addf %3, %75 : vector<16x16xf32>
    %c1_62 = arith.constant 1 : index
    %c0_63 = arith.constant 0 : index
    %c0_64 = arith.constant 0 : index
    %77 = vector.load %arg2[%c1_62, %c0_63, %c0_64] : memref<3x1x16xf32, #tpu.memory_space<vmem>>, vector<1x1x16xf32>
    %78 = vector.shape_cast %77 : vector<1x1x16xf32> to vector<1x16xf32>
    %79 = vector.broadcast %78 : vector<1x16xf32> to vector<16x16xf32>
    %80 = arith.mulf %79, %76 : vector<16x16xf32>
    %81 = math.sin %80 : vector<16x16xf32>
    %82 = arith.mulf %81, %81 : vector<16x16xf32>
    %cst_65 = arith.constant 9.99999971E-10 : f32
    %83 = vector.broadcast %cst_65 : f32 to vector<1x16xf32>
    %84 = arith.addf %78, %83 : vector<1x16xf32>
    %cst_66 = arith.constant 1.000000e+00 : f32
    %85 = vector.broadcast %cst_66 : f32 to vector<1x16xf32>
    %86 = arith.divf %85, %84 : vector<1x16xf32>
    %87 = vector.broadcast %86 : vector<1x16xf32> to vector<16x16xf32>
    %88 = arith.mulf %82, %87 : vector<16x16xf32>
    %89 = arith.addf %76, %88 : vector<16x16xf32>
    %c32_67 = arith.constant 32 : index
    %c0_68 = arith.constant 0 : index
    %90 = vector.load %arg12[%c32_67, %c0_68] : memref<80x16xf32, #tpu.memory_space<vmem>>, vector<16x16xf32>
    tpu.vector_store %arg12[%c32_67, %c0_68], %89 {strides = array<i32>} : memref<80x16xf32, #tpu.memory_space<vmem>>, vector<16x16xf32>,
    %c23 = arith.constant 23 : index
    %c0_69 = arith.constant 0 : index
    %91 = vector.load %arg12[%c23, %c0_69] : memref<80x16xf32, #tpu.memory_space<vmem>>, vector<16x16xf32>
    %c1_70 = arith.constant 1 : index
    %c0_71 = arith.constant 0 : index
    %c0_72 = arith.constant 0 : index
    %c0_73 = arith.constant 0 : index
    %92 = vector.load %arg3[%c1_70, %c0_71, %c0_72, %c0_73] : memref<3x7x16x16xf32, #tpu.memory_space<vmem>>, vector<1x1x16x16xf32>
    %93 = vector.shape_cast %92 : vector<1x1x16x16xf32> to vector<16x16xf32>
    %cst_74 = arith.constant dense<0.000000e+00> : vector<16x16xf32>
    %94 = tpu.matmul %91, %93, %cst_74 {dimension_numbers = #tpu.dot_dimension_numbers<[1], [0], [0], [1], [0, 0, 1, 1], [], []>} : vector<16x16xf32>, vector<16x16xf32>, vector<16x16xf32> -> vector<16x16xf32>
    %c26 = arith.constant 26 : index
    %c0_75 = arith.constant 0 : index
    %95 = vector.load %arg12[%c26, %c0_75] : memref<80x16xf32, #tpu.memory_space<vmem>>, vector<16x16xf32>
    %c1_76 = arith.constant 1 : index
    %c1_77 = arith.constant 1 : index
    %c0_78 = arith.constant 0 : index
    %c0_79 = arith.constant 0 : index
    %96 = vector.load %arg3[%c1_76, %c1_77, %c0_78, %c0_79] : memref<3x7x16x16xf32, #tpu.memory_space<vmem>>, vector<1x1x16x16xf32>
    %97 = vector.shape_cast %96 : vector<1x1x16x16xf32> to vector<16x16xf32>
    %cst_80 = arith.constant dense<0.000000e+00> : vector<16x16xf32>
    %98 = tpu.matmul %95, %97, %cst_80 {dimension_numbers = #tpu.dot_dimension_numbers<[1], [0], [0], [1], [0, 0, 1, 1], [], []>} : vector<16x16xf32>, vector<16x16xf32>, vector<16x16xf32> -> vector<16x16xf32>
    %99 = arith.addf %94, %98 : vector<16x16xf32>
    %c29_81 = arith.constant 29 : index
    %c0_82 = arith.constant 0 : index
    %100 = vector.load %arg12[%c29_81, %c0_82] : memref<80x16xf32, #tpu.memory_space<vmem>>, vector<16x16xf32>
    %c1_83 = arith.constant 1 : index
    %c2_84 = arith.constant 2 : index
    %c0_85 = arith.constant 0 : index
    %c0_86 = arith.constant 0 : index
    %101 = vector.load %arg3[%c1_83, %c2_84, %c0_85, %c0_86] : memref<3x7x16x16xf32, #tpu.memory_space<vmem>>, vector<1x1x16x16xf32>
    %102 = vector.shape_cast %101 : vector<1x1x16x16xf32> to vector<16x16xf32>
    %cst_87 = arith.constant dense<0.000000e+00> : vector<16x16xf32>
    %103 = tpu.matmul %100, %102, %cst_87 {dimension_numbers = #tpu.dot_dimension_numbers<[1], [0], [0], [1], [0, 0, 1, 1], [], []>} : vector<16x16xf32>, vector<16x16xf32>, vector<16x16xf32> -> vector<16x16xf32>
    %104 = arith.addf %99, %103 : vector<16x16xf32>
    %c32_88 = arith.constant 32 : index
    %c0_89 = arith.constant 0 : index
    %105 = vector.load %arg12[%c32_88, %c0_89] : memref<80x16xf32, #tpu.memory_space<vmem>>, vector<16x16xf32>
    %c1_90 = arith.constant 1 : index
    %c3_91 = arith.constant 3 : index
    %c0_92 = arith.constant 0 : index
    %c0_93 = arith.constant 0 : index
    %106 = vector.load %arg3[%c1_90, %c3_91, %c0_92, %c0_93] : memref<3x7x16x16xf32, #tpu.memory_space<vmem>>, vector<1x1x16x16xf32>
    %107 = vector.shape_cast %106 : vector<1x1x16x16xf32> to vector<16x16xf32>
    %cst_94 = arith.constant dense<0.000000e+00> : vector<16x16xf32>
    %108 = tpu.matmul %105, %107, %cst_94 {dimension_numbers = #tpu.dot_dimension_numbers<[1], [0], [0], [1], [0, 0, 1, 1], [], []>} : vector<16x16xf32>, vector<16x16xf32>, vector<16x16xf32> -> vector<16x16xf32>
    %109 = arith.addf %104, %108 : vector<16x16xf32>
    %c35_95 = arith.constant 35 : index
    %c0_96 = arith.constant 0 : index
    %110 = vector.load %arg12[%c35_95, %c0_96] : memref<80x16xf32, #tpu.memory_space<vmem>>, vector<16x16xf32>
    %c1_97 = arith.constant 1 : index
    %c4_98 = arith.constant 4 : index
    %c0_99 = arith.constant 0 : index
    %c0_100 = arith.constant 0 : index
    %111 = vector.load %arg3[%c1_97, %c4_98, %c0_99, %c0_100] : memref<3x7x16x16xf32, #tpu.memory_space<vmem>>, vector<1x1x16x16xf32>
    %112 = vector.shape_cast %111 : vector<1x1x16x16xf32> to vector<16x16xf32>
    %cst_101 = arith.constant dense<0.000000e+00> : vector<16x16xf32>
    %113 = tpu.matmul %110, %112, %cst_101 {dimension_numbers = #tpu.dot_dimension_numbers<[1], [0], [0], [1], [0, 0, 1, 1], [], []>} : vector<16x16xf32>, vector<16x16xf32>, vector<16x16xf32> -> vector<16x16xf32>
    %114 = arith.addf %109, %113 : vector<16x16xf32>
    %c38 = arith.constant 38 : index
    %c0_102 = arith.constant 0 : index
    %115 = vector.load %arg12[%c38, %c0_102] : memref<80x16xf32, #tpu.memory_space<vmem>>, vector<16x16xf32>
    %c1_103 = arith.constant 1 : index
    %c5_104 = arith.constant 5 : index
    %c0_105 = arith.constant 0 : index
    %c0_106 = arith.constant 0 : index
    %116 = vector.load %arg3[%c1_103, %c5_104, %c0_105, %c0_106] : memref<3x7x16x16xf32, #tpu.memory_space<vmem>>, vector<1x1x16x16xf32>
    %117 = vector.shape_cast %116 : vector<1x1x16x16xf32> to vector<16x16xf32>
    %cst_107 = arith.constant dense<0.000000e+00> : vector<16x16xf32>
    %118 = tpu.matmul %115, %117, %cst_107 {dimension_numbers = #tpu.dot_dimension_numbers<[1], [0], [0], [1], [0, 0, 1, 1], [], []>} : vector<16x16xf32>, vector<16x16xf32>, vector<16x16xf32> -> vector<16x16xf32>
    %119 = arith.addf %114, %118 : vector<16x16xf32>
    %c41 = arith.constant 41 : index
    %c0_108 = arith.constant 0 : index
    %120 = vector.load %arg12[%c41, %c0_108] : memref<80x16xf32, #tpu.memory_space<vmem>>, vector<16x16xf32>
    %c1_109 = arith.constant 1 : index
    %c6_110 = arith.constant 6 : index
    %c0_111 = arith.constant 0 : index
    %c0_112 = arith.constant 0 : index
    %121 = vector.load %arg3[%c1_109, %c6_110, %c0_111, %c0_112] : memref<3x7x16x16xf32, #tpu.memory_space<vmem>>, vector<1x1x16x16xf32>
    %122 = vector.shape_cast %121 : vector<1x1x16x16xf32> to vector<16x16xf32>
    %cst_113 = arith.constant dense<0.000000e+00> : vector<16x16xf32>
    %123 = tpu.matmul %120, %122, %cst_113 {dimension_numbers = #tpu.dot_dimension_numbers<[1], [0], [0], [1], [0, 0, 1, 1], [], []>} : vector<16x16xf32>, vector<16x16xf32>, vector<16x16xf32> -> vector<16x16xf32>
    %124 = arith.addf %119, %123 : vector<16x16xf32>
    %c1_114 = arith.constant 1 : index
    %c0_115 = arith.constant 0 : index
    %c0_116 = arith.constant 0 : index
    %125 = vector.load %arg4[%c1_114, %c0_115, %c0_116] : memref<3x1x16xf32, #tpu.memory_space<vmem>>, vector<1x1x16xf32>
    %126 = vector.shape_cast %125 : vector<1x1x16xf32> to vector<1x16xf32>
    %127 = vector.broadcast %126 : vector<1x16xf32> to vector<16x16xf32>
    %128 = arith.addf %124, %127 : vector<16x16xf32>
    %c1_117 = arith.constant 1 : index
    %c0_118 = arith.constant 0 : index
    %c0_119 = arith.constant 0 : index
    %129 = vector.load %arg5[%c1_117, %c0_118, %c0_119] : memref<3x1x16xf32, #tpu.memory_space<vmem>>, vector<1x1x16xf32>
    %130 = vector.shape_cast %129 : vector<1x1x16xf32> to vector<1x16xf32>
    %131 = vector.broadcast %130 : vector<1x16xf32> to vector<16x16xf32>
    %132 = arith.mulf %131, %128 : vector<16x16xf32>
    %133 = math.sin %132 : vector<16x16xf32>
    %134 = arith.mulf %133, %133 : vector<16x16xf32>
    %cst_120 = arith.constant 9.99999971E-10 : f32
    %135 = vector.broadcast %cst_120 : f32 to vector<1x16xf32>
    %136 = arith.addf %130, %135 : vector<1x16xf32>
    %cst_121 = arith.constant 1.000000e+00 : f32
    %137 = vector.broadcast %cst_121 : f32 to vector<1x16xf32>
    %138 = arith.divf %137, %136 : vector<1x16xf32>
    %139 = vector.broadcast %138 : vector<1x16xf32> to vector<16x16xf32>
    %140 = arith.mulf %134, %139 : vector<16x16xf32>
    %141 = arith.addf %128, %140 : vector<16x16xf32>
    %c1_122 = arith.constant 1 : index
    %c0_123 = arith.constant 0 : index
    %c0_124 = arith.constant 0 : index
    %142 = vector.load %arg6[%c1_122, %c0_123, %c0_124] : memref<3x16x16xf32, #tpu.memory_space<vmem>>, vector<1x16x16xf32>
    %143 = vector.shape_cast %142 : vector<1x16x16xf32> to vector<16x16xf32>
    %cst_125 = arith.constant dense<0.000000e+00> : vector<16x16xf32>
    %144 = tpu.matmul %141, %143, %cst_125 {dimension_numbers = #tpu.dot_dimension_numbers<[1], [0], [0], [1], [0, 0, 1, 1], [], []>} : vector<16x16xf32>, vector<16x16xf32>, vector<16x16xf32> -> vector<16x16xf32>
    %c1_126 = arith.constant 1 : index
    %c0_127 = arith.constant 0 : index
    %c0_128 = arith.constant 0 : index
    %145 = vector.load %arg7[%c1_126, %c0_127, %c0_128] : memref<3x1x16xf32, #tpu.memory_space<vmem>>, vector<1x1x16xf32>
    %146 = vector.shape_cast %145 : vector<1x1x16xf32> to vector<1x16xf32>
    %147 = vector.broadcast %146 : vector<1x16xf32> to vector<16x16xf32>
    %148 = arith.addf %144, %147 : vector<16x16xf32>
    %149 = arith.addf %76, %148 : vector<16x16xf32>
    %c2_129 = arith.constant 2 : index
    %c0_130 = arith.constant 0 : index
    %c0_131 = arith.constant 0 : index
    %150 = vector.load %arg2[%c2_129, %c0_130, %c0_131] : memref<3x1x16xf32, #tpu.memory_space<vmem>>, vector<1x1x16xf32>
    %151 = vector.shape_cast %150 : vector<1x1x16xf32> to vector<1x16xf32>
    %152 = vector.broadcast %151 : vector<1x16xf32> to vector<16x16xf32>
    %153 = arith.mulf %152, %149 : vector<16x16xf32>
    %154 = math.sin %153 : vector<16x16xf32>
    %155 = arith.mulf %154, %154 : vector<16x16xf32>
    %cst_132 = arith.constant 9.99999971E-10 : f32
    %156 = vector.broadcast %cst_132 : f32 to vector<1x16xf32>
    %157 = arith.addf %151, %156 : vector<1x16xf32>
    %cst_133 = arith.constant 1.000000e+00 : f32
    %158 = vector.broadcast %cst_133 : f32 to vector<1x16xf32>
    %159 = arith.divf %158, %157 : vector<1x16xf32>
    %160 = vector.broadcast %159 : vector<1x16xf32> to vector<16x16xf32>
    %161 = arith.mulf %155, %160 : vector<16x16xf32>
    %162 = arith.addf %149, %161 : vector<16x16xf32>
    %c32_134 = arith.constant 32 : index
    %c0_135 = arith.constant 0 : index
    %163 = vector.load %arg12[%c32_134, %c0_135] : memref<80x16xf32, #tpu.memory_space<vmem>>, vector<16x16xf32>
    tpu.vector_store %arg12[%c32_134, %c0_135], %162 {strides = array<i32>} : memref<80x16xf32, #tpu.memory_space<vmem>>, vector<16x16xf32>,
    %c5_136 = arith.constant 5 : index
    %c0_137 = arith.constant 0 : index
    %164 = vector.load %arg12[%c5_136, %c0_137] : memref<80x16xf32, #tpu.memory_space<vmem>>, vector<16x16xf32>
    %c2_138 = arith.constant 2 : index
    %c0_139 = arith.constant 0 : index
    %c0_140 = arith.constant 0 : index
    %c0_141 = arith.constant 0 : index
    %165 = vector.load %arg3[%c2_138, %c0_139, %c0_140, %c0_141] : memref<3x7x16x16xf32, #tpu.memory_space<vmem>>, vector<1x1x16x16xf32>
    %166 = vector.shape_cast %165 : vector<1x1x16x16xf32> to vector<16x16xf32>
    %cst_142 = arith.constant dense<0.000000e+00> : vector<16x16xf32>
    %167 = tpu.matmul %164, %166, %cst_142 {dimension_numbers = #tpu.dot_dimension_numbers<[1], [0], [0], [1], [0, 0, 1, 1], [], []>} : vector<16x16xf32>, vector<16x16xf32>, vector<16x16xf32> -> vector<16x16xf32>
    %c14 = arith.constant 14 : index
    %c0_143 = arith.constant 0 : index
    %168 = vector.load %arg12[%c14, %c0_143] : memref<80x16xf32, #tpu.memory_space<vmem>>, vector<16x16xf32>
    %c2_144 = arith.constant 2 : index
    %c1_145 = arith.constant 1 : index
    %c0_146 = arith.constant 0 : index
    %c0_147 = arith.constant 0 : index
    %169 = vector.load %arg3[%c2_144, %c1_145, %c0_146, %c0_147] : memref<3x7x16x16xf32, #tpu.memory_space<vmem>>, vector<1x1x16x16xf32>
    %170 = vector.shape_cast %169 : vector<1x1x16x16xf32> to vector<16x16xf32>
    %cst_148 = arith.constant dense<0.000000e+00> : vector<16x16xf32>
    %171 = tpu.matmul %168, %170, %cst_148 {dimension_numbers = #tpu.dot_dimension_numbers<[1], [0], [0], [1], [0, 0, 1, 1], [], []>} : vector<16x16xf32>, vector<16x16xf32>, vector<16x16xf32> -> vector<16x16xf32>
    %172 = arith.addf %167, %171 : vector<16x16xf32>
    %c23_149 = arith.constant 23 : index
    %c0_150 = arith.constant 0 : index
    %173 = vector.load %arg12[%c23_149, %c0_150] : memref<80x16xf32, #tpu.memory_space<vmem>>, vector<16x16xf32>
    %c2_151 = arith.constant 2 : index
    %c2_152 = arith.constant 2 : index
    %c0_153 = arith.constant 0 : index
    %c0_154 = arith.constant 0 : index
    %174 = vector.load %arg3[%c2_151, %c2_152, %c0_153, %c0_154] : memref<3x7x16x16xf32, #tpu.memory_space<vmem>>, vector<1x1x16x16xf32>
    %175 = vector.shape_cast %174 : vector<1x1x16x16xf32> to vector<16x16xf32>
    %cst_155 = arith.constant dense<0.000000e+00> : vector<16x16xf32>
    %176 = tpu.matmul %173, %175, %cst_155 {dimension_numbers = #tpu.dot_dimension_numbers<[1], [0], [0], [1], [0, 0, 1, 1], [], []>} : vector<16x16xf32>, vector<16x16xf32>, vector<16x16xf32> -> vector<16x16xf32>
    %177 = arith.addf %172, %176 : vector<16x16xf32>
    %c32_156 = arith.constant 32 : index
    %c0_157 = arith.constant 0 : index
    %178 = vector.load %arg12[%c32_156, %c0_157] : memref<80x16xf32, #tpu.memory_space<vmem>>, vector<16x16xf32>
    %c2_158 = arith.constant 2 : index
    %c3_159 = arith.constant 3 : index
    %c0_160 = arith.constant 0 : index
    %c0_161 = arith.constant 0 : index
    %179 = vector.load %arg3[%c2_158, %c3_159, %c0_160, %c0_161] : memref<3x7x16x16xf32, #tpu.memory_space<vmem>>, vector<1x1x16x16xf32>
    %180 = vector.shape_cast %179 : vector<1x1x16x16xf32> to vector<16x16xf32>
    %cst_162 = arith.constant dense<0.000000e+00> : vector<16x16xf32>
    %181 = tpu.matmul %178, %180, %cst_162 {dimension_numbers = #tpu.dot_dimension_numbers<[1], [0], [0], [1], [0, 0, 1, 1], [], []>} : vector<16x16xf32>, vector<16x16xf32>, vector<16x16xf32> -> vector<16x16xf32>
    %182 = arith.addf %177, %181 : vector<16x16xf32>
    %c41_163 = arith.constant 41 : index
    %c0_164 = arith.constant 0 : index
    %183 = vector.load %arg12[%c41_163, %c0_164] : memref<80x16xf32, #tpu.memory_space<vmem>>, vector<16x16xf32>
    %c2_165 = arith.constant 2 : index
    %c4_166 = arith.constant 4 : index
    %c0_167 = arith.constant 0 : index
    %c0_168 = arith.constant 0 : index
    %184 = vector.load %arg3[%c2_165, %c4_166, %c0_167, %c0_168] : memref<3x7x16x16xf32, #tpu.memory_space<vmem>>, vector<1x1x16x16xf32>
    %185 = vector.shape_cast %184 : vector<1x1x16x16xf32> to vector<16x16xf32>
    %cst_169 = arith.constant dense<0.000000e+00> : vector<16x16xf32>
    %186 = tpu.matmul %183, %185, %cst_169 {dimension_numbers = #tpu.dot_dimension_numbers<[1], [0], [0], [1], [0, 0, 1, 1], [], []>} : vector<16x16xf32>, vector<16x16xf32>, vector<16x16xf32> -> vector<16x16xf32>
    %187 = arith.addf %182, %186 : vector<16x16xf32>
    %c50 = arith.constant 50 : index
    %c0_170 = arith.constant 0 : index
    %188 = vector.load %arg12[%c50, %c0_170] : memref<80x16xf32, #tpu.memory_space<vmem>>, vector<16x16xf32>
    %c2_171 = arith.constant 2 : index
    %c5_172 = arith.constant 5 : index
    %c0_173 = arith.constant 0 : index
    %c0_174 = arith.constant 0 : index
    %189 = vector.load %arg3[%c2_171, %c5_172, %c0_173, %c0_174] : memref<3x7x16x16xf32, #tpu.memory_space<vmem>>, vector<1x1x16x16xf32>
    %190 = vector.shape_cast %189 : vector<1x1x16x16xf32> to vector<16x16xf32>
    %cst_175 = arith.constant dense<0.000000e+00> : vector<16x16xf32>
    %191 = tpu.matmul %188, %190, %cst_175 {dimension_numbers = #tpu.dot_dimension_numbers<[1], [0], [0], [1], [0, 0, 1, 1], [], []>} : vector<16x16xf32>, vector<16x16xf32>, vector<16x16xf32> -> vector<16x16xf32>
    %192 = arith.addf %187, %191 : vector<16x16xf32>
    %c59 = arith.constant 59 : index
    %c0_176 = arith.constant 0 : index
    %193 = vector.load %arg12[%c59, %c0_176] : memref<80x16xf32, #tpu.memory_space<vmem>>, vector<16x16xf32>
    %c2_177 = arith.constant 2 : index
    %c6_178 = arith.constant 6 : index
    %c0_179 = arith.constant 0 : index
    %c0_180 = arith.constant 0 : index
    %194 = vector.load %arg3[%c2_177, %c6_178, %c0_179, %c0_180] : memref<3x7x16x16xf32, #tpu.memory_space<vmem>>, vector<1x1x16x16xf32>
    %195 = vector.shape_cast %194 : vector<1x1x16x16xf32> to vector<16x16xf32>
    %cst_181 = arith.constant dense<0.000000e+00> : vector<16x16xf32>
    %196 = tpu.matmul %193, %195, %cst_181 {dimension_numbers = #tpu.dot_dimension_numbers<[1], [0], [0], [1], [0, 0, 1, 1], [], []>} : vector<16x16xf32>, vector<16x16xf32>, vector<16x16xf32> -> vector<16x16xf32>
    %197 = arith.addf %192, %196 : vector<16x16xf32>
    %c2_182 = arith.constant 2 : index
    %c0_183 = arith.constant 0 : index
    %c0_184 = arith.constant 0 : index
    %198 = vector.load %arg4[%c2_182, %c0_183, %c0_184] : memref<3x1x16xf32, #tpu.memory_space<vmem>>, vector<1x1x16xf32>
    %199 = vector.shape_cast %198 : vector<1x1x16xf32> to vector<1x16xf32>
    %200 = vector.broadcast %199 : vector<1x16xf32> to vector<16x16xf32>
    %201 = arith.addf %197, %200 : vector<16x16xf32>
    %c2_185 = arith.constant 2 : index
    %c0_186 = arith.constant 0 : index
    %c0_187 = arith.constant 0 : index
    %202 = vector.load %arg5[%c2_185, %c0_186, %c0_187] : memref<3x1x16xf32, #tpu.memory_space<vmem>>, vector<1x1x16xf32>
    %203 = vector.shape_cast %202 : vector<1x1x16xf32> to vector<1x16xf32>
    %204 = vector.broadcast %203 : vector<1x16xf32> to vector<16x16xf32>
    %205 = arith.mulf %204, %201 : vector<16x16xf32>
    %206 = math.sin %205 : vector<16x16xf32>
    %207 = arith.mulf %206, %206 : vector<16x16xf32>
    %cst_188 = arith.constant 9.99999971E-10 : f32
    %208 = vector.broadcast %cst_188 : f32 to vector<1x16xf32>
    %209 = arith.addf %203, %208 : vector<1x16xf32>
    %cst_189 = arith.constant 1.000000e+00 : f32
    %210 = vector.broadcast %cst_189 : f32 to vector<1x16xf32>
    %211 = arith.divf %210, %209 : vector<1x16xf32>
    %212 = vector.broadcast %211 : vector<1x16xf32> to vector<16x16xf32>
    %213 = arith.mulf %207, %212 : vector<16x16xf32>
    %214 = arith.addf %201, %213 : vector<16x16xf32>
    %c2_190 = arith.constant 2 : index
    %c0_191 = arith.constant 0 : index
    %c0_192 = arith.constant 0 : index
    %215 = vector.load %arg6[%c2_190, %c0_191, %c0_192] : memref<3x16x16xf32, #tpu.memory_space<vmem>>, vector<1x16x16xf32>
    %216 = vector.shape_cast %215 : vector<1x16x16xf32> to vector<16x16xf32>
    %cst_193 = arith.constant dense<0.000000e+00> : vector<16x16xf32>
    %217 = tpu.matmul %214, %216, %cst_193 {dimension_numbers = #tpu.dot_dimension_numbers<[1], [0], [0], [1], [0, 0, 1, 1], [], []>} : vector<16x16xf32>, vector<16x16xf32>, vector<16x16xf32> -> vector<16x16xf32>
    %c2_194 = arith.constant 2 : index
    %c0_195 = arith.constant 0 : index
    %c0_196 = arith.constant 0 : index
    %218 = vector.load %arg7[%c2_194, %c0_195, %c0_196] : memref<3x1x16xf32, #tpu.memory_space<vmem>>, vector<1x1x16xf32>
    %219 = vector.shape_cast %218 : vector<1x1x16xf32> to vector<1x16xf32>
    %220 = vector.broadcast %219 : vector<1x16xf32> to vector<16x16xf32>
    %221 = arith.addf %217, %220 : vector<16x16xf32>
    %222 = arith.addf %149, %221 : vector<16x16xf32>
    %c0_197 = arith.constant 0 : index
    %c0_198 = arith.constant 0 : index
    %223 = vector.load %arg8[%c0_197, %c0_198] : memref<1x16xf32, #tpu.memory_space<vmem>>, vector<1x16xf32>
    %224 = vector.broadcast %223 : vector<1x16xf32> to vector<16x16xf32>
    %225 = arith.mulf %224, %222 : vector<16x16xf32>
    %226 = math.sin %225 : vector<16x16xf32>
    %227 = arith.mulf %226, %226 : vector<16x16xf32>
    %cst_199 = arith.constant 9.99999971E-10 : f32
    %228 = vector.broadcast %cst_199 : f32 to vector<1x16xf32>
    %229 = arith.addf %223, %228 : vector<1x16xf32>
    %cst_200 = arith.constant 1.000000e+00 : f32
    %230 = vector.broadcast %cst_200 : f32 to vector<1x16xf32>
    %231 = arith.divf %230, %229 : vector<1x16xf32>
    %232 = vector.broadcast %231 : vector<1x16xf32> to vector<16x16xf32>
    %233 = arith.mulf %227, %232 : vector<16x16xf32>
    %234 = arith.addf %222, %233 : vector<16x16xf32>
    %c32_201 = arith.constant 32 : index
    %c0_202 = arith.constant 0 : index
    %235 = vector.load %arg12[%c32_201, %c0_202] : memref<80x16xf32, #tpu.memory_space<vmem>>, vector<16x16xf32>
    tpu.vector_store %arg12[%c32_201, %c0_202], %234 {strides = array<i32>} : memref<80x16xf32, #tpu.memory_space<vmem>>, vector<16x16xf32>,
    %cst_203 = arith.constant 0.000000e+00 : f32
    %236 = vector.broadcast %cst_203 : f32 to vector<8x32xf32>
    %c31_204 = arith.constant 31 : index
    %c0_205 = arith.constant 0 : index
    %237 = tpu.strided_load %arg12[%c31_204, %c0_205] {strides = array<i32: 2, 1>} : memref<80x16xf32, #tpu.memory_space<vmem>>, vector<8x16xf32>
    %c0_206 = arith.constant 0 : index
    %c0_207 = arith.constant 0 : index
    %c0_208 = arith.constant 0 : index
    %238 = vector.load %arg9[%c0_206, %c0_207, %c0_208] : memref<4x16x32xf32, #tpu.memory_space<vmem>>, vector<1x16x32xf32>
    %239 = vector.shape_cast %238 : vector<1x16x32xf32> to vector<16x32xf32>
    %cst_209 = arith.constant dense<0.000000e+00> : vector<8x32xf32>
    %240 = tpu.matmul %237, %239, %cst_209 {dimension_numbers = #tpu.dot_dimension_numbers<[1], [0], [0], [1], [0, 0, 1, 1], [], []>} : vector<8x16xf32>, vector<16x32xf32>, vector<8x32xf32> -> vector<8x32xf32>
    %241 = arith.addf %236, %240 : vector<8x32xf32>
    %c32_210 = arith.constant 32 : index
    %c0_211 = arith.constant 0 : index
    %242 = tpu.strided_load %arg12[%c32_210, %c0_211] {strides = array<i32: 2, 1>} : memref<80x16xf32, #tpu.memory_space<vmem>>, vector<8x16xf32>
    %c1_212 = arith.constant 1 : index
    %c0_213 = arith.constant 0 : index
    %c0_214 = arith.constant 0 : index
    %243 = vector.load %arg9[%c1_212, %c0_213, %c0_214] : memref<4x16x32xf32, #tpu.memory_space<vmem>>, vector<1x16x32xf32>
    %244 = vector.shape_cast %243 : vector<1x16x32xf32> to vector<16x32xf32>
    %cst_215 = arith.constant dense<0.000000e+00> : vector<8x32xf32>
    %245 = tpu.matmul %242, %244, %cst_215 {dimension_numbers = #tpu.dot_dimension_numbers<[1], [0], [0], [1], [0, 0, 1, 1], [], []>} : vector<8x16xf32>, vector<16x32xf32>, vector<8x32xf32> -> vector<8x32xf32>
    %246 = arith.addf %241, %245 : vector<8x32xf32>
    %c33_216 = arith.constant 33 : index
    %c0_217 = arith.constant 0 : index
    %247 = tpu.strided_load %arg12[%c33_216, %c0_217] {strides = array<i32: 2, 1>} : memref<80x16xf32, #tpu.memory_space<vmem>>, vector<8x16xf32>
    %c2_218 = arith.constant 2 : index
    %c0_219 = arith.constant 0 : index
    %c0_220 = arith.constant 0 : index
    %248 = vector.load %arg9[%c2_218, %c0_219, %c0_220] : memref<4x16x32xf32, #tpu.memory_space<vmem>>, vector<1x16x32xf32>
    %249 = vector.shape_cast %248 : vector<1x16x32xf32> to vector<16x32xf32>
    %cst_221 = arith.constant dense<0.000000e+00> : vector<8x32xf32>
    %250 = tpu.matmul %247, %249, %cst_221 {dimension_numbers = #tpu.dot_dimension_numbers<[1], [0], [0], [1], [0, 0, 1, 1], [], []>} : vector<8x16xf32>, vector<16x32xf32>, vector<8x32xf32> -> vector<8x32xf32>
    %251 = arith.addf %246, %250 : vector<8x32xf32>
    %c34_222 = arith.constant 34 : index
    %c0_223 = arith.constant 0 : index
    %252 = tpu.strided_load %arg12[%c34_222, %c0_223] {strides = array<i32: 2, 1>} : memref<80x16xf32, #tpu.memory_space<vmem>>, vector<8x16xf32>
    %c3_224 = arith.constant 3 : index
    %c0_225 = arith.constant 0 : index
    %c0_226 = arith.constant 0 : index
    %253 = vector.load %arg9[%c3_224, %c0_225, %c0_226] : memref<4x16x32xf32, #tpu.memory_space<vmem>>, vector<1x16x32xf32>
    %254 = vector.shape_cast %253 : vector<1x16x32xf32> to vector<16x32xf32>
    %cst_227 = arith.constant dense<0.000000e+00> : vector<8x32xf32>
    %255 = tpu.matmul %252, %254, %cst_227 {dimension_numbers = #tpu.dot_dimension_numbers<[1], [0], [0], [1], [0, 0, 1, 1], [], []>} : vector<8x16xf32>, vector<16x32xf32>, vector<8x32xf32> -> vector<8x32xf32>
    %256 = arith.addf %251, %255 : vector<8x32xf32>
    %c0_228 = arith.constant 0 : index
    %c0_229 = arith.constant 0 : index
    %257 = vector.load %arg10[%c0_228, %c0_229] : memref<1x32xf32, #tpu.memory_space<vmem>>, vector<1x32xf32>
    %258 = vector.broadcast %257 : vector<1x32xf32> to vector<8x32xf32>
    %259 = arith.addf %256, %258 : vector<8x32xf32>
    %c0_230 = arith.constant 0 : index
    %c0_231 = arith.constant 0 : index
    %c0_232 = arith.constant 0 : index
    %260 = vector.load %arg11[%c0_230, %c0_231, %c0_232] : memref<1x8x32xf32, #tpu.memory_space<vmem>>, vector<1x8x32xf32>
    %261 = vector.shape_cast %260 : vector<1x8x32xf32> to vector<8x32xf32>
    %262 = vector.shape_cast %259 : vector<8x32xf32> to vector<1x8x32xf32>
    tpu.vector_store %arg11[%c0_230, %c0_231, %c0_232], %262 {strides = array<i32>} : memref<1x8x32xf32, #tpu.memory_space<vmem>>, vector<1x8x32xf32>,
    return
  }
  func.func @transform_0(%arg0: i32) -> (i32, i32, i32) {
    %c0_i32 = arith.constant 0 : i32
    %c0_i32_0 = arith.constant 0 : i32
    %c0_i32_1 = arith.constant 0 : i32
    return %arg0, %c0_i32, %c0_i32_0 : i32, i32, i32
  }
  func.func @transform_1(%arg0: i32) -> (i32, i32, i32) {
    %c0_i32 = arith.constant 0 : i32
    %c0_i32_0 = arith.constant 0 : i32
    %c0_i32_1 = arith.constant 0 : i32
    %c0_i32_2 = arith.constant 0 : i32
    return %c0_i32, %c0_i32_0, %c0_i32_1 : i32, i32, i32
  }
  func.func @transform_2(%arg0: i32) -> (i32, i32, i32, i32) {
    %c0_i32 = arith.constant 0 : i32
    %c0_i32_0 = arith.constant 0 : i32
    %c0_i32_1 = arith.constant 0 : i32
    %c0_i32_2 = arith.constant 0 : i32
    %c0_i32_3 = arith.constant 0 : i32
    return %c0_i32, %c0_i32_0, %c0_i32_1, %c0_i32_2 : i32, i32, i32, i32
  }
  func.func @transform_3(%arg0: i32) -> (i32, i32, i32) {
    %c0_i32 = arith.constant 0 : i32
    %c0_i32_0 = arith.constant 0 : i32
    %c0_i32_1 = arith.constant 0 : i32
    %c0_i32_2 = arith.constant 0 : i32
    return %c0_i32, %c0_i32_0, %c0_i32_1 : i32, i32, i32
  }
  func.func @transform_4(%arg0: i32) -> (i32, i32, i32) {
    %c0_i32 = arith.constant 0 : i32
    %c0_i32_0 = arith.constant 0 : i32
    %c0_i32_1 = arith.constant 0 : i32
    %c0_i32_2 = arith.constant 0 : i32
    return %c0_i32, %c0_i32_0, %c0_i32_1 : i32, i32, i32
  }
  func.func @transform_5(%arg0: i32) -> (i32, i32, i32) {
    %c0_i32 = arith.constant 0 : i32
    %c0_i32_0 = arith.constant 0 : i32
    %c0_i32_1 = arith.constant 0 : i32
    %c0_i32_2 = arith.constant 0 : i32
    return %c0_i32, %c0_i32_0, %c0_i32_1 : i32, i32, i32
  }
  func.func @transform_6(%arg0: i32) -> (i32, i32, i32) {
    %c0_i32 = arith.constant 0 : i32
    %c0_i32_0 = arith.constant 0 : i32
    %c0_i32_1 = arith.constant 0 : i32
    %c0_i32_2 = arith.constant 0 : i32
    return %c0_i32, %c0_i32_0, %c0_i32_1 : i32, i32, i32
  }
  func.func @transform_7(%arg0: i32) -> (i32, i32) {
    %c0_i32 = arith.constant 0 : i32
    %c0_i32_0 = arith.constant 0 : i32
    %c0_i32_1 = arith.constant 0 : i32
    return %c0_i32, %c0_i32_0 : i32, i32
  }
  func.func @transform_8(%arg0: i32) -> (i32, i32, i32) {
    %c0_i32 = arith.constant 0 : i32
    %c0_i32_0 = arith.constant 0 : i32
    %c0_i32_1 = arith.constant 0 : i32
    %c0_i32_2 = arith.constant 0 : i32
    return %c0_i32, %c0_i32_0, %c0_i32_1 : i32, i32, i32
  }
  func.func @transform_9(%arg0: i32) -> (i32, i32) {
    %c0_i32 = arith.constant 0 : i32
    %c0_i32_0 = arith.constant 0 : i32
    %c0_i32_1 = arith.constant 0 : i32
    return %c0_i32, %c0_i32_0 : i32, i32
  }
  func.func @transform_10(%arg0: i32) -> (i32, i32, i32) {
    %c0_i32 = arith.constant 0 : i32
    %c0_i32_0 = arith.constant 0 : i32
    %c0_i32_1 = arith.constant 0 : i32
    return %arg0, %c0_i32, %c0_i32_0 : i32, i32, i32
  }
}

</mosaic_0001>

<bundles_post_ra>
// kernel: tpu_custom_call.1
= control target key start
LH: loop header
LB: loop body
LE: loop exit
PB: predicated region body
PF: predicated region fallthrough
CT: control target
= control target key end

     0   :  { %s6378_s0 = inlined_call_operand.hbm [shape: f32[2,16,16], index: 0, kind: input, shape index: {}]   ;;  %s6379_s1 = inlined_call_operand.hbm [shape: f32[3,1,16], index: 1, kind: input, shape index: {}]   ;;  %s6380_s2 = inlined_call_operand.hbm [shape: f32[3,7,16,16], index: 2, kind: input, shape index: {}]   ;;  %s6381_s3 = inlined_call_operand.hbm [shape: f32[3,1,16], index: 3, kind: input, shape index: {}]   ;;  %s6382_s4 = inlined_call_operand.vmem [shape: f32[3,1,16], index: 4, kind: input, shape index: {}]   ;;  %s6383_s5 = inlined_call_operand.hbm [shape: f32[3,16,16], index: 5, kind: input, shape index: {}]   ;;  %s6384_s6 = inlined_call_operand.hbm [shape: f32[3,1,16], index: 6, kind: input, shape index: {}]   ;;  %s6385_s7 = inlined_call_operand.vmem [shape: f32[1,16], index: 7, kind: input, shape index: {}]   ;;  %s6386_s8 = inlined_call_operand.hbm [shape: f32[4,16,32], index: 8, kind: input, shape index: {}]   ;;  %s6387_s9 = inlined_call_operand.vmem [shape: f32[1,32], index: 9, kind: input, shape index: {}]   ;;  %s6388_s10 = inlined_call_operand.hbm [shape: f32[2,8,32], index: 10, kind: output, shape index: {}]  }
   0x1   :  { %6391 = sst [smem:[#allocation21_spill]] %s6379_s1 }
   0x2   :  { %6392 = sst [smem:[#allocation22_spill]] %s6380_s2 }
   0x3   :  { %6393 = sst [smem:[#allocation23_spill]] %s6381_s3 }
   0x4   :  { %6394 = sst [smem:[#allocation24_spill]] %s6383_s5 }
   0x5   :  { %6395 = sst [smem:[#allocation25_spill]] %s6384_s6 }
   0x6   :  { %15 = vsyncpa [#allocation4], 0 }
   0x7   :  { %17 = vsyncpa [#allocation4 + $0x1], 0 }
   0x8   :  { %18 = vsyncpa [#allocation7], 0 }
   0x9   :  { %19 = vsyncpa [#allocation10], 0 }
   0xa   :  { %20 = vsyncpa [#allocation13], 0 }
   0xb   :  { %21 = vsyncpa [#allocation5], 0 }
   0xc   :  { %23 = vsyncpa [#allocation5 + $0x1], 0  ;;  %s4666_s13 = smov 0   ;;  %s4668_s14 = smov 0  }
   0xd   :  { %s4670_s15 = smov 0   ;;  %s4672_s16 = smov 0  }
   0xe LB: > { %s6396_s1 = sld [smem:[#allocation21_spill]]  ;;  %s4690_s20 = sadd.s32 4294967295, %s4591_s16   ;;  %s4591_s16 = sphi %s4672_s16, %s6452_s16   ;;  %s4587_s15 = sphi %s4670_s15, %s6451_s15   ;;  %s4583_s14 = sphi %s4668_s14, %s6450_s14   ;;  %s4579_s13 = sphi %s4666_s13, %s6449_s13  }
   0xf   : > { %p4033_p0 = scmp.ge.s32.totalorder %s4591_s16, 1  ;;  %p50_p1 = scmp.eq.s32.totalorder %s4690_s20, 0 }
  0x10   : > { %p275_p2 = scmp.lt.s32.totalorder %s4591_s16, 3  ;;  %s4593_s22 = smov [#allocation6]  }
  0x11   : > { %s288_s23 = sshll.u32 %s4593_s22, 4  ;;  %s6398_s3 = sld [smem:[#allocation23_spill]]  ;;  %s289_s23 = int_to_ptr.vmem [resolvable:$true] %s288_s23 }
  0x12   : > { %p4695_p3 = pnand %p4033_p0, %p275_p2  ;;  %s6400_s6 = sld [smem:[#allocation25_spill]] }
  0x13   : > { %s4594_s11 = smov [#allocation9]   ;;  %s4595_s17 = smov 16  }
  0x14   : > { %s286_s19 = sshll.u32 %s6396_s1, 4  ;;  %p4182_p4 = pneg %p4695_p3  ;;  %s287_s19 = int_to_ptr.hbm [resolvable:$true] %s286_s19 }
  0x15   : > { %s316_s12 = sshll.u32 %s4594_s11, 4  ;;  %s4596_s18 = smov 1   ;;  %s317_s12 = int_to_ptr.vmem [resolvable:$true] %s316_s12 }
  0x16   : > { %p4707_p6 = pnand %p4182_p4, %p50_p1  ;;  %s6401_s2 = sld [smem:[#allocation22_spill]] }
  0x17   : > { %s314_s26 = sshll.u32 %s6398_s3, 4  ;;  %s4597_s1 = smov [#allocation12]   ;;  %s315_s26 = int_to_ptr.hbm [resolvable:$true] %s314_s26 }
  0x18   : > { %s345_s30 = sshll.u32 %s6400_s6, 4  ;;  %s347_s3 = sshll.u32 %s4597_s1, 4  ;;  %s346_s30 = int_to_ptr.hbm [resolvable:$true] %s345_s30  ;;  %s348_s3 = int_to_ptr.vmem [resolvable:$true] %s347_s3 }
  0x19   : > { %4185 = dma.hbm_to_vmem [thread:$0]  (!%p4707_p6), %s287_s19, 48, %s289_s23, [#allocation7], %s4595_s17, %s4595_s17, %s4596_s18  }
  0x1a   : > { %4191 = dma.hbm_to_vmem [thread:$0]  (!%p4707_p6), %s315_s26, 48, %s317_s12, [#allocation10], %s4595_s17, %s4595_s17, %s4596_s18  }
  0x1b   : > { %4197 = dma.hbm_to_vmem [thread:$0]  (!%p4707_p6), %s346_s30, 48, %s348_s3, [#allocation13], %s4595_s17, %s4595_s17, %s4596_s18  }
  0x1c   : > { %s300_s25 = sshll.u32 %s6401_s2, 4  ;;  %s4598_s28 = smov [#allocation8]   ;;  %s301_s25 = int_to_ptr.hbm [resolvable:$true] %s300_s25 }
  0x1d   : > { %s302_s29 = sshll.u32 %s4598_s28, 4  ;;  %s6389_s19 = smov 128   ;;  %s303_s29 = int_to_ptr.vmem [resolvable:$true] %s302_s29 }
  0x1e   : > { %s6390_s23 = smov 8   ;;  %s6402_s5 = sld [smem:[#allocation24_spill]] }
  0x1f   : > { %4188 = dma.hbm_to_vmem [thread:$0]  (!%p4707_p6), %s301_s25, 5376, %s303_s29, [#allocation7], %s6389_s19, %s6389_s19, %s6390_s23  }
  0x20   : > { %s4601_s3 = smov [#allocation11]   ;;  %s362_s18 = sshll.u32 %s6386_s8, 4  ;;  %s363_s18 = int_to_ptr.hbm [resolvable:$true] %s362_s18 }
  0x21   : > { %s333_s30 = sshll.u32 %s4601_s3, 4  ;;  %s4602_s22 = smov [#allocation14]   ;;  %s334_s30 = int_to_ptr.vmem [resolvable:$true] %s333_s30 }
  0x22   : > { %s364_s24 = sshll.u32 %s4602_s22, 4  ;;  %s4032_s25 = sadd.s32 4294967294, %s4591_s16   ;;  %s365_s24 = int_to_ptr.vmem [resolvable:$true] %s364_s24 }
  0x23   : > { %4200 = dma.hbm_to_vmem [thread:$0]  (!%p4707_p6), %s363_s18, 1024, %s365_s24, [#allocation13], %s6389_s19, %s6389_s19, %s6390_s23  }
  0x24   : > { %s331_s11 = sshll.u32 %s6402_s5, 4  ;;  %s4746_s28 = sadd.s32 1, %s4591_s16   ;;  %s332_s11 = int_to_ptr.hbm [resolvable:$true] %s331_s11 }
  0x25   : > { %4194 = dma.hbm_to_vmem [thread:$0]  (!%p4707_p6), %s332_s11, 768, %s334_s30, [#allocation10], %s6389_s19, %s6389_s19, %s6390_s23  }
  0x26   : > { %s33_s29 = ssub.s32 %s4591_s16, %s4746_s28  ;;  %s36_s1 = sadd.s32 1, %s4587_s15 }
  0x27   : > { %p34_p7 = scmp.eq.s32.totalorder %s33_s29, 0  ;;  %p43_p8 = scmp.ne.s32.totalorder %s4587_s15, %s4583_s14 }
  0x28   : > { %p44_p9 = scmp.eq.s32.totalorder %s4591_s16, 0  ;;  %p49_p10 = scmp.ne.s32.totalorder %s4583_s14, %s4579_s13 }
  0x29   : > { %s4757_s26 = scalar_select %p34_p7, %s4587_s15, %s36_s1  }
  0x2a   : > { %p4759_p11 = por %p44_p9, %p43_p8  ;;  %p4765_p12 = por %p50_p1, %p49_p10 }
  0x2b   : > { %p262_p13 = scmp.eq.s32.totalorder %s4690_s20, 1  ;;  %p268_p0 = scmp.eq.s32.totalorder %s4032_s25, 1 }
  0x2c   : > { %p4215_p2 = scmp.lt.s32.totalorder %s4591_s16, 2  ;;  %s381_s3 = sand.u32 1, %s4587_s15  }
  0x2d   : > { %p4772_p4 = por %p262_p13, %p43_p8  ;;  %p4776_p6 = por %p268_p0, %p49_p10 }
  0x2e   : > { %s4041_s17 = sshll.u32 %s381_s3, 4  ;;  %s4153_s18 = sshll.u32 %s4591_s16, 4 }
  0x2f   : > { %s390_s29 = scalar_lea.hbm %s6378_s0, %s4153_s18  ;;  %s385_s1 = scalar_lea.vmem [#allocation3], %s4041_s17 }
  0x30   : > { %s393_s19 = sshll.u32 %s385_s1, 4  ;;  %s391_s23 = sshll.u32 %s390_s29, 4  ;;  %s394_s19 = int_to_ptr.vmem [resolvable:$true] %s393_s19  ;;  %s392_s23 = int_to_ptr.hbm [resolvable:$true] %s391_s23 }
  0x31   : > { %p4786_p7 = pnand %p4215_p2, %p4759_p11  ;;  %s382_s2 = scalar_lea.sflag [#allocation4], %s381_s3 }
  0x32   : > { %s4483_s5 = sshra.s32 %s392_s23, 4  ;;  %s4490_s22 = scalar_lea.hbm %s6378_s0, 32  ;;  %s4484_s5 = int_to_ptr.hbm [resolvable:$true] %s4483_s5 }
  0x33   : > { %s4485_s6 = scalar_lea.hbm %s4484_s5, 16  ;;  %p4487_p9 = pneg %p4786_p7 }
  0x34   : > { %p4486_p8 = scmp.ne.s32.totalorder %s4484_s5, %s4485_s6  ;;  %p4491_p11 = scmp.lt.s32.totalorder %s4484_s5, %s6378_s0 }
  0x35   : > { %p4492_p0 = scmp.lt.s32.totalorder %s4490_s22, %s4485_s6 }
  0x36   : > { %p4488_p10 = pnand %p4487_p9, %p4486_p8 }
  0x37   : > { %p4493_p2 = por %p4492_p0, %p4491_p11 }
  0x38   : > { %p4489_p13 = pneg %p4488_p10 }
  0x3a   : > { %p4494_p5 = pnand %p4493_p2, %p4489_p13 }
  0x3c   : > { %4497 = shalt.err (!%p4494_p5)
}
  0x3d   : > { %s6408_s3 = smov 8   ;;  %s6409_s29 = smov 128  }
  0x3e   : > { %4204 = dma.hbm_to_vmem [thread:$0]  (!%p4786_p7), %s392_s23, 256, %s394_s19, %s382_s2, %s6409_s29, %s6409_s29, %s6408_s3  }
  0x3f   : > { %405 = sbr.rel (%p4695_p3) target bundleno = 1915 (0x77b), region = 60  ;;  %s4806_s1 = sand.u32 (!%p4695_p3), 1, %s4583_s14  }
  0x40   : > { %s4045_s5 = sshll.u32 (!%p4695_p3), %s4806_s1, 4  ;;  %s408_s6 = scalar_lea.sflag (!%p4695_p3), [#allocation4], %s4806_s1 }
  0x41   : > { %s4810_s17 = scalar_lea.vmem (!%p4695_p3), [#allocation3], %s4045_s5 }
  0x44   : > { %4558 = dma.done.wait (%p4765_p12), %s408_s6, 256  }
  0x45   : > { %4560 = vsyncadd (%p4765_p12), %s408_s6, 4294967040 }
  0x46   : > { %4562 = dma.done.wait (%p50_p1), [#allocation7], 5424  }
  0x47   : > { %4564 = vsyncadd (%p50_p1), [#allocation7], 4294961872 }
  0x48   : > { %4566 = dma.done.wait (%p50_p1), [#allocation10], 816  }
  0x49   : > { %4568 = vsyncadd (%p50_p1), [#allocation10], 4294966480 }
  0x4a   : > { %4570 = dma.done.wait (%p50_p1), [#allocation13], 1072  }
  0x4b   : > { %4572 = vsyncadd (%p50_p1), [#allocation13], 4294966224  ;;  %vm479_vm0 = vcmask 130048   ;;  %v4603_v0 = vmov 0.0   ;;  %v843_v1 = vld [vmem:[#allocation8 + $0x18] sm:$0xff]  ;;  %v906_v2 = vld [vmem:[#allocation8 + $0x28] sm:$0xff] }
  0x4c   : > { %483 = vst.msk [vmem:[#allocation2 + $0x18] sm:$0xff] %vm479_vm0, %v4603_v0  ;;  %v842_v3 = vld [vmem:[#allocation8 + $0x10] sm:$0xff]  ;;  %864 = vmatpush.msra.mxu0 %v843_v1  ;;  %927 = vmatpush.msra.mxu2 %v906_v2  ;;  %v838_v4 = vld [vmem:[#allocation8 + $0x8] sm:$0xff]  ;;  %v905_v5 = vld [vmem:[#allocation8 + $0x20] sm:$0xff]  ;;  %v4604_v33 = vmov 683565275  }
  0x4d   : > { %484 = vst.msk [vmem:[#allocation2 + $0x20] sm:$0xff] %vm479_vm0, %v4603_v0  ;;  %v942_v6 = vld [vmem:[#allocation8 + $0x38] sm:$0xff]  ;;  %893 = vmatpush.msra.mxu1 %v838_v4  ;;  %v4605_v35 = vmov 2475754826   ;;  %v4606_v37 = vmov 2131351028  }
  0x4e   : > { %480 = vst.msk [vmem:[#allocation2] sm:$0xff] %vm479_vm0, %v4603_v0  ;;  %963 = vmatpush.msra.mxu3 %v942_v6  ;;  %v4837_v7 = vld [vmem:[%s4810_s17] sm:$0xff]  ;;  %v4840_v8 = vld [vmem:[%s4810_s17 + $0x8] sm:$0xff]  ;;  %865 = vmatpush.msra.mxu0 %v842_v3  ;;  %v4607_v39 = vmov 2102212464   ;;  %s4052_s21 = sshll.u32 %s4806_s1, 3 }
  0x4f   : > { %481 = vst.msk [vmem:[#allocation2 + $0x8] sm:$0xff] %vm479_vm0, %v4603_v0  ;;  %928 = vmatpush.msra.mxu2 %v905_v5  ;;  %v4273_v9 = vld [vmem:[#allocation6] ss:$0 sm:$0xff]  ;;  %v4608_v41 = vmov 920167782   ;;  %s4150_s19 = sshll.u32 %s4690_s20, 3 }
  0x50   : > { %482 = vst.msk [vmem:[#allocation2 + $0x10] sm:$0xff] %vm479_vm0, %v4603_v0  ;;  %v4845_v10 = vmul.f32 %v4273_v9, %v4837_v7  ;;  %v4848_v11 = vmul.f32 %v4273_v9, %v4840_v8  ;;  %v4609_v50 = vmov 1326507024   ;;  %s3900_s25 = scalar_lea.hbm %s6388_s10, %s4150_s19  ;;  %s478_s24 = scalar_lea.vmem [#allocation15], %s4052_s21 }
  0x51   : > { %485 = vst.msk [vmem:[#allocation2 + $0x28] sm:$0xff] %vm479_vm0, %v4603_v0  ;;  %s3902_s27 = sshll.u32 %s478_s24, 4  ;;  %s3904_s3 = sshll.u32 %s3900_s25, 4  ;;  %s3903_s27 = int_to_ptr.vmem [resolvable:$true] %s3902_s27  ;;  %s3905_s3 = int_to_ptr.hbm [resolvable:$true] %s3904_s3 }
  0x52   : > { %486 = vst.msk [vmem:[#allocation2 + $0x30] sm:$0xff] %vm479_vm0, %v4603_v0  ;;  %v498_v12 = vand.u32 2147483647, %v4845_v10  ;;  %v501_v13 = vand.u32 2139095040, %v4845_v10  ;;  %v653_v14 = vand.u32 2147483647, %v4848_v11 }
  0x53   : > { %487 = vst.msk [vmem:[#allocation2 + $0x38] sm:$0xff] %vm479_vm0, %v4603_v0  ;;  %v656_v15 = vand.u32 2139095040, %v4848_v11  ;;  %s3890_s20 = scalar_lea.sflag [#allocation5], %s4806_s1  ;;  %s4527_s29 = sshra.s32 %s3905_s3, 4  ;;  %s4528_s29 = int_to_ptr.hbm [resolvable:$true] %s4527_s29 }
  0x54   : > { %488 = vst.msk [vmem:[#allocation2 + $0x40] sm:$0xff] %vm479_vm0, %v4603_v0  ;;  %v502_v16 = vshrl.u32 %v501_v13, 23  ;;  %v505_v17 = vand.u32 8388607, %v498_v12  ;;  %v660_v22 = vand.u32 8388607, %v653_v14  ;;  %p4534_p12 = scmp.lt.s32.totalorder %s4528_s29, %s6388_s10 }
  0x55   : > { %489 = vst.msk [vmem:[#allocation2 + $0x48] sm:$0xff] %vm479_vm0, %v4603_v0  ;;  %v657_v18 = vshrl.u32 %v656_v15, 23  ;;  %s4529_s5 = scalar_lea.hbm %s4528_s29, 8  ;;  %s4533_s2 = scalar_lea.hbm %s6388_s10, 16 }
  0x56   : > { %v4053_v19 = vadd.s32 4294967169, %v502_v16  ;;  %v506_v20 = vor.u32 8388608, %v505_v17  ;;  %v661_v27 = vor.u32 8388608, %v660_v22  ;;  %p4530_p1 = scmp.ne.s32.totalorder %s4528_s29, %s4529_s5  ;;  %p4535_p7 = scmp.lt.s32.totalorder %s4533_s2, %s4529_s5 }
  0x57   : > { %v4056_v21 = vadd.s32 4294967169, %v657_v18 }
  0x58   : > { %v508_v23 = vadd.s32 1, %v4053_v19  ;;  %v4858_v26 = vshll.u32 %v506_v20, 8  ;;  %v4870_v44 = vshll.u32 %v661_v27, 8  ;;  %p4531_p3 = pnand %p4530_p1, %p4772_p4  ;;  %p4536_p8 = por %p4535_p7, %p4534_p12 }
  0x59   : > { %v663_v24 = vadd.s32 1, %v4056_v21 }
  0x5a   : > { %vm509_vm1 = vcmp.gt.s32.totalorder %v508_v23, 0  ;;  %v547_v43 = vand.u32 65535, %v4858_v26  ;;  %v548_v48 = vshrl.u32 %v4858_v26, 16  ;;  %p4532_p5 = pneg %p4531_p3 }
  0x5b   : > { %v510_v25 = vsel %vm509_vm1, %v508_v23, 0  ;;  %vm664_vm2 = vcmp.gt.s32.totalorder %v663_v24, 0 }
  0x5c   : > { %v512_v28 = vand.u32 31, %v510_v25  ;;  %v665_v29 = vsel %vm664_vm2, %v663_v24, 0  ;;  %v4860_v30 = vshrl.u32 %v510_v25, 5  ;;  %p4537_p9 = pnand %p4536_p8, %p4532_p5 }
  0x5d   : > { %v4862_v31 = vand.u32 31, %v665_v29  ;;  %v4890_v61 = vshrl.u32 %v665_v29, 5 }
  0x5e   : > { %v513_v32 = vsub.s32 32, %v512_v28  ;;  %v515_v34 = vshll.u32 %v4604_v33, %v512_v28  ;;  %v518_v36 = vshll.u32 %v4605_v35, %v512_v28  ;;  %v521_v38 = vshll.u32 %v4606_v37, %v512_v28 }
  0x5f   : > { %v524_v40 = vshll.u32 %v4607_v39, %v512_v28  ;;  %v527_v42 = vshll.u32 %v4608_v41, %v512_v28  ;;  %vm530_vm3 = vcmp.lt.s32.totalorder %v4860_v30, 1  ;;  %vm533_vm4 = vcmp.lt.s32.totalorder %v4860_v30, 4 }
  0x60   : > { %v516_v45 = vshrl.u32 %v4605_v35, %v513_v32  ;;  %v519_v46 = vshrl.u32 %v4606_v37, %v513_v32  ;;  %v522_v47 = vshrl.u32 %v4607_v39, %v513_v32  ;;  %v525_v49 = vshrl.u32 %v4608_v41, %v513_v32 }
  0x61   : > { %v528_v51 = vshrl.u32 %v4609_v50, %v513_v32  ;;  %v4881_v55 = vsub.s32 32, %v4862_v31  ;;  %v514_v56 = vshrl.u32 %v4604_v33, %v513_v32  ;;  %vm532_vm5 = vcmp.lt.s32.totalorder %v4860_v30, 3 }
  0x62   : > { %v517_v52 = vor.u32 %v516_v45, %v515_v34  ;;  %v520_v53 = vor.u32 %v519_v46, %v518_v36  ;;  %v523_v54 = vor.u32 %v522_v47, %v521_v38  ;;  %v526_v57 = vor.u32 %v525_v49, %v524_v40 }
  0x63   : > { %v529_v58 = vor.u32 %v528_v51, %v527_v42  ;;  %vm531_vm6 = vcmp.lt.s32.totalorder %v4860_v30, 2  ;;  %v670_v0 = vshll.u32 %v4604_v33, %v4862_v31  ;;  %v673_v1 = vshll.u32 %v4605_v35, %v4862_v31 }
  0x64   : > { %v538_v59 = vsel %vm530_vm3, %v517_v52, %v520_v53  ;;  %v542_v60 = vsel %vm530_vm3, %v520_v53, %v523_v54  ;;  %v539_v62 = vsel %vm533_vm4, %v526_v57, 920167782  ;;  %v535_v2 = vsel %vm533_vm4, %v523_v54, 2102212464 }
  0x65   : > { %v543_v63 = vsel %vm533_vm4, %v529_v58, 1326507024  ;;  %v540_v3 = vsel %vm532_vm5, %v523_v54, %v539_v62  ;;  %v671_v5 = vshrl.u32 %v4605_v35, %v4881_v55  ;;  %v534_v6 = vsel %vm530_vm3, %v514_v56, %v517_v52 }
  0x66   : > { %v544_v4 = vsel %vm532_vm5, %v526_v57, %v543_v63  ;;  %v541_v9 = vsel %vm531_vm6, %v538_v59, %v540_v3  ;;  %v674_v15 = vshrl.u32 %v4606_v37, %v4881_v55  ;;  %v536_v20 = vsel %vm532_vm5, %v520_v53, %v535_v2 }
  0x67   : > { %v545_v13 = vsel %vm531_vm6, %v542_v60, %v544_v4  ;;  %v571_v18 = vand.u32 65535, %v541_v9  ;;  %v572_v19 = vshrl.u32 %v541_v9, 16  ;;  %v4918_v21 = vor.u32 %v671_v5, %v670_v0 }
  0x68   : > { %v549_v16 = vand.u32 65535, %v545_v13  ;;  %v550_v17 = vshrl.u32 %v545_v13, 16  ;;  %v4920_v22 = vor.u32 %v674_v15, %v673_v1  ;;  %v676_v23 = vshll.u32 %v4606_v37, %v4862_v31 }
  0x69   : > { %v677_v28 = vshrl.u32 %v4607_v39, %v4881_v55  ;;  %v573_v32 = vmul.u32 %v571_v18, %v547_v43  ;;  %v574_v34 = vmul.u32 %v572_v19, %v547_v43  ;;  %v575_v36 = vmul.u32 %v571_v18, %v548_v48 }
  0x6a   : > { %v551_v24 = vmul.u32 %v549_v16, %v547_v43  ;;  %v552_v25 = vmul.u32 %v550_v17, %v547_v43  ;;  %v553_v27 = vmul.u32 %v549_v16, %v548_v48  ;;  %v554_v29 = vmul.u32 %v550_v17, %v548_v48 }
  0x6b   : > { %v576_v45 = vmul.u32 %v572_v19, %v548_v48  ;;  %v577_v47 = vshll.u32 %v574_v34, 16  ;;  %v578_v49 = vshrl.u32 %v574_v34, 16  ;;  %v579_v51 = vshll.u32 %v575_v36, 16 }
  0x6c   : > { %v555_v38 = vshll.u32 %v552_v25, 16  ;;  %v556_v40 = vshrl.u32 %v552_v25, 16  ;;  %v557_v42 = vshll.u32 %v553_v27, 16  ;;  %v558_v46 = vshrl.u32 %v553_v27, 16 }
  0x6d   : > { %v580_v53 = vshrl.u32 %v575_v36, 16  ;;  %v679_v54 = vshll.u32 %v4607_v39, %v4862_v31  ;;  %v4610_v56 = vmov 0   ;;  %vm581_vm8 = vc.u32 %v573_v32, %v577_v47 }
  0x6e   : > { %vm559_vm7 = vc.u32 %v551_v24, %v555_v38  ;;  %v561_v52 = vadd.s32 %v555_v38, %v551_v24  ;;  %v583_v43 = vadd.s32 %v577_v47, %v573_v32  ;;  %v680_v58 = vshrl.u32 %v4608_v41, %v4881_v55 }
  0x6f   : > { %v560_v57 = vsel %vm559_vm7, 1, %v4610_v56  ;;  %v582_v48 = vsel %vm581_vm8, 1, %v4610_v56  ;;  %v682_v60 = vshll.u32 %v4608_v41, %v4862_v31  ;;  %v678_v0 = vor.u32 %v677_v28, %v676_v23 }
  0x70   : > { %v562_v59 = vadd.s32 %v560_v57, %v554_v29  ;;  %vm563_vm9 = vc.u32 %v561_v52, %v557_v42  ;;  %v584_v63 = vadd.s32 %v582_v48, %v576_v45  ;;  %vm585_vm10 = vc.u32 %v583_v43, %v579_v51 }
  0x71   : > { %v564_v62 = vsel %vm563_vm9, 1, %v4610_v56  ;;  %v586_v2 = vsel %vm585_vm10, 1, %v4610_v56  ;;  %v681_v3 = vor.u32 %v680_v58, %v679_v54  ;;  %v683_v4 = vshrl.u32 %v4609_v50, %v4881_v55 }
  0x72   : > { %v566_v1 = vadd.s32 %v564_v62, %v562_v59  ;;  %v4938_v5 = vadd.s32 %v583_v43, %v579_v51  ;;  %v588_v9 = vadd.s32 %v586_v2, %v584_v63  ;;  %vm685_vm11 = vcmp.lt.s32.totalorder %v4890_v61, 1 }
  0x73   : > { %vm687_vm12 = vcmp.lt.s32.totalorder %v4890_v61, 3  ;;  %v684_v13 = vor.u32 %v683_v4, %v682_v60  ;;  %vm686_vm13 = vcmp.lt.s32.totalorder %v4890_v61, 2  ;;  %vm688_vm14 = vcmp.lt.s32.totalorder %v4890_v61, 4 }
  0x74   : > { %v567_v31 = vadd.s32 %v566_v1, %v556_v40  ;;  %v537_v15 = vsel %vm531_vm6, %v534_v6, %v536_v20  ;;  %v589_v16 = vadd.s32 %v588_v9, %v578_v49  ;;  %v693_v17 = vsel %vm685_vm11, %v4918_v21, %v4920_v22 }
  0x75   : > { %v694_v18 = vsel %vm688_vm14, %v681_v3, 920167782  ;;  %v697_v24 = vsel %vm685_vm11, %v4920_v22, %v678_v0  ;;  %v703_v30 = vshrl.u32 %v4870_v44, 16  ;;  %v698_v25 = vsel %vm688_vm14, %v684_v13, 1326507024 }
  0x76   : > { %v4952_v19 = vadd.s32 %v567_v31, %v558_v46  ;;  %v695_v23 = vsel %vm687_vm12, %v678_v0, %v694_v18  ;;  %v590_v6 = vadd.s32 %v589_v16, %v580_v53  ;;  %v702_v27 = vand.u32 65535, %v4870_v44 }
  0x77   : > { %v696_v20 = vsel %vm686_vm13, %v693_v17, %v695_v23  ;;  %v591_v28 = vmul.u32 %v4858_v26, %v537_v15  ;;  %v699_v29 = vsel %vm687_vm12, %v681_v3, %v698_v25  ;;  %v669_v62 = vshrl.u32 %v4604_v33, %v4881_v55 }
  0x78   : > { %vm593_vm15 = vc.u32 %v4952_v19, %v4938_v5  ;;  %v726_v32 = vand.u32 65535, %v696_v20  ;;  %v594_v34 = vadd.s32 1, %v590_v6  ;;  %v700_v36 = vsel %vm686_vm13, %v697_v24, %v699_v29 }
  0x79   : > { %v727_v38 = vshrl.u32 %v696_v20, 16  ;;  %v704_v40 = vand.u32 65535, %v700_v36  ;;  %v705_v42 = vshrl.u32 %v700_v36, 16  ;;  %v690_v4 = vsel %vm688_vm14, %v678_v0, 2102212464 }
  0x7a   : > { %v730_v45 = vmul.u32 %v726_v32, %v703_v30  ;;  %v595_v46 = vsel %vm593_vm15, %v594_v34, %v590_v6  ;;  %v728_v47 = vmul.u32 %v726_v32, %v702_v27  ;;  %v689_v55 = vsel %vm685_vm11, %v669_v62, %v4918_v21 }
  0x7b   : > { %v729_v49 = vmul.u32 %v727_v38, %v702_v27  ;;  %v596_v51 = vadd.s32 %v595_v46, %v591_v28  ;;  %v706_v26 = vmul.u32 %v704_v40, %v702_v27  ;;  %v707_v52 = vmul.u32 %v705_v42, %v702_v27 }
  0x7c   : > { %v708_v53 = vmul.u32 %v704_v40, %v703_v30  ;;  %v731_v54 = vmul.u32 %v727_v38, %v703_v30  ;;  %v734_v43 = vshll.u32 %v730_v45, 16  ;;  %v709_v59 = vmul.u32 %v705_v42, %v703_v30 }
  0x7d   : > { %v732_v57 = vshll.u32 %v729_v49, 16  ;;  %v597_v58 = vadd.s32 536870912, %v596_v51  ;;  %v710_v48 = vshll.u32 %v707_v52, 16  ;;  %v711_v15 = vshrl.u32 %v707_v52, 16 }
  0x7e   : > { %v712_v60 = vshll.u32 %v708_v53, 16  ;;  %v733_v18 = vshrl.u32 %v729_v49, 16  ;;  %v691_v0 = vsel %vm687_vm12, %v4920_v22, %v690_v4  ;;  %v713_v30 = vshrl.u32 %v708_v53, 16 }
  0x7f   : > { %vm736_vm1 = vc.u32 %v728_v47, %v732_v57  ;;  %v738_v63 = vadd.s32 %v732_v57, %v728_v47  ;;  %v4974_v1 = vshrl.u32 %v597_v58, 30  ;;  %vm714_vm2 = vc.u32 %v706_v26, %v710_v48  ;;  %v492_v47 = vld [vmem:[#allocation6] sm:$0x1] }
  0x80   : > { %v716_v2 = vadd.s32 %v710_v48, %v706_v26  ;;  %v737_v3 = vsel %vm736_vm1, 1, %v4610_v56  ;;  %v715_v9 = vsel %vm714_vm2, 1, %v4610_v56  ;;  %v735_v20 = vshrl.u32 %v730_v45, 16 }
  0x81   : > { %v739_v31 = vadd.s32 %v737_v3, %v731_v54  ;;  %vm740_vm3 = vc.u32 %v738_v63, %v734_v43  ;;  %v599_v13 = vshll.u32 %v4974_v1, 30  ;;  %v717_v16 = vadd.s32 %v715_v9, %v709_v59 }
  0x82   : > { %vm718_vm4 = vc.u32 %v716_v2, %v712_v60  ;;  %v741_v23 = vsel %vm740_vm3, 1, %v4610_v56  ;;  %v742_v29 = vadd.s32 %v738_v63, %v734_v43  ;;  %v692_v21 = vsel %vm686_vm13, %v689_v55, %v691_v0 }
  0x83   : > { %v719_v17 = vsel %vm718_vm4, 1, %v4610_v56  ;;  %v600_v24 = vsub.s32 %v596_v51, %v599_v13  ;;  %v743_v25 = vadd.s32 %v741_v23, %v739_v31  ;;  %v746_v42 = vmul.u32 %v4870_v44, %v692_v21  ;;  %v837_v13 = vld [vmem:[#allocation8] sm:$0xff] }
  0x84   : > { %v721_v6 = vadd.s32 %v719_v17, %v717_v16  ;;  %v592_v45 = vadd.s32 %v4938_v5, %v4952_v19  ;;  %v4994_v54 = vadd.f32 1e-09, %v492_v47  ;;  %v622_v9 = vsub.s32 4, %v4974_v1  ;;  %894 = vmatpush.msra.mxu1 %v837_v13 }
  0x85   : > { %vm601_vm5 = vcmp.lt.s32.totalorder %v600_v24, 0  ;;  %v602_v27 = vsub.s32 0, %v600_v24  ;;  %v744_v32 = vadd.s32 %v743_v25, %v733_v18  ;;  %vm500_vm9 = vcmp.lt.s32.totalorder %v4845_v10, 0 }
  0x86   : > { %v722_v28 = vadd.s32 %v721_v6, %v711_v15  ;;  %4287 = vrcp.f32 %v4994_v54  ;;  %vm5006_vm10 = vcmp.le.f32.partialorder %v498_v12, 0.7853982  ;;  %v623_v18 = vsel %vm500_vm9, %v622_v9, %v4974_v1 }
  0x87   : > { %v603_v34 = vsel %vm601_vm5, %v602_v27, %v600_v24  ;;  %v745_v40 = vadd.s32 %v744_v32, %v735_v20  ;;  %v625_v12 = vsel %vm5006_vm10, 0, %v623_v18  ;;  %vm816_vm12 = vweird.f32 %v4994_v54 }
  0x88   : > { %v723_v36 = vadd.s32 %v722_v28, %v713_v30  ;;  %v604_v38 = vclz %v603_v34  ;;  %vm655_vm2 = vcmp.lt.s32.totalorder %v4848_v11, 0  ;;  %vm5039_vm4 = vcmp.le.f32.partialorder %v653_v14, 0.7853982 }
  0x89   : > { %v749_v46 = vadd.s32 1, %v745_v40 }
  0x8a   : > { %vm748_vm6 = vc.u32 %v723_v36, %v742_v29  ;;  %v4054_v22 = vadd.s32 4294967294, %v604_v38  ;;  %v747_v30 = vadd.s32 %v742_v29, %v723_v36  ;;  %v642_v38 = vadd.s32 3, %v625_v12 }
  0x8b   : > { %v750_v49 = vsel %vm748_vm6, %v749_v46, %v745_v40  ;;  %vm641_vm6 = vweird.f32 %v4845_v10 }
  0x8c   : > { %vm4055_vm7 = vcmp.lt.s32.totalorder %v4054_v22, 0  ;;  %v751_v26 = vadd.s32 %v750_v49, %v746_v42  ;;  %v5000_v3 = vpop.eup %4287 }
  0x8d   : > { %v607_v51 = vsel %vm4055_vm7, 0, %v4054_v22  ;;  %v812_v55 = vmul.f32 %v5000_v3, %v4994_v54  ;;  %vm817_vm13 = vweird.f32 %v5000_v3 }
  0x8e   : > { %v608_v61 = vsub.s32 32, %v607_v51  ;;  %v609_v52 = vshll.u32 %v600_v24, %v607_v51  ;;  %v612_v53 = vsub.s32 4294967266, %v607_v51  ;;  %v752_v57 = vadd.s32 536870912, %v751_v26  ;;  %vm5024_vm14 = vmor %vm816_vm12, %vm817_vm13 }
  0x8f   : > { %v813_v20 = vsub.f32 1.0, %v812_v55  ;;  %v643_v51 = vand.u32 3, %v642_v38  ;;  %v978_v55 = vld [vmem:[#allocation8 + $0x48] sm:$0xff] }
  0x90   : > { %v610_v43 = vshrl.u32 %v592_v45, %v608_v61  ;;  %v613_v58 = vadd.s32 127, %v612_v53  ;;  %v4996_v44 = vshrl.u32 %v752_v57, 30  ;;  %v820_v57 = vand.u32 2147483647, %v4994_v54  ;;  %999 = vmatpush.msrb.mxu0 %v978_v55 }
  0x91   : > { %v814_v22 = vmul.f32 %v5000_v3, %v813_v20  ;;  %vm648_vm15 = vcmp.eq.s32.totalorder %v643_v51, 2  ;;  %vm645_vm3 = vcmp.eq.s32.totalorder %v643_v51, 0  ;;  %vm644_vm5 = vcmp.lt.s32.totalorder %v643_v51, 2 }
  0x92   : > { %v611_v59 = vor.u32 %v610_v43, %v609_v52  ;;  %v614_v48 = vshll.u32 %v613_v58, 23  ;;  %v754_v5 = vshll.u32 %v4996_v44, 30  ;;  %vm5031_vm1 = vcmp.eq.f32.partialorder %v820_v57, 8.507059e+37 }
  0x93   : > { %v815_v53 = vadd.f32 %v5000_v3, %v814_v22  ;;  %v777_v9 = vsub.s32 4, %v4996_v44 }
  0x94   : > { %v615_v19 = vor.u32 4788187, %v614_v48  ;;  %v618_v60 = vcvt.s32.f32 %v611_v59  ;;  %v755_v62 = vsub.s32 %v751_v26, %v754_v5  ;;  %v822_v26 = vand.u32 2147483648, %v4994_v54 }
  0x96   : > { %v616_v63 = vand.u32 2147483647, %v615_v19  ;;  %vm756_vm8 = vcmp.lt.s32.totalorder %v755_v62, 0  ;;  %v757_v2 = vsub.s32 0, %v755_v62 }
  0x98   : > { %v619_v4 = vmul.f32 %v618_v60, %v616_v63  ;;  %v758_v31 = vsel %vm756_vm8, %v757_v2, %v755_v62  ;;  %v823_v60 = vor.u32 1.1754944e-38, %v822_v26  ;;  %v819_v63 = vsel %vm5024_vm14, %v5000_v3, %v815_v53 }
  0x99   : > { %v759_v16 = vclz %v758_v31  ;;  %v1050_v31 = vld [vmem:[#allocation8 + $0x68] sm:$0xff] }
  0x9a   : > { %v620_v15 = vxor.u32 2147483648, %v619_v4  ;;  %1071 = vmatpush.msrb.mxu2 %v1050_v31 }
  0x9b   : > { %v4057_v23 = vadd.s32 4294967294, %v759_v16 }
  0x9c   : > { %v621_v17 = vsel %vm500_vm9, %v620_v15, %v619_v4  ;;  %v941_v15 = vld [vmem:[#allocation8 + $0x30] sm:$0xff] }
  0x9d   : > { %v624_v24 = vsel %vm5006_vm10, %v4845_v10, %v621_v17  ;;  %vm4058_vm11 = vcmp.lt.s32.totalorder %v4057_v23, 0  ;;  %v1014_v17 = vld [vmem:[#allocation8 + $0x58] sm:$0xff]  ;;  %964 = vmatpush.msra.mxu3 %v941_v15  ;;  %vm796_vm10 = vweird.f32 %v4848_v11 }
  0x9e   : > { %v626_v0 = vmul.f32 %v624_v24, %v624_v24  ;;  %v762_v6 = vsel %vm4058_vm11, 0, %v4057_v23  ;;  %1035 = vmatpush.msrb.mxu1 %v1014_v17 }
  0x9f   : > { %v763_v28 = vsub.s32 32, %v762_v6  ;;  %v764_v21 = vshll.u32 %v755_v62, %v762_v6  ;;  %v767_v32 = vsub.s32 4294967266, %v762_v6 }
  0xa0   : > { %v627_v25 = vmul.f32 -0.001358992, %v626_v0  ;;  %v634_v27 = vmul.f32 -0.00019511016, %v626_v0 }
  0xa1   : > { %v765_v40 = vshrl.u32 %v747_v30, %v763_v28  ;;  %v768_v42 = vadd.s32 127, %v767_v32  ;;  %v778_v30 = vsel %vm655_vm2, %v777_v9, %v4996_v44  ;;  %v977_v44 = vld [vmem:[#allocation8 + $0x40] sm:$0xff] }
  0xa2   : > { %v628_v34 = vadd.f32 0.041655596, %v627_v25  ;;  %v635_v1 = vadd.f32 0.008332121, %v634_v27  ;;  %v780_v10 = vsel %vm5039_vm4, 0, %v778_v30  ;;  %1000 = vmatpush.msrb.mxu0 %v977_v44 }
  0xa3   : > { %v766_v36 = vor.u32 %v765_v40, %v764_v21  ;;  %v769_v47 = vshll.u32 %v768_v42, 23  ;;  %v1013_v42 = vld [vmem:[#allocation8 + $0x50] sm:$0xff]  ;;  %v797_v22 = vadd.s32 3, %v780_v10 }
  0xa4   : > { %v629_v46 = vmul.f32 %v628_v34, %v626_v0  ;;  %v636_v29 = vmul.f32 %v635_v1, %v626_v0  ;;  %v1049_v34 = vld [vmem:[#allocation8 + $0x60] sm:$0xff]  ;;  %1036 = vmatpush.msrb.mxu1 %v1013_v42  ;;  %v4275_v42 = vld [vmem:[%s6382_s4] ss:$0 sm:$0xff] }
  0xa5   : > { %v770_v61 = vor.u32 4788187, %v769_v47  ;;  %v773_v52 = vcvt.s32.f32 %v766_v36  ;;  %1072 = vmatpush.msrb.mxu2 %v1049_v34 }
  0xa6   : > { %v630_v45 = vadd.f32 -0.4999988, %v629_v46  ;;  %v637_v49 = vadd.f32 -0.16666654, %v636_v29 }
  0xa7   : > { %v771_v48 = vand.u32 2147483647, %v770_v61 }
  0xa8   : > { %v631_v43 = vmul.f32 %v630_v45, %v626_v0  ;;  %v638_v58 = vmul.f32 %v637_v49, %v626_v0  ;;  %v798_v49 = vand.u32 3, %v797_v22 }
  0xa9   : > { %v774_v62 = vmul.f32 %v773_v52, %v771_v48 }
  0xaa   : > { %v632_v5 = vadd.f32 1.0, %v631_v43  ;;  %v639_v19 = vadd.f32 1.0, %v638_v58  ;;  %vm803_vm7 = vcmp.eq.s32.totalorder %v798_v49, 2  ;;  %vm800_vm8 = vcmp.eq.s32.totalorder %v798_v49, 0 }
  0xab   : > { %v775_v3 = vxor.u32 2147483648, %v774_v62  ;;  %vm799_vm9 = vcmp.lt.s32.totalorder %v798_v49, 2 }
  0xac   : > { %v640_v54 = vmul.f32 %v639_v19, %v624_v24  ;;  %v649_v4 = vxor.u32 2147483648, %v632_v5  ;;  %v824_v24 = vsel %vm5031_vm1, %v823_v60, %v819_v63 }
  0xad   : > { %v776_v14 = vsel %vm655_vm2, %v775_v3, %v774_v62  ;;  %v827_v25 = vperm.slane %v824_v24, 0 }
  0xae   : > { %v646_v18 = vxor.u32 2147483648, %v640_v54  ;;  %v650_v23 = vsel %vm648_vm15, %v649_v4, %v640_v54  ;;  %v779_v12 = vsel %vm5039_vm4, %v4848_v11, %v776_v14 }
  0xaf   : > { %v781_v20 = vmul.f32 %v779_v12, %v779_v12 }
  0xb0   : > { %v647_v0 = vsel %vm645_vm3, %v632_v5, %v646_v18 }
  0xb1   : > { %v651_v6 = vsel %vm644_vm5, %v647_v0, %v650_v23  ;;  %v782_v28 = vmul.f32 -0.001358992, %v781_v20  ;;  %v789_v21 = vmul.f32 -0.00019511016, %v781_v20 }
  0xb2   : > { %v652_v27 = vsel %vm641_vm6, nan, %v651_v6 }
  0xb3   : > { %v808_v32 = vmul.f32 %v652_v27, %v652_v27  ;;  %v783_v1 = vadd.f32 0.041655596, %v782_v28  ;;  %v790_v38 = vadd.f32 0.008332121, %v789_v21 }
  0xb5   : > { %v829_v40 = vmul.f32 %v827_v25, %v808_v32  ;;  %v784_v46 = vmul.f32 %v783_v1, %v781_v20  ;;  %v791_v29 = vmul.f32 %v790_v38, %v781_v20  ;;  %v4274_v1 = vld [vmem:[#allocation9] ss:$0 sm:$0xff] }
  0xb7   : > { %v831_v36 = vadd.f32 %v829_v40, %v4837_v7  ;;  %v785_v47 = vadd.f32 -0.4999988, %v784_v46  ;;  %v792_v45 = vadd.f32 -0.16666654, %v791_v29 }
  0xb9   : > { %833 = vst.msk [vmem:[#allocation2 + $0x20] sm:$0xff] %vm479_vm0, %v831_v36  ;;  %v786_v51 = vmul.f32 %v785_v47, %v781_v20  ;;  %v793_v26 = vmul.f32 %v792_v45, %v781_v20 }
  0xbb   : > { %v787_v61 = vadd.f32 1.0, %v786_v51  ;;  %v794_v52 = vadd.f32 1.0, %v793_v26 }
  0xbd   : > { %v795_v53 = vmul.f32 %v794_v52, %v779_v12  ;;  %v804_v57 = vxor.u32 2147483648, %v787_v61 }
  0xbf   : > { %v801_v48 = vxor.u32 2147483648, %v795_v53  ;;  %v805_v5 = vsel %vm803_vm7, %v804_v57, %v795_v53 }
  0xc0   : > { %v839_v43 = vld [vmem:[#allocation2 + $0x1e] sm:$0xff] }
  0xc1   : > { %v902_v58 = vld [vmem:[#allocation2 + $0x1f] sm:$0xff]  ;;  %4059 = vmatmul.msk.f32.vlgmr.msra.gmra.mxu0 %vm479_vm0, %v839_v43  ;;  %v802_v19 = vsel %vm800_vm8, %v787_v61, %v801_v48 }
  0xc2   : > { %v835_v59 = vld [vmem:[#allocation2 + $0x1d] sm:$0xff]  ;;  %4063 = vmatmul.msk.f32.vlgmr.msra.gmra.mxu2 %vm479_vm0, %v902_v58  ;;  %v806_v60 = vsel %vm799_vm9, %v802_v19, %v805_v5 }
  0xc3   : > { %v938_v7 = vld [vmem:[#allocation2 + $0x20] sm:$0xff]  ;;  %4061 = vmatmul.msk.f32.vlgmr.msra.gmra.mxu1 %vm479_vm0, %v835_v59  ;;  %v807_v62 = vsel %vm796_vm10, nan, %v806_v60 }
  0xc4   : > { %4065 = vmatmul.msk.f32.vlgmr.msra.gmra.mxu3 %vm479_vm0, %v938_v7  ;;  %v809_v63 = vmul.f32 %v807_v62, %v807_v62 }
  0xc6   : > { %v830_v2 = vmul.f32 %v827_v25, %v809_v63 }
  0xc8   : > { %v832_v54 = vadd.f32 %v830_v2, %v4840_v8 }
  0xca   : > { %834 = vst.msk [vmem:[#allocation2 + $0x28] sm:$0xff] %vm479_vm0, %v832_v54 }
  0xd1   : > { %v840_v4 = vld [vmem:[#allocation2 + $0x26] sm:$0xff] }
  0xd2   : > { %v903_v9 = vld [vmem:[#allocation2 + $0x27] sm:$0xff]  ;;  %4060 = vmatmul.msk.f32.gmra.mxu0 %vm479_vm0, %v840_v4 }
  0xd3   : > { %v836_v31 = vld [vmem:[#allocation2 + $0x25] sm:$0xff]  ;;  %4064 = vmatmul.msk.f32.gmra.mxu2 %vm479_vm0, %v903_v9 }
  0xd4   : > { %v939_v11 = vld [vmem:[#allocation2 + $0x28] sm:$0xff]  ;;  %4062 = vmatmul.msk.f32.gmra.mxu1 %vm479_vm0, %v836_v31 }
  0xd5   : > { %4066 = vmatmul.msk.f32.gmra.mxu3 %vm479_vm0, %v939_v11  ;;  %v974_v13 = vld [vmem:[#allocation2 + $0x21] sm:$0xff]  ;;  %v975_v8 = vld [vmem:[#allocation2 + $0x29] sm:$0xff] }
  0xd6   : > { %v1046_v15 = vld [vmem:[#allocation2 + $0x23] sm:$0xff]  ;;  %v1047_v3 = vld [vmem:[#allocation2 + $0x2b] sm:$0xff] }
  0xd7   : > { %v1010_v16 = vld [vmem:[#allocation2 + $0x22] sm:$0xff]  ;;  %v1011_v55 = vld [vmem:[#allocation2 + $0x2a] sm:$0xff] }
  0xda   : > { %4067 = vmatmul.msk.f32.vlgmr.msrb.gmra.mxu0 %vm479_vm0, %v974_v13 }
  0xdb   : > { %4071 = vmatmul.msk.f32.vlgmr.msrb.gmra.mxu2 %vm479_vm0, %v1046_v15 }
  0xdc   : > { %4069 = vmatmul.msk.f32.vlgmr.msrb.gmra.mxu1 %vm479_vm0, %v1010_v16 }
  0xe2   : > { %4068 = vmatmul.msk.f32.gmra.mxu0 %vm479_vm0, %v975_v8 }
  0xe3   : > { %4072 = vmatmul.msk.f32.gmra.mxu2 %vm479_vm0, %v1047_v3 }
  0xe4   : > { %4070 = vmatmul.msk.f32.gmra.mxu1 %vm479_vm0, %v1011_v55 }
 0x13e   : > { %v867_v17 = vpop.f32.mrf.mxu0 }
 0x140   : > { %v896_v18 = vpop.f32.mrf.mxu1 }
 0x141   : > { %v897_v14 = vadd.f32 %v896_v18, %v867_v17 }
 0x145   : > { %v930_v23 = vpop.f32.mrf.mxu2 }
 0x146   : > { %v936_v12 = vadd.f32 %v930_v23, %v897_v14 }
 0x147   : > { %v966_v30 = vpop.f32.mrf.mxu3 }
 0x148   : > { %v972_v20 = vadd.f32 %v966_v30, %v936_v12 }
 0x14f   : > { %v870_v24 = vpop.f32.mrf.mxu0 }
 0x151   : > { %v899_v0 = vpop.f32.mrf.mxu1 }
 0x152   : > { %v900_v27 = vadd.f32 %v899_v0, %v870_v24 }
 0x156   : > { %v933_v6 = vpop.f32.mrf.mxu2 }
 0x157   : > { %v1002_v25 = vpop.f32.mrf.mxu0  ;;  %v937_v21 = vadd.f32 %v933_v6, %v900_v27 }
 0x158   : > { %v1008_v10 = vadd.f32 %v1002_v25, %v972_v20  ;;  %v969_v32 = vpop.f32.mrf.mxu3 }
 0x159   : > { %v1038_v28 = vpop.f32.mrf.mxu1  ;;  %v973_v40 = vadd.f32 %v969_v32, %v937_v21 }
 0x15a   : > { %v1044_v34 = vadd.f32 %v1038_v28, %v1008_v10 }
 0x15e   : > { %v1074_v38 = vpop.f32.mrf.mxu2 }
 0x15f   : > { %v1080_v44 = vadd.f32 %v1074_v38, %v1044_v34  ;;  %v1005_v22 = vpop.f32.mrf.mxu0 }
 0x160   : > { %v1009_v29 = vadd.f32 %v1005_v22, %v973_v40 }
 0x161   : > { %v5080_v46 = vadd.f32 %v4274_v1, %v1080_v44  ;;  %v1041_v36 = vpop.f32.mrf.mxu1 }
 0x162   : > { %v1045_v51 = vadd.f32 %v1041_v36, %v1009_v29 }
 0x163   : > { %v5083_v47 = vmul.f32 %v4275_v42, %v5080_v46 }
 0x165   : > { %v1094_v45 = vand.u32 2147483647, %v5083_v47  ;;  %v1097_v49 = vand.u32 2139095040, %v5083_v47 }
 0x166   : > { %v1077_v26 = vpop.f32.mrf.mxu2 }
 0x167   : > { %v1098_v61 = vshrl.u32 %v1097_v49, 23  ;;  %v1101_v52 = vand.u32 8388607, %v1094_v45  ;;  %v1081_v53 = vadd.f32 %v1077_v26, %v1045_v51 }
 0x169   : > { %v4073_v57 = vadd.s32 4294967169, %v1098_v61  ;;  %v1102_v43 = vor.u32 8388608, %v1101_v52  ;;  %v5089_v58 = vadd.f32 %v4274_v1, %v1081_v53 }
 0x16b   : > { %v1104_v59 = vadd.s32 1, %v4073_v57  ;;  %v5092_v48 = vmul.f32 %v4275_v42, %v5089_v58  ;;  %v5094_v5 = vshll.u32 %v1102_v43, 8 }
 0x16d   : > { %vm1105_vm11 = vcmp.gt.s32.totalorder %v1104_v59, 0  ;;  %v1249_v19 = vand.u32 2147483647, %v5092_v48  ;;  %v1252_v60 = vand.u32 2139095040, %v5092_v48  ;;  %v1143_v2 = vand.u32 65535, %v5094_v5 }
 0x16e   : > { %v1106_v7 = vsel %vm1105_vm11, %v1104_v59, 0  ;;  %v1144_v54 = vshrl.u32 %v5094_v5, 16 }
 0x16f   : > { %v1108_v62 = vand.u32 31, %v1106_v7  ;;  %v1253_v4 = vshrl.u32 %v1252_v60, 23  ;;  %v1107_v9 = vshrl.u32 %v1106_v7, 5  ;;  %v5104_v13 = vand.u32 8388607, %v1249_v19 }
 0x171   : > { %v1109_v63 = vsub.s32 32, %v1108_v62  ;;  %v1111_v31 = vshll.u32 %v4604_v33, %v1108_v62  ;;  %v1114_v11 = vshll.u32 %v4605_v35, %v1108_v62  ;;  %v1117_v8 = vshll.u32 %v4606_v37, %v1108_v62 }
 0x172   : > { %v1120_v55 = vshll.u32 %v4607_v39, %v1108_v62  ;;  %v1123_v18 = vshll.u32 %v4608_v41, %v1108_v62  ;;  %v4076_v30 = vadd.s32 4294967169, %v1253_v4  ;;  %vm1126_vm12 = vcmp.lt.s32.totalorder %v1107_v9, 1 }
 0x173   : > { %v1112_v15 = vshrl.u32 %v4605_v35, %v1109_v63  ;;  %v1115_v16 = vshrl.u32 %v4606_v37, %v1109_v63  ;;  %v1118_v3 = vshrl.u32 %v4607_v39, %v1109_v63  ;;  %v1121_v17 = vshrl.u32 %v4608_v41, %v1109_v63 }
 0x174   : > { %v1124_v23 = vshrl.u32 %v4609_v50, %v1109_v63  ;;  %vm1129_vm13 = vcmp.lt.s32.totalorder %v1107_v9, 4  ;;  %v1110_v20 = vshrl.u32 %v4604_v33, %v1109_v63  ;;  %vm1128_vm14 = vcmp.lt.s32.totalorder %v1107_v9, 3 }
 0x175   : > { %v1113_v24 = vor.u32 %v1112_v15, %v1111_v31  ;;  %v1116_v14 = vor.u32 %v1115_v16, %v1114_v11  ;;  %v1119_v0 = vor.u32 %v1118_v3, %v1117_v8  ;;  %v1122_v12 = vor.u32 %v1121_v17, %v1120_v55 }
 0x176   : > { %v1125_v6 = vor.u32 %v1124_v23, %v1123_v18  ;;  %v1259_v32 = vadd.s32 1, %v4076_v30  ;;  %vm1127_vm15 = vcmp.lt.s32.totalorder %v1107_v9, 2  ;;  %v1257_v51 = vor.u32 8388608, %v5104_v13 }
 0x177   : > { %v1131_v25 = vsel %vm1129_vm13, %v1119_v0, 2102212464  ;;  %v1134_v27 = vsel %vm1126_vm12, %v1113_v24, %v1116_v14  ;;  %v1138_v10 = vsel %vm1126_vm12, %v1116_v14, %v1119_v0  ;;  %v1135_v28 = vsel %vm1129_vm13, %v1122_v12, 920167782 }
 0x178   : > { %v1139_v21 = vsel %vm1129_vm13, %v1125_v6, 1326507024  ;;  %v1130_v34 = vsel %vm1126_vm12, %v1110_v20, %v1113_v24  ;;  %v1136_v1 = vsel %vm1128_vm14, %v1119_v0, %v1135_v28  ;;  %v1132_v40 = vsel %vm1128_vm14, %v1116_v14, %v1131_v25 }
 0x179   : > { %v1140_v38 = vsel %vm1128_vm14, %v1122_v12, %v1139_v21  ;;  %v1137_v44 = vsel %vm1127_vm15, %v1134_v27, %v1136_v1  ;;  %vm1260_vm1 = vcmp.gt.s32.totalorder %v1259_v32, 0  ;;  %v5116_v26 = vsel %vm1127_vm15, %v1130_v34, %v1132_v40 }
 0x17a   : > { %v1141_v42 = vsel %vm1127_vm15, %v1138_v10, %v1140_v38  ;;  %v1167_v36 = vand.u32 65535, %v1137_v44  ;;  %v1168_v49 = vshrl.u32 %v1137_v44, 16  ;;  %v1261_v53 = vsel %vm1260_vm1, %v1259_v32, 0 }
 0x17b   : > { %v1145_v22 = vand.u32 65535, %v1141_v42  ;;  %v1146_v29 = vshrl.u32 %v1141_v42, 16  ;;  %v1263_v8 = vand.u32 31, %v1261_v53  ;;  %v5123_v14 = vshrl.u32 %v1261_v53, 5 }
 0x17c   : > { %v1170_v59 = vmul.u32 %v1168_v49, %v1143_v2  ;;  %v1171_v7 = vmul.u32 %v1167_v36, %v1144_v54  ;;  %v1169_v63 = vmul.u32 %v1167_v36, %v1143_v2  ;;  %v1172_v4 = vmul.u32 %v1168_v49, %v1144_v54 }
 0x17d   : > { %v1148_v61 = vmul.u32 %v1146_v29, %v1143_v2  ;;  %v1149_v52 = vmul.u32 %v1145_v22, %v1144_v54  ;;  %v1147_v57 = vmul.u32 %v1145_v22, %v1143_v2  ;;  %v1150_v43 = vmul.u32 %v1146_v29, %v1144_v54 }
 0x17e   : > { %v1173_v11 = vshll.u32 %v1170_v59, 16  ;;  %v1174_v15 = vshrl.u32 %v1170_v59, 16  ;;  %v1175_v13 = vshll.u32 %v1171_v7, 16  ;;  %v1176_v55 = vshrl.u32 %v1171_v7, 16 }
 0x17f   : > { %v1151_v60 = vshll.u32 %v1148_v61, 16  ;;  %v1152_v62 = vshrl.u32 %v1148_v61, 16  ;;  %v1153_v9 = vshll.u32 %v1149_v52, 16  ;;  %v1154_v31 = vshrl.u32 %v1149_v52, 16 }
 0x180   : > { %vm1177_vm3 = vc.u32 %v1169_v63, %v1173_v11  ;;  %v1179_v17 = vadd.s32 %v1173_v11, %v1169_v63  ;;  %v5120_v24 = vsub.s32 32, %v1263_v8  ;;  %v1266_v6 = vshll.u32 %v4604_v33, %v1263_v8 }
 0x181   : > { %vm1155_vm2 = vc.u32 %v1147_v57, %v1151_v60  ;;  %v1157_v16 = vadd.s32 %v1151_v60, %v1147_v57  ;;  %v1178_v23 = vsel %vm1177_vm3, 1, %v4610_v56  ;;  %v1269_v27 = vshll.u32 %v4605_v35, %v1263_v8 }
 0x182   : > { %v1156_v3 = vsel %vm1155_vm2, 1, %v4610_v56  ;;  %v1180_v54 = vadd.s32 %v1178_v23, %v1172_v4  ;;  %vm1181_vm5 = vc.u32 %v1179_v17, %v1175_v13  ;;  %v5126_v12 = vadd.s32 %v1179_v17, %v1175_v13 }
 0x183   : > { %v1158_v18 = vadd.s32 %v1156_v3, %v1150_v43  ;;  %vm1159_vm4 = vc.u32 %v1157_v16, %v1153_v9  ;;  %v1182_v30 = vsel %vm1181_vm5, 1, %v4610_v56  ;;  %v1267_v25 = vshrl.u32 %v4605_v35, %v5120_v24 }
 0x184   : > { %v1160_v2 = vsel %vm1159_vm4, 1, %v4610_v56  ;;  %v1184_v20 = vadd.s32 %v1182_v30, %v1180_v54  ;;  %v1270_v10 = vshrl.u32 %v4606_v37, %v5120_v24  ;;  %v1272_v21 = vshll.u32 %v4606_v37, %v1263_v8 }
 0x185   : > { %v1162_v0 = vadd.s32 %v1160_v2, %v1158_v18  ;;  %v1273_v32 = vshrl.u32 %v4607_v39, %v5120_v24  ;;  %v1275_v34 = vshll.u32 %v4607_v39, %v1263_v8  ;;  %v5138_v38 = vor.u32 %v1267_v25, %v1266_v6 }
 0x186   : > { %v1185_v1 = vadd.s32 %v1184_v20, %v1174_v15  ;;  %v5140_v40 = vor.u32 %v1270_v10, %v1269_v27  ;;  %v1276_v44 = vshrl.u32 %v4608_v41, %v5120_v24  ;;  %v1278_v29 = vshll.u32 %v4608_v41, %v1263_v8 }
 0x187   : > { %v1163_v28 = vadd.s32 %v1162_v0, %v1152_v62  ;;  %v5146_v22 = vor.u32 %v1273_v32, %v1272_v21  ;;  %v1279_v36 = vshrl.u32 %v4609_v50, %v5120_v24  ;;  %vm1281_vm7 = vcmp.lt.s32.totalorder %v5123_v14, 1 }
 0x188   : > { %v1186_v49 = vadd.s32 %v1185_v1, %v1176_v55  ;;  %v1277_v61 = vor.u32 %v1276_v44, %v1275_v34  ;;  %v5154_v53 = vshll.u32 %v1257_v51, 8  ;;  %v1187_v57 = vmul.u32 %v5094_v5, %v5116_v26 }
 0x189   : > { %v5144_v42 = vadd.s32 %v1163_v28, %v1154_v31  ;;  %v1280_v52 = vor.u32 %v1279_v36, %v1278_v29  ;;  %vm1284_vm8 = vcmp.lt.s32.totalorder %v5123_v14, 4  ;;  %v1289_v59 = vsel %vm1281_vm7, %v5138_v38, %v5140_v40 }
 0x18a   : > { %v1190_v43 = vadd.s32 1, %v1186_v49  ;;  %vm1283_vm9 = vcmp.lt.s32.totalorder %v5123_v14, 3  ;;  %v1290_v7 = vsel %vm1284_vm8, %v1277_v61, 920167782  ;;  %v1293_v51 = vsel %vm1281_vm7, %v5140_v40, %v5146_v22 }
 0x18b   : > { %vm1189_vm6 = vc.u32 %v5144_v42, %v5126_v12  ;;  %v1294_v5 = vsel %vm1284_vm8, %v1280_v52, 1326507024  ;;  %vm1282_vm10 = vcmp.lt.s32.totalorder %v5123_v14, 2  ;;  %v1291_v60 = vsel %vm1283_vm9, %v5146_v22, %v1290_v7  ;;  %v1430_v14 = vld [vmem:[#allocation11 + $0x8] sm:$0xff] }
 0x18c   : > { %v1191_v26 = vsel %vm1189_vm6, %v1190_v43, %v1186_v49  ;;  %v1295_v62 = vsel %vm1283_vm9, %v1277_v61, %v1294_v5  ;;  %v1292_v4 = vsel %vm1282_vm10, %v1289_v59, %v1291_v60  ;;  %v1298_v31 = vand.u32 65535, %v5154_v53  ;;  %1455 = vmatpush.msrb.mxu3 %v1430_v14 }
 0x18d   : > { %v1192_v63 = vadd.s32 %v1191_v26, %v1187_v57  ;;  %v1296_v9 = vsel %vm1282_vm10, %v1293_v51, %v1295_v62  ;;  %v1299_v11 = vshrl.u32 %v5154_v53, 16  ;;  %v1323_v13 = vshrl.u32 %v1292_v4, 16 }
 0x18e   : > { %v1300_v15 = vand.u32 65535, %v1296_v9  ;;  %v1301_v16 = vshrl.u32 %v1296_v9, 16  ;;  %v1322_v3 = vand.u32 65535, %v1292_v4  ;;  %v1286_v51 = vsel %vm1284_vm8, %v5146_v22, 2102212464 }
 0x18f   : > { %v1193_v8 = vadd.s32 536870912, %v1192_v63  ;;  %v1325_v23 = vmul.u32 %v1323_v13, %v1298_v31  ;;  %v1327_v34 = vmul.u32 %v1323_v13, %v1299_v11  ;;  %v1265_v60 = vshrl.u32 %v4604_v33, %v5120_v24 }
 0x190   : > { %v1303_v55 = vmul.u32 %v1301_v16, %v1298_v31  ;;  %v1304_v17 = vmul.u32 %v1300_v15, %v1299_v11  ;;  %v1302_v2 = vmul.u32 %v1300_v15, %v1298_v31  ;;  %v1305_v30 = vmul.u32 %v1301_v16, %v1299_v11 }
 0x191   : > { %v5184_v18 = vshrl.u32 %v1193_v8, 30  ;;  %v1326_v6 = vmul.u32 %v1322_v3, %v1299_v11  ;;  %v1328_v27 = vshll.u32 %v1325_v23, 16  ;;  %v1324_v32 = vmul.u32 %v1322_v3, %v1298_v31 }
 0x192   : > { %v1306_v54 = vshll.u32 %v1303_v55, 16  ;;  %v1308_v20 = vshll.u32 %v1304_v17, 16  ;;  %v1307_v44 = vshrl.u32 %v1303_v55, 16  ;;  %v1309_v62 = vshrl.u32 %v1304_v17, 16 }
 0x193   : > { %v1195_v0 = vshll.u32 %v5184_v18, 30  ;;  %v1330_v49 = vshll.u32 %v1326_v6, 16  ;;  %vm1332_vm14 = vc.u32 %v1324_v32, %v1328_v27  ;;  %v1334_v61 = vadd.s32 %v1328_v27, %v1324_v32  ;;  %v1429_v32 = vld [vmem:[#allocation11] sm:$0xff] }
 0x194   : > { %vm1310_vm11 = vc.u32 %v1302_v2, %v1306_v54  ;;  %v1312_v25 = vadd.s32 %v1306_v54, %v1302_v2  ;;  %v1333_v57 = vsel %vm1332_vm14, 1, %v4610_v56  ;;  %v1329_v4 = vshrl.u32 %v1325_v23, 16  ;;  %1456 = vmatpush.msrb.mxu3 %v1429_v32 }
 0x195   : > { %v1196_v10 = vsub.s32 %v1192_v63, %v1195_v0  ;;  %v1311_v28 = vsel %vm1310_vm11, 1, %v4610_v56  ;;  %v1335_v7 = vadd.s32 %v1333_v57, %v1327_v34  ;;  %vm1336_vm15 = vc.u32 %v1334_v61, %v1330_v49  ;;  %v1088_v63 = vld [vmem:[%s6382_s4] sm:$0x1] }
 0x196   : > { %v1313_v21 = vadd.s32 %v1311_v28, %v1305_v30  ;;  %vm1314_vm12 = vc.u32 %v1312_v25, %v1308_v20  ;;  %v1337_v5 = vsel %vm1336_vm15, 1, %v4610_v56  ;;  %v1285_v31 = vsel %vm1281_vm7, %v1265_v60, %v5138_v38 }
 0x197   : > { %vm1197_vm13 = vcmp.lt.s32.totalorder %v1196_v10, 0  ;;  %v1198_v1 = vsub.s32 0, %v1196_v10  ;;  %v1315_v29 = vsel %vm1314_vm12, 1, %v4610_v56  ;;  %v1339_v9 = vadd.s32 %v1337_v5, %v1335_v7 }
 0x198   : > { %v1317_v36 = vadd.s32 %v1315_v29, %v1313_v21  ;;  %v1287_v22 = vsel %vm1283_vm9, %v5140_v40, %v1286_v51  ;;  %v1188_v24 = vadd.s32 %v5126_v12, %v5144_v42  ;;  %v1331_v16 = vshrl.u32 %v1326_v6, 16 }
 0x199   : > { %v1199_v52 = vsel %vm1197_vm13, %v1198_v1, %v1196_v10  ;;  %v1340_v13 = vadd.s32 %v1339_v9, %v1329_v4  ;;  %v5207_v55 = vadd.f32 1e-09, %v1088_v63  ;;  %v1338_v17 = vadd.s32 %v1334_v61, %v1330_v49 }
 0x19a   : > { %v1200_v43 = vclz %v1199_v52  ;;  %v1318_v59 = vadd.s32 %v1317_v36, %v1307_v44  ;;  %v1288_v23 = vsel %vm1282_vm10, %v1285_v31, %v1287_v22  ;;  %v1218_v29 = vsub.s32 4, %v5184_v18 }
 0x19b   : > { %v1341_v38 = vadd.s32 %v1340_v13, %v1331_v16  ;;  %4289 = vrcp.f32 %v5207_v55  ;;  %v1342_v12 = vmul.u32 %v5154_v53, %v1288_v23  ;;  %vm1096_vm3 = vcmp.lt.s32.totalorder %v5083_v47, 0 }
 0x19c   : > { %v4074_v26 = vadd.s32 4294967294, %v1200_v43  ;;  %v1319_v11 = vadd.s32 %v1318_v59, %v1309_v62  ;;  %vm5224_vm4 = vcmp.le.f32.partialorder %v1094_v45, 0.7853982  ;;  %v1219_v43 = vsel %vm1096_vm3, %v1218_v29, %v5184_v18 }
 0x19d   : > { %v1345_v40 = vadd.s32 1, %v1341_v38  ;;  %v1221_v45 = vsel %vm5224_vm4, 0, %v1219_v43  ;;  %vm1412_vm6 = vweird.f32 %v5207_v55  ;;  %vm1237_vm14 = vweird.f32 %v5083_v47 }
 0x19e   : > { %vm4075_vm1 = vcmp.lt.s32.totalorder %v4074_v26, 0  ;;  %vm1344_vm2 = vc.u32 %v1319_v11, %v1338_v17  ;;  %v1343_v18 = vadd.s32 %v1338_v17, %v1319_v11  ;;  %vm1251_vm15 = vcmp.lt.s32.totalorder %v5092_v48, 0 }
 0x19f   : > { %v1203_v15 = vsel %vm4075_vm1, 0, %v4074_v26  ;;  %v1346_v42 = vsel %vm1344_vm2, %v1345_v40, %v1341_v38  ;;  %v1416_v38 = vand.u32 2147483647, %v5207_v55  ;;  %vm5251_vm1 = vcmp.le.f32.partialorder %v1249_v19, 0.7853982 }
 0x1a0   : > { %v1204_v8 = vsub.s32 32, %v1203_v15  ;;  %v1208_v3 = vsub.s32 4294967266, %v1203_v15  ;;  %v1205_v2 = vshll.u32 %v1196_v10, %v1203_v15  ;;  %v1347_v25 = vadd.s32 %v1346_v42, %v1342_v12 }
 0x1a1   : > { %v5213_v34 = vpop.eup %4289  ;;  %v1238_v15 = vadd.s32 3, %v1221_v45  ;;  %vm1417_vm10 = vcmp.eq.f32.partialorder %v1416_v38, 8.507059e+37 }
 0x1a2   : > { %v1206_v54 = vshrl.u32 %v1188_v24, %v1204_v8  ;;  %v1209_v0 = vadd.s32 127, %v1208_v3  ;;  %v1348_v21 = vadd.s32 536870912, %v1347_v25  ;;  %v1408_v36 = vmul.f32 %v5213_v34, %v5207_v55 }
 0x1a3   : > { %vm1413_vm7 = vweird.f32 %v5213_v34  ;;  %v1418_v8 = vand.u32 2147483648, %v5207_v55 }
 0x1a4   : > { %v1207_v30 = vor.u32 %v1206_v54, %v1205_v2  ;;  %v1210_v20 = vshll.u32 %v1209_v0, 23  ;;  %v5215_v1 = vshrl.u32 %v1348_v21, 30  ;;  %v1409_v51 = vsub.f32 1.0, %v1408_v36  ;;  %vm5240_vm9 = vmor %vm1412_vm6, %vm1413_vm7 }
 0x1a6   : > { %v1211_v6 = vor.u32 4788187, %v1210_v20  ;;  %v1214_v28 = vcvt.s32.f32 %v1207_v30  ;;  %v1350_v53 = vshll.u32 %v5215_v1, 30  ;;  %v1410_v9 = vmul.f32 %v5213_v34, %v1409_v51 }
 0x1a8   : > { %v1212_v27 = vand.u32 2147483647, %v1211_v6  ;;  %v1351_v52 = vsub.s32 %v1347_v25, %v1350_v53  ;;  %v1411_v23 = vadd.f32 %v5213_v34, %v1410_v9  ;;  %v1239_v6 = vand.u32 3, %v1238_v15 }
 0x1a9   : > { %v1419_v25 = vor.u32 1.1754944e-38, %v1418_v8 }
 0x1aa   : > { %v1215_v10 = vmul.f32 %v1214_v28, %v1212_v27  ;;  %vm1352_vm5 = vcmp.lt.s32.totalorder %v1351_v52, 0  ;;  %v1353_v7 = vsub.s32 0, %v1351_v52  ;;  %v1415_v27 = vsel %vm5240_vm9, %v5213_v34, %v1411_v23 }
 0x1ab   : > { %vm1241_vm11 = vcmp.eq.s32.totalorder %v1239_v6, 0  ;;  %vm1244_vm12 = vcmp.eq.s32.totalorder %v1239_v6, 2  ;;  %vm1240_vm13 = vcmp.lt.s32.totalorder %v1239_v6, 2 }
 0x1ac   : > { %v1216_v44 = vxor.u32 2147483648, %v1215_v10  ;;  %v1354_v60 = vsel %vm1352_vm5, %v1353_v7, %v1351_v52  ;;  %vm1392_vm5 = vweird.f32 %v5092_v48 }
 0x1ad   : > { %v1355_v62 = vclz %v1354_v60 }
 0x1ae   : > { %v1217_v61 = vsel %vm1096_vm3, %v1216_v44, %v1215_v10  ;;  %v1420_v44 = vsel %vm1417_vm10, %v1419_v25, %v1415_v27  ;;  %v4277_v25 = vld [vmem:[#allocation6 + $0x1] ss:$0 sm:$0xff] }
 0x1af   : > { %v1220_v57 = vsel %vm5224_vm4, %v5083_v47, %v1217_v61  ;;  %v4077_v31 = vadd.s32 4294967294, %v1355_v62  ;;  %v4301_v27 = vld [vmem:[%s4810_s17] sm:$0xff] }
 0x1b0   : > { %v1222_v59 = vmul.f32 %v1220_v57, %v1220_v57 }
 0x1b1   : > { %vm4078_vm8 = vcmp.lt.s32.totalorder %v4077_v31, 0 }
 0x1b2   : > { %v1223_v5 = vmul.f32 -0.001358992, %v1222_v59  ;;  %v1230_v26 = vmul.f32 -0.00019511016, %v1222_v59  ;;  %v1358_v3 = vsel %vm4078_vm8, 0, %v4077_v31 }
 0x1b3   : > { %v1359_v2 = vsub.s32 32, %v1358_v3  ;;  %v1363_v54 = vsub.s32 4294967266, %v1358_v3  ;;  %v1360_v20 = vshll.u32 %v1351_v52, %v1358_v3  ;;  %v1423_v52 = vperm.slane %v1420_v44, 0 }
 0x1b4   : > { %v1224_v63 = vadd.f32 0.041655596, %v1223_v5  ;;  %v1231_v4 = vadd.f32 0.008332121, %v1230_v26  ;;  %v1373_v26 = vsub.s32 4, %v5215_v1 }
 0x1b5   : > { %v1361_v11 = vshrl.u32 %v1343_v18, %v1359_v2  ;;  %v1364_v17 = vadd.s32 127, %v1363_v54 }
 0x1b6   : > { %v1225_v22 = vmul.f32 %v1224_v63, %v1222_v59  ;;  %v1232_v24 = vmul.f32 %v1231_v4, %v1222_v59  ;;  %v1374_v4 = vsel %vm1251_vm15, %v1373_v26, %v5215_v1 }
 0x1b7   : > { %v1362_v55 = vor.u32 %v1361_v11, %v1360_v20  ;;  %v1365_v28 = vshll.u32 %v1364_v17, 23  ;;  %v1376_v31 = vsel %vm5251_vm1, 0, %v1374_v4 }
 0x1b8   : > { %v1226_v16 = vadd.f32 -0.4999988, %v1225_v22  ;;  %v1233_v13 = vadd.f32 -0.16666654, %v1232_v24 }
 0x1b9   : > { %v1366_v32 = vor.u32 4788187, %v1365_v28  ;;  %v1369_v53 = vcvt.s32.f32 %v1362_v55 }
 0x1ba   : > { %v1227_v0 = vmul.f32 %v1226_v16, %v1222_v59  ;;  %v1234_v40 = vmul.f32 %v1233_v13, %v1222_v59  ;;  %v1393_v16 = vadd.s32 3, %v1376_v31 }
 0x1bb   : > { %v1367_v29 = vand.u32 2147483647, %v1366_v32 }
 0x1bc   : > { %v1228_v12 = vadd.f32 1.0, %v1227_v0  ;;  %v1235_v42 = vadd.f32 1.0, %v1234_v40  ;;  %v1394_v23 = vand.u32 3, %v1393_v16 }
 0x1bd   : > { %v1370_v34 = vmul.f32 %v1369_v53, %v1367_v29 }
 0x1be   : > { %v1236_v21 = vmul.f32 %v1235_v42, %v1220_v57  ;;  %v1245_v14 = vxor.u32 2147483648, %v1228_v12  ;;  %vm1396_vm2 = vcmp.eq.s32.totalorder %v1394_v23, 0  ;;  %vm1399_vm3 = vcmp.eq.s32.totalorder %v1394_v23, 2 }
 0x1bf   : > { %v1371_v7 = vxor.u32 2147483648, %v1370_v34  ;;  %vm1395_vm4 = vcmp.lt.s32.totalorder %v1394_v23, 2  ;;  %v4302_v23 = vld [vmem:[%s4810_s17 + $0x8] sm:$0xff] }
 0x1c0   : > { %v1242_v10 = vxor.u32 2147483648, %v1236_v21  ;;  %v1246_v49 = vsel %vm1244_vm12, %v1245_v14, %v1236_v21 }
 0x1c1   : > { %v1372_v5 = vsel %vm1251_vm15, %v1371_v7, %v1370_v34 }
 0x1c2   : > { %v1243_v36 = vsel %vm1241_vm11, %v1228_v12, %v1242_v10  ;;  %v1375_v47 = vsel %vm5251_vm1, %v5092_v48, %v1372_v5  ;;  %v4276_v12 = vld [vmem:[#allocation12] ss:$0 sm:$0xff] }
 0x1c3   : > { %v1247_v61 = vsel %vm1240_vm13, %v1243_v36, %v1246_v49  ;;  %v1377_v45 = vmul.f32 %v1375_v47, %v1375_v47 }
 0x1c4   : > { %v1248_v43 = vsel %vm1237_vm14, nan, %v1247_v61 }
 0x1c5   : > { %v1404_v59 = vmul.f32 %v1248_v43, %v1248_v43  ;;  %v1378_v62 = vmul.f32 -0.001358992, %v1377_v45  ;;  %v1385_v63 = vmul.f32 -0.00019511016, %v1377_v45 }
 0x1c7   : > { %v1425_v57 = vmul.f32 %v1423_v52, %v1404_v59  ;;  %v1379_v19 = vadd.f32 0.041655596, %v1378_v62  ;;  %v1386_v9 = vadd.f32 0.008332121, %v1385_v63 }
 0x1c9   : > { %v1427_v60 = vadd.f32 %v1425_v57, %v5080_v46  ;;  %v1380_v22 = vmul.f32 %v1379_v19, %v1377_v45  ;;  %v1387_v24 = vmul.f32 %v1386_v9, %v1377_v45 }
 0x1cb   : > { %4079 = vmatmul.msk.f32.vlgmr.msrb.gmra.mxu3 %vm479_vm0, %v1427_v60  ;;  %v1381_v15 = vadd.f32 -0.4999988, %v1380_v22  ;;  %v1388_v18 = vadd.f32 -0.16666654, %v1387_v24 }
 0x1cd   : > { %v1382_v13 = vmul.f32 %v1381_v15, %v1377_v45  ;;  %v1389_v8 = vmul.f32 %v1388_v18, %v1377_v45 }
 0x1cf   : > { %v1383_v46 = vadd.f32 1.0, %v1382_v13  ;;  %v1390_v3 = vadd.f32 1.0, %v1389_v8 }
 0x1d1   : > { %v1391_v38 = vmul.f32 %v1390_v3, %v1375_v47  ;;  %v1400_v2 = vxor.u32 2147483648, %v1383_v46 }
 0x1d3   : > { %v1397_v54 = vxor.u32 2147483648, %v1391_v38  ;;  %v1401_v0 = vsel %vm1399_vm3, %v1400_v2, %v1391_v38 }
 0x1d5   : > { %v1398_v1 = vsel %vm1396_vm2, %v1383_v46, %v1397_v54 }
 0x1d6   : > { %v1402_v40 = vsel %vm1395_vm4, %v1398_v1, %v1401_v0 }
 0x1d7   : > { %v1403_v30 = vsel %vm1392_vm5, nan, %v1402_v40 }
 0x1d8   : > { %v1405_v20 = vmul.f32 %v1403_v30, %v1403_v30 }
 0x1da   : > { %v1426_v11 = vmul.f32 %v1423_v52, %v1405_v20 }
 0x1dc   : > { %v1428_v17 = vadd.f32 %v1426_v11, %v5089_v58 }
 0x1de   : > { %4080 = vmatmul.msk.f32.gmra.mxu3 %vm479_vm0, %v1428_v17 }
 0x24e   : > { %v1458_v42 = vpop.f32.mrf.mxu3 }
 0x24f   : > { %v1459_v6 = vadd.f32 %v4276_v12, %v1458_v42 }
 0x251   : > { %v5268_v55 = vadd.f32 %v4301_v27, %v1459_v6 }
 0x253   : > { %v5271_v28 = vmul.f32 %v4277_v25, %v5268_v55 }
 0x255   : > { %v1476_v48 = vand.u32 2139095040, %v5271_v28  ;;  %v1473_v14 = vand.u32 2147483647, %v5271_v28 }
 0x257   : > { %v1477_v21 = vshrl.u32 %v1476_v48, 23  ;;  %v1480_v58 = vand.u32 8388607, %v1473_v14 }
 0x259   : > { %v4081_v32 = vadd.s32 4294967169, %v1477_v21  ;;  %v1481_v53 = vor.u32 8388608, %v1480_v58 }
 0x25b   : > { %v1483_v10 = vadd.s32 1, %v4081_v32  ;;  %v5296_v62 = vshll.u32 %v1481_v53, 8 }
 0x25d   : > { %vm1484_vm6 = vcmp.gt.s32.totalorder %v1483_v10, 0  ;;  %v1522_v13 = vand.u32 65535, %v5296_v62  ;;  %v1523_v3 = vshrl.u32 %v5296_v62, 16 }
 0x25e   : > { %v1485_v44 = vsel %vm1484_vm6, %v1483_v10, 0 }
 0x25f   : > { %v1487_v29 = vand.u32 31, %v1485_v44  ;;  %v5279_v49 = vshrl.u32 %v1485_v44, 5 }
 0x261   : > { %v5277_v36 = vsub.s32 32, %v1487_v29  ;;  %v1490_v61 = vshll.u32 %v4604_v33, %v1487_v29  ;;  %v1493_v52 = vshll.u32 %v4605_v35, %v1487_v29  ;;  %v1496_v59 = vshll.u32 %v4606_v37, %v1487_v29  ;;  %v1461_v31 = vpop.f32.mrf.mxu3 }
 0x262   : > { %v1499_v57 = vshll.u32 %v4607_v39, %v1487_v29  ;;  %v1502_v5 = vshll.u32 %v4608_v41, %v1487_v29  ;;  %vm1505_vm7 = vcmp.lt.s32.totalorder %v5279_v49, 1  ;;  %vm1508_vm8 = vcmp.lt.s32.totalorder %v5279_v49, 4 }
 0x263   : > { %v1491_v34 = vshrl.u32 %v4605_v35, %v5277_v36  ;;  %v1494_v43 = vshrl.u32 %v4606_v37, %v5277_v36  ;;  %v1497_v7 = vshrl.u32 %v4607_v39, %v5277_v36  ;;  %v1500_v51 = vshrl.u32 %v4608_v41, %v5277_v36 }
 0x264   : > { %v1503_v26 = vshrl.u32 %v4609_v50, %v5277_v36  ;;  %vm1507_vm9 = vcmp.lt.s32.totalorder %v5279_v49, 3  ;;  %v1462_v15 = vadd.f32 %v4276_v12, %v1461_v31  ;;  %vm1506_vm10 = vcmp.lt.s32.totalorder %v5279_v49, 2 }
 0x265   : > { %v1492_v47 = vor.u32 %v1491_v34, %v1490_v61  ;;  %v1495_v60 = vor.u32 %v1494_v43, %v1493_v52  ;;  %v1498_v45 = vor.u32 %v1497_v7, %v1496_v59  ;;  %v1501_v63 = vor.u32 %v1500_v51, %v1499_v57 }
 0x266   : > { %v1504_v4 = vor.u32 %v1503_v26, %v1502_v5  ;;  %v5321_v38 = vadd.f32 %v4302_v23, %v1462_v15  ;;  %v1489_v34 = vshrl.u32 %v4604_v33, %v5277_v36 }
 0x267   : > { %v1513_v19 = vsel %vm1505_vm7, %v1492_v47, %v1495_v60  ;;  %v1517_v9 = vsel %vm1505_vm7, %v1495_v60, %v1498_v45  ;;  %v1514_v22 = vsel %vm1508_vm8, %v1501_v63, 920167782 }
 0x268   : > { %v1518_v24 = vsel %vm1508_vm8, %v1504_v4, 1326507024  ;;  %v1515_v18 = vsel %vm1507_vm9, %v1498_v45, %v1514_v22  ;;  %v5324_v17 = vmul.f32 %v4277_v25, %v5321_v38  ;;  %v1510_v25 = vsel %vm1508_vm8, %v1498_v45, 2102212464 }
 0x269   : > { %v1519_v16 = vsel %vm1507_vm9, %v1501_v63, %v1518_v24  ;;  %v1516_v8 = vsel %vm1506_vm10, %v1513_v19, %v1515_v18  ;;  %v1509_v26 = vsel %vm1505_vm7, %v1489_v34, %v1492_v47  ;;  %v1511_v45 = vsel %vm1507_vm9, %v1495_v60, %v1510_v25 }
 0x26a   : > { %v1520_v46 = vsel %vm1506_vm10, %v1517_v9, %v1519_v16  ;;  %v1546_v1 = vand.u32 65535, %v1516_v8  ;;  %v1547_v0 = vshrl.u32 %v1516_v8, 16  ;;  %v1631_v53 = vand.u32 2139095040, %v5324_v17 }
 0x26b   : > { %v1524_v2 = vand.u32 65535, %v1520_v46  ;;  %v1525_v54 = vshrl.u32 %v1520_v46, 16  ;;  %v1628_v36 = vand.u32 2147483647, %v5324_v17  ;;  %v1512_v47 = vsel %vm1506_vm10, %v1509_v26, %v1511_v45 }
 0x26c   : > { %v1549_v20 = vmul.u32 %v1547_v0, %v1522_v13  ;;  %v1550_v11 = vmul.u32 %v1546_v1, %v1523_v3  ;;  %v1548_v27 = vmul.u32 %v1546_v1, %v1522_v13  ;;  %v1551_v48 = vmul.u32 %v1547_v0, %v1523_v3 }
 0x26d   : > { %v1527_v40 = vmul.u32 %v1525_v54, %v1522_v13  ;;  %v1528_v30 = vmul.u32 %v1524_v2, %v1523_v3  ;;  %v1526_v12 = vmul.u32 %v1524_v2, %v1522_v13  ;;  %v1529_v6 = vmul.u32 %v1525_v54, %v1523_v3 }
 0x26e   : > { %v1552_v21 = vshll.u32 %v1549_v20, 16  ;;  %v1554_v58 = vshll.u32 %v1550_v11, 16  ;;  %v1632_v5 = vshrl.u32 %v1631_v53, 23  ;;  %v1553_v63 = vshrl.u32 %v1549_v20, 16 }
 0x26f   : > { %v1530_v42 = vshll.u32 %v1527_v40, 16  ;;  %v1532_v32 = vshll.u32 %v1528_v30, 16  ;;  %v1531_v7 = vshrl.u32 %v1527_v40, 16  ;;  %v1533_v19 = vshrl.u32 %v1528_v30, 16 }
 0x270   : > { %vm1556_vm12 = vc.u32 %v1548_v27, %v1552_v21  ;;  %v1558_v29 = vadd.s32 %v1552_v21, %v1548_v27  ;;  %v4084_v31 = vadd.s32 4294967169, %v1632_v5  ;;  %v1555_v22 = vshrl.u32 %v1550_v11, 16 }
 0x271   : > { %vm1534_vm11 = vc.u32 %v1526_v12, %v1530_v42  ;;  %v1536_v10 = vadd.s32 %v1530_v42, %v1526_v12  ;;  %v1557_v52 = vsel %vm1556_vm12, 1, %v4610_v56  ;;  %v1635_v60 = vand.u32 8388607, %v1628_v36 }
 0x272   : > { %v1535_v44 = vsel %vm1534_vm11, 1, %v4610_v56  ;;  %v1559_v59 = vadd.s32 %v1557_v52, %v1551_v48  ;;  %vm1560_vm14 = vc.u32 %v1558_v29, %v1554_v58  ;;  %v5342_v18 = vadd.s32 %v1558_v29, %v1554_v58 }
 0x273   : > { %v1537_v61 = vadd.s32 %v1535_v44, %v1529_v6  ;;  %vm1538_vm13 = vc.u32 %v1536_v10, %v1532_v32  ;;  %v1561_v51 = vsel %vm1560_vm14, 1, %v4610_v56  ;;  %v1638_v16 = vadd.s32 1, %v4084_v31 }
 0x274   : > { %v1539_v43 = vsel %vm1538_vm13, 1, %v4610_v56  ;;  %v1563_v4 = vadd.s32 %v1561_v51, %v1559_v59  ;;  %v1566_v3 = vmul.u32 %v5296_v62, %v1512_v47  ;;  %v1636_v1 = vor.u32 8388608, %v1635_v60 }
 0x275   : > { %v1541_v57 = vadd.s32 %v1539_v43, %v1537_v61  ;;  %vm1639_vm1 = vcmp.gt.s32.totalorder %v1638_v16, 0  ;;  %vm1475_vm12 = vcmp.lt.s32.totalorder %v5271_v28, 0  ;;  %vm5440_vm14 = vcmp.le.f32.partialorder %v1473_v14, 0.7853982 }
 0x276   : > { %v1564_v24 = vadd.s32 %v1563_v4, %v1553_v63  ;;  %v1640_v46 = vsel %vm1639_vm1, %v1638_v16, 0  ;;  %v5385_v52 = vshll.u32 %v1636_v1, 8 }
 0x277   : > { %v1542_v9 = vadd.s32 %v1541_v57, %v1531_v7  ;;  %v1642_v23 = vand.u32 31, %v1640_v46  ;;  %v5353_v49 = vshrl.u32 %v1640_v46, 5 }
 0x278   : > { %v1565_v13 = vadd.s32 %v1564_v24, %v1555_v22  ;;  %v1677_v63 = vand.u32 65535, %v5385_v52  ;;  %v1678_v4 = vshrl.u32 %v5385_v52, 16 }
 0x279   : > { %v5340_v15 = vadd.s32 %v1542_v9, %v1533_v19  ;;  %v5351_v0 = vsub.s32 32, %v1642_v23  ;;  %v1645_v40 = vshll.u32 %v4604_v33, %v1642_v23  ;;  %v1648_v30 = vshll.u32 %v4605_v35, %v1642_v23 }
 0x27a   : > { %v1569_v8 = vadd.s32 1, %v1565_v13  ;;  %v1651_v20 = vshll.u32 %v4606_v37, %v1642_v23  ;;  %v1654_v42 = vshll.u32 %v4607_v39, %v1642_v23  ;;  %v1657_v48 = vshll.u32 %v4608_v41, %v1642_v23 }
 0x27b   : > { %vm1568_vm15 = vc.u32 %v5340_v15, %v5342_v18  ;;  %v1646_v12 = vshrl.u32 %v4605_v35, %v5351_v0  ;;  %v1649_v62 = vshrl.u32 %v4606_v37, %v5351_v0  ;;  %v1652_v6 = vshrl.u32 %v4607_v39, %v5351_v0 }
 0x27c   : > { %v1570_v2 = vsel %vm1568_vm15, %v1569_v8, %v1565_v13  ;;  %v1655_v27 = vshrl.u32 %v4608_v41, %v5351_v0  ;;  %v1658_v21 = vshrl.u32 %v4609_v50, %v5351_v0  ;;  %vm1660_vm2 = vcmp.lt.s32.totalorder %v5353_v49, 1 }
 0x27d   : > { %v1571_v54 = vadd.s32 %v1570_v2, %v1566_v3  ;;  %v5372_v10 = vor.u32 %v1646_v12, %v1645_v40  ;;  %v5374_v58 = vor.u32 %v1649_v62, %v1648_v30  ;;  %v5376_v44 = vor.u32 %v1652_v6, %v1651_v20  ;;  %v1467_v30 = vld [vmem:[#allocation6 + $0x1] sm:$0x1] }
 0x27e   : > { %v1656_v29 = vor.u32 %v1655_v27, %v1654_v42  ;;  %v1659_v53 = vor.u32 %v1658_v21, %v1657_v48  ;;  %vm1663_vm3 = vcmp.lt.s32.totalorder %v5353_v49, 4  ;;  %vm1662_vm4 = vcmp.lt.s32.totalorder %v5353_v49, 3 }
 0x27f   : > { %v1572_v11 = vadd.s32 536870912, %v1571_v54  ;;  %v1668_v61 = vsel %vm1660_vm2, %v5372_v10, %v5374_v58  ;;  %v1672_v43 = vsel %vm1660_vm2, %v5374_v58, %v5376_v44  ;;  %vm1661_vm5 = vcmp.lt.s32.totalorder %v5353_v49, 2 }
 0x280   : > { %v1669_v34 = vsel %vm1663_vm3, %v1656_v29, 920167782  ;;  %v1673_v59 = vsel %vm1663_vm3, %v1659_v53, 1326507024  ;;  %v1567_v3 = vadd.s32 %v5342_v18, %v5340_v15  ;;  %v5411_v53 = vadd.f32 1e-09, %v1467_v30 }
 0x281   : > { %v5370_v32 = vshrl.u32 %v1572_v11, 30  ;;  %v1670_v57 = vsel %vm1662_vm4, %v5376_v44, %v1669_v34  ;;  %v1674_v5 = vsel %vm1662_vm4, %v1656_v29, %v1673_v59 }
 0x282   : > { %v1671_v51 = vsel %vm1661_vm5, %v1668_v61, %v1670_v57  ;;  %v1675_v45 = vsel %vm1661_vm5, %v1672_v43, %v1674_v5  ;;  %4291 = vrcp.f32 %v5411_v53  ;;  %vm1791_vm15 = vweird.f32 %v5411_v53 }
 0x283   : > { %v1574_v25 = vshll.u32 %v5370_v32, 30  ;;  %v1679_v19 = vand.u32 65535, %v1675_v45  ;;  %v1680_v9 = vshrl.u32 %v1675_v45, 16  ;;  %v1702_v22 = vshrl.u32 %v1671_v51, 16 }
 0x284   : > { %v1701_v13 = vand.u32 65535, %v1671_v51  ;;  %v1665_v45 = vsel %vm1663_vm3, %v5376_v44, 2102212464 }
 0x285   : > { %v1575_v7 = vsub.s32 %v1571_v54, %v1574_v25  ;;  %v1682_v16 = vmul.u32 %v1680_v9, %v1677_v63  ;;  %v1683_v47 = vmul.u32 %v1679_v19, %v1678_v4  ;;  %v1681_v8 = vmul.u32 %v1679_v19, %v1677_v63 }
 0x286   : > { %v1684_v23 = vmul.u32 %v1680_v9, %v1678_v4  ;;  %v1704_v54 = vmul.u32 %v1702_v22, %v1677_v63  ;;  %v1703_v40 = vmul.u32 %v1701_v13, %v1677_v63  ;;  %v1705_v12 = vmul.u32 %v1701_v13, %v1678_v4 }
 0x287   : > { %vm1576_vm6 = vcmp.lt.s32.totalorder %v1575_v7, 0  ;;  %v1577_v26 = vsub.s32 0, %v1575_v7  ;;  %v1685_v46 = vshll.u32 %v1682_v16, 16  ;;  %v1687_v2 = vshll.u32 %v1683_v47, 16 }
 0x288   : > { %v1707_v62 = vshll.u32 %v1704_v54, 16  ;;  %v1686_v27 = vshrl.u32 %v1682_v16, 16  ;;  %v1706_v15 = vmul.u32 %v1702_v22, %v1678_v4  ;;  %v1709_v34 = vshll.u32 %v1705_v12, 16 }
 0x289   : > { %v1578_v31 = vsel %vm1576_vm6, %v1577_v26, %v1575_v7  ;;  %vm1689_vm8 = vc.u32 %v1681_v8, %v1685_v46  ;;  %v1691_v1 = vadd.s32 %v1685_v46, %v1681_v8  ;;  %v1644_v63 = vshrl.u32 %v4604_v33, %v5351_v0 }
 0x28a   : > { %v1579_v24 = vclz %v1578_v31  ;;  %v1690_v11 = vsel %vm1689_vm8, 1, %v4610_v56  ;;  %vm1711_vm10 = vc.u32 %v1703_v40, %v1707_v62  ;;  %v1713_v59 = vadd.s32 %v1707_v62, %v1703_v40 }
 0x28b   : > { %v1692_v48 = vadd.s32 %v1690_v11, %v1684_v23  ;;  %vm1693_vm9 = vc.u32 %v1691_v1, %v1687_v2  ;;  %v1712_v43 = vsel %vm1711_vm10, 1, %v4610_v56  ;;  %v1688_v4 = vshrl.u32 %v1683_v47, 16 }
 0x28c   : > { %v4082_v60 = vadd.s32 4294967294, %v1579_v24  ;;  %v1694_v25 = vsel %vm1693_vm9, 1, %v4610_v56  ;;  %v1714_v5 = vadd.s32 %v1712_v43, %v1706_v15  ;;  %vm1715_vm11 = vc.u32 %v1713_v59, %v1709_v34 }
 0x28d   : > { %v1696_v61 = vadd.s32 %v1694_v25, %v1692_v48  ;;  %v1716_v19 = vsel %vm1715_vm11, 1, %v4610_v56  ;;  %v1708_v22 = vshrl.u32 %v1704_v54, 16  ;;  %v1664_v16 = vsel %vm1660_vm2, %v1644_v63, %v5372_v10 }
 0x28e   : > { %vm4083_vm7 = vcmp.lt.s32.totalorder %v4082_v60, 0  ;;  %v1718_v24 = vadd.s32 %v1716_v19, %v1714_v5  ;;  %v1666_v13 = vsel %vm1662_vm4, %v5374_v58, %v1665_v45  ;;  %v1710_v0 = vshrl.u32 %v1705_v12, 16 }
 0x28f   : > { %v1582_v20 = vsel %vm4083_vm7, 0, %v4082_v60  ;;  %v4292_v60 = vpop.eup %4291  ;;  %v5430_v46 = vadd.s32 %v1713_v59, %v1709_v34  ;;  %v1667_v23 = vsel %vm1661_vm5, %v1664_v16, %v1666_v13  ;;  %v1597_v40 = vsub.s32 4, %v5370_v32 }
 0x290   : > { %v1583_v42 = vsub.s32 32, %v1582_v20  ;;  %v1587_v6 = vsub.s32 4294967266, %v1582_v20  ;;  %v1584_v21 = vshll.u32 %v1575_v7, %v1582_v20  ;;  %v1697_v7 = vadd.s32 %v1696_v61, %v1686_v27 }
 0x291   : > { %v1719_v47 = vadd.s32 %v1718_v24, %v1708_v22  ;;  %v1787_v10 = vmul.f32 %v4292_v60, %v5411_v53  ;;  %v1721_v30 = vmul.u32 %v5385_v52, %v1667_v23  ;;  %v1598_v14 = vsel %vm1475_vm12, %v1597_v40, %v5370_v32 }
 0x292   : > { %v1585_v18 = vshrl.u32 %v1567_v3, %v1583_v42  ;;  %v1588_v29 = vadd.s32 127, %v1587_v6  ;;  %v5428_v44 = vadd.s32 %v1697_v7, %v1688_v4  ;;  %vm1792_vm1 = vweird.f32 %v4292_v60 }
 0x293   : > { %v1720_v2 = vadd.s32 %v1719_v47, %v1710_v0  ;;  %v1788_v12 = vsub.f32 1.0, %v1787_v10  ;;  %v1797_v32 = vand.u32 2147483648, %v5411_v53  ;;  %vm1793_vm2 = vmor %vm1791_vm15, %vm1792_vm1  ;;  %vm1616_vm9 = vweird.f32 %v5271_v28  ;;  %v1814_v10 = vld [vmem:[#allocation8 + $0x78] sm:$0xff] }
 0x294   : > { %v1586_v57 = vor.u32 %v1585_v18, %v1584_v21  ;;  %v1589_v51 = vshll.u32 %v1588_v29, 23  ;;  %vm1723_vm13 = vc.u32 %v5428_v44, %v5430_v46  ;;  %v1600_v29 = vsel %vm5440_vm14, 0, %v1598_v14  ;;  %1869 = vmatpush.msra.mxu1 %v1814_v10 }
 0x295   : > { %v1724_v1 = vadd.s32 1, %v1720_v2  ;;  %v1789_v15 = vmul.f32 %v4292_v60, %v1788_v12  ;;  %v1617_v59 = vadd.s32 3, %v1600_v29  ;;  %v1798_v19 = vor.u32 1.1754944e-38, %v1797_v32  ;;  %v1881_v29 = vld [vmem:[#allocation8 + $0x90] sm:$0xff]  ;;  %v1990_v32 = vld [vmem:[#allocation8 + $0xc8] sm:$0xff] }
 0x296   : > { %v1590_v26 = vor.u32 4788187, %v1589_v51  ;;  %v1593_v31 = vcvt.s32.f32 %v1586_v57  ;;  %v1795_v51 = vand.u32 2147483647, %v5411_v53  ;;  %vm1630_vm10 = vcmp.lt.s32.totalorder %v5324_v17, 0 }
 0x297   : > { %v1725_v11 = vsel %vm1723_vm13, %v1724_v1, %v1720_v2  ;;  %v1790_v57 = vadd.f32 %v4292_v60, %v1789_v15  ;;  %vm5472_vm11 = vcmp.le.f32.partialorder %v1628_v36, 0.7853982  ;;  %vm1771_vm15 = vweird.f32 %v5324_v17 }
 0x298   : > { %v1591_v9 = vand.u32 2147483647, %v1590_v26  ;;  %v1726_v62 = vadd.s32 %v1725_v11, %v1721_v30  ;;  %vm1796_vm4 = vcmp.eq.f32.partialorder %v1795_v51, 8.507059e+37  ;;  %v1813_v30 = vld [vmem:[#allocation8 + $0x70] sm:$0xff] }
 0x299   : > { %1870 = vmatpush.msra.mxu1 %v1813_v30 }
 0x29a   : > { %v1594_v8 = vmul.f32 %v1593_v31, %v1591_v9  ;;  %v1727_v27 = vadd.s32 536870912, %v1726_v62  ;;  %v1618_v9 = vand.u32 3, %v1617_v59  ;;  %v1794_v31 = vsel %vm1793_vm2, %v4292_v60, %v1790_v57  ;;  %v1989_v57 = vld [vmem:[#allocation8 + $0xc0] sm:$0xff] }
 0x29b   : > { %v5458_v0 = vsel %vm1796_vm4, %v1798_v19, %v1794_v31  ;;  %2011 = vmatpush.msrb.mxu1 %v1990_v32 }
 0x29c   : > { %v1595_v3 = vxor.u32 2147483648, %v1594_v8  ;;  %v5450_v18 = vshrl.u32 %v1727_v27, 30  ;;  %vm1620_vm5 = vcmp.eq.s32.totalorder %v1618_v9, 0  ;;  %vm1623_vm6 = vcmp.eq.s32.totalorder %v1618_v9, 2  ;;  %v1819_v27 = vld [vmem:[#allocation8 + $0x88] sm:$0xff] }
 0x29d   : > { %vm1619_vm7 = vcmp.lt.s32.totalorder %v1618_v9, 2  ;;  %v1802_v60 = vperm.slane %v5458_v0, 0  ;;  %1840 = vmatpush.msra.mxu0 %v1819_v27  ;;  %2012 = vmatpush.msrb.mxu1 %v1989_v57 }
 0x29e   : > { %v1596_v54 = vsel %vm1475_vm12, %v1595_v3, %v1594_v8  ;;  %v1729_v52 = vshll.u32 %v5450_v18, 30 }
 0x29f   : > { %v1599_v49 = vsel %vm5440_vm14, %v5271_v28, %v1596_v54  ;;  %v1722_v54 = vadd.s32 %v5430_v46, %v5428_v44  ;;  %v1882_v46 = vld [vmem:[#allocation8 + $0x98] sm:$0xff] }
 0x2a0   : > { %v1601_v20 = vmul.f32 %v1599_v49, %v1599_v49  ;;  %v1730_v5 = vsub.s32 %v1726_v62, %v1729_v52  ;;  %v1810_v62 = vld [vmem:[#allocation2 + $0x17] sm:$0xff]  ;;  %1903 = vmatpush.msra.mxu2 %v1882_v46 }
 0x2a1   : > { %4089 = vmatmul.msk.f32.vlgmr.msra.gmra.mxu1 %vm479_vm0, %v1810_v62 }
 0x2a2   : > { %v1602_v42 = vmul.f32 -0.001358992, %v1601_v20  ;;  %v1609_v6 = vmul.f32 -0.00019511016, %v1601_v20  ;;  %vm1731_vm3 = vcmp.lt.s32.totalorder %v1730_v5, 0  ;;  %v1732_v45 = vsub.s32 0, %v1730_v5  ;;  %1904 = vmatpush.msra.mxu2 %v1881_v29 }
 0x2a4   : > { %v1603_v48 = vadd.f32 0.041655596, %v1602_v42  ;;  %v1610_v21 = vadd.f32 0.008332121, %v1609_v6  ;;  %v1733_v22 = vsel %vm1731_vm3, %v1732_v45, %v1730_v5 }
 0x2a5   : > { %v1734_v13 = vclz %v1733_v22 }
 0x2a6   : > { %v1604_v25 = vmul.f32 %v1603_v48, %v1601_v20  ;;  %v1611_v61 = vmul.f32 %v1610_v21, %v1601_v20  ;;  %v1918_v48 = vld [vmem:[#allocation8 + $0xa8] sm:$0xff] }
 0x2a7   : > { %v4085_v53 = vadd.s32 4294967294, %v1734_v13  ;;  %1939 = vmatpush.msra.mxu3 %v1918_v48  ;;  %v2025_v13 = vld [vmem:[#allocation8 + $0xd0] sm:$0xff] }
 0x2a8   : > { %v1605_v34 = vadd.f32 -0.4999988, %v1604_v25  ;;  %v1612_v43 = vadd.f32 -0.16666654, %v1611_v61  ;;  %v1818_v25 = vld [vmem:[#allocation8 + $0x80] sm:$0xff] }
 0x2a9   : > { %vm4086_vm8 = vcmp.lt.s32.totalorder %v4085_v53, 0  ;;  %v1917_v61 = vld [vmem:[#allocation8 + $0xa0] sm:$0xff]  ;;  %1841 = vmatpush.msra.mxu0 %v1818_v25 }
 0x2aa   : > { %v1606_v7 = vmul.f32 %v1605_v34, %v1601_v20  ;;  %v1613_v26 = vmul.f32 %v1612_v43, %v1601_v20  ;;  %v1737_v2 = vsel %vm4086_vm8, 0, %v4085_v53  ;;  %1940 = vmatpush.msra.mxu3 %v1917_v61  ;;  %v2026_v34 = vld [vmem:[#allocation8 + $0xd8] sm:$0xff] }
 0x2ab   : > { %v1738_v1 = vsub.s32 32, %v1737_v2  ;;  %v1742_v40 = vsub.s32 4294967266, %v1737_v2  ;;  %v1739_v20 = vshll.u32 %v1730_v5, %v1737_v2  ;;  %v1954_v43 = vld [vmem:[#allocation8 + $0xb8] sm:$0xff]  ;;  %2047 = vmatpush.msrb.mxu2 %v2026_v34 }
 0x2ac   : > { %v1607_v63 = vadd.f32 1.0, %v1606_v7  ;;  %v1614_v4 = vadd.f32 1.0, %v1613_v26  ;;  %1975 = vmatpush.msrb.mxu0 %v1954_v43 }
 0x2ad   : > { %v1740_v11 = vshrl.u32 %v1722_v54, %v1738_v1  ;;  %v1743_v12 = vadd.s32 127, %v1742_v40  ;;  %2048 = vmatpush.msrb.mxu2 %v2025_v13 }
 0x2ae   : > { %v1615_v24 = vmul.f32 %v1614_v4, %v1599_v49  ;;  %v1624_v16 = vxor.u32 2147483648, %v1607_v63 }
 0x2af   : > { %v1741_v42 = vor.u32 %v1740_v11, %v1739_v20  ;;  %v1744_v6 = vshll.u32 %v1743_v12, 23 }
 0x2b0   : > { %v1621_v8 = vxor.u32 2147483648, %v1615_v24  ;;  %v1625_v3 = vsel %vm1623_vm6, %v1624_v16, %v1615_v24 }
 0x2b1   : > { %v1745_v44 = vor.u32 4788187, %v1744_v6  ;;  %v1748_v15 = vcvt.s32.f32 %v1741_v42 }
 0x2b2   : > { %v1622_v47 = vsel %vm1620_vm5, %v1607_v63, %v1621_v8  ;;  %v1752_v63 = vsub.s32 4, %v5450_v18  ;;  %v1953_v8 = vld [vmem:[#allocation8 + $0xb0] sm:$0xff] }
 0x2b3   : > { %v1626_v23 = vsel %vm1619_vm7, %v1622_v47, %v1625_v3  ;;  %v1746_v21 = vand.u32 2147483647, %v1745_v44  ;;  %1976 = vmatpush.msrb.mxu0 %v1953_v8 }
 0x2b4   : > { %v1627_v58 = vsel %vm1616_vm9, nan, %v1626_v23  ;;  %v1753_v22 = vsel %vm1630_vm10, %v1752_v63, %v5450_v18 }
 0x2b5   : > { %v1783_v49 = vmul.f32 %v1627_v58, %v1627_v58  ;;  %v1749_v52 = vmul.f32 %v1748_v15, %v1746_v21  ;;  %v1755_v53 = vsel %vm5472_vm11, 0, %v1753_v22 }
 0x2b6   : > { %v1772_v10 = vadd.s32 3, %v1755_v53 }
 0x2b7   : > { %v1804_v28 = vmul.f32 %v1802_v60, %v1783_v49  ;;  %v1750_v59 = vxor.u32 2147483648, %v1749_v52 }
 0x2b8   : > { %v1773_v49 = vand.u32 3, %v1772_v10 }
 0x2b9   : > { %v1806_v14 = vadd.f32 %v1804_v28, %v5268_v55  ;;  %v1751_v5 = vsel %vm1630_vm10, %v1750_v59, %v1749_v52 }
 0x2ba   : > { %v1754_v4 = vsel %vm5472_vm11, %v5324_v17, %v1751_v5  ;;  %vm1775_vm12 = vcmp.eq.s32.totalorder %v1773_v49, 0  ;;  %vm1778_vm13 = vcmp.eq.s32.totalorder %v1773_v49, 2  ;;  %vm1774_vm14 = vcmp.lt.s32.totalorder %v1773_v49, 2 }
 0x2bb   : > { %1808 = vst.msk [vmem:[#allocation2 + $0x20] sm:$0xff] %vm479_vm0, %v1806_v14  ;;  %v1756_v19 = vmul.f32 %v1754_v4, %v1754_v4 }
 0x2bd   : > { %v1757_v9 = vmul.f32 -0.001358992, %v1756_v19  ;;  %v1764_v31 = vmul.f32 -0.00019511016, %v1756_v19 }
 0x2bf   : > { %v1758_v24 = vadd.f32 0.041655596, %v1757_v9  ;;  %v1765_v16 = vadd.f32 0.008332121, %v1764_v31 }
 0x2c1   : > { %v1759_v47 = vmul.f32 %v1758_v24, %v1756_v19  ;;  %v1766_v3 = vmul.f32 %v1765_v16, %v1756_v19  ;;  %v4279_v24 = vld [vmem:[%s6382_s4 + $0x1] ss:$0 sm:$0xff] }
 0x2c2   : > { %v1815_v7 = vld [vmem:[#allocation2 + $0x1a] sm:$0xff] }
 0x2c3   : > { %v1811_v26 = vld [vmem:[#allocation2 + $0x1f] sm:$0xff]  ;;  %4087 = vmatmul.msk.f32.vlgmr.msra.gmra.mxu0 %vm479_vm0, %v1815_v7  ;;  %v1760_v23 = vadd.f32 -0.4999988, %v1759_v47  ;;  %v1767_v2 = vadd.f32 -0.16666654, %v1766_v3 }
 0x2c4   : > { %v1878_v45 = vld [vmem:[#allocation2 + $0x1d] sm:$0xff]  ;;  %4090 = vmatmul.msk.f32.gmra.mxu1 %vm479_vm0, %v1811_v26 }
 0x2c5   : > { %v1914_v36 = vld [vmem:[#allocation2 + $0x20] sm:$0xff]  ;;  %4091 = vmatmul.msk.f32.vlgmr.msra.gmra.mxu2 %vm479_vm0, %v1878_v45  ;;  %v1761_v58 = vmul.f32 %v1760_v23, %v1756_v19  ;;  %v1768_v54 = vmul.f32 %v1767_v2, %v1756_v19 }
 0x2c6   : > { %4093 = vmatmul.msk.f32.vlgmr.msra.gmra.mxu3 %vm479_vm0, %v1914_v36  ;;  %v4278_v36 = vld [vmem:[#allocation9 + $0x1] ss:$0 sm:$0xff] }
 0x2c7   : > { %v1762_v1 = vadd.f32 1.0, %v1761_v58  ;;  %v1769_v40 = vadd.f32 1.0, %v1768_v54 }
 0x2c9   : > { %v1770_v18 = vmul.f32 %v1769_v40, %v1754_v4  ;;  %v1779_v30 = vxor.u32 2147483648, %v1762_v1 }
 0x2cb   : > { %v1776_v20 = vxor.u32 2147483648, %v1770_v18  ;;  %v1780_v12 = vsel %vm1778_vm13, %v1779_v30, %v1770_v18 }
 0x2cd   : > { %v1777_v11 = vsel %vm1775_vm12, %v1762_v1, %v1776_v20 }
 0x2ce   : > { %v1781_v62 = vsel %vm1774_vm14, %v1777_v11, %v1780_v12 }
 0x2cf   : > { %v1782_v28 = vsel %vm1771_vm15, nan, %v1781_v62 }
 0x2d0   : > { %v1784_v42 = vmul.f32 %v1782_v28, %v1782_v28 }
 0x2d2   : > { %v1805_v6 = vmul.f32 %v1802_v60, %v1784_v42  ;;  %v2023_v60 = vld [vmem:[#allocation2 + $0x31] sm:$0xff] }
 0x2d4   : > { %v1807_v14 = vadd.f32 %v1805_v6, %v5321_v38 }
 0x2d6   : > { %1809 = vst.msk [vmem:[#allocation2 + $0x28] sm:$0xff] %vm479_vm0, %v1807_v14 }
 0x2dd   : > { %v1816_v44 = vld [vmem:[#allocation2 + $0x22] sm:$0xff]  ;;  %v1987_v0 = vld [vmem:[#allocation2 + $0x2e] sm:$0xff] }
 0x2de   : > { %v1879_v46 = vld [vmem:[#allocation2 + $0x25] sm:$0xff]  ;;  %4088 = vmatmul.msk.f32.gmra.mxu0 %vm479_vm0, %v1816_v44 }
 0x2df   : > { %v1915_v27 = vld [vmem:[#allocation2 + $0x28] sm:$0xff]  ;;  %4092 = vmatmul.msk.f32.gmra.mxu2 %vm479_vm0, %v1879_v46 }
 0x2e0   : > { %v1986_v48 = vld [vmem:[#allocation2 + $0x26] sm:$0xff]  ;;  %4094 = vmatmul.msk.f32.gmra.mxu3 %vm479_vm0, %v1915_v27 }
 0x2e1   : > { %4097 = vmatmul.msk.f32.vlgmr.msrb.gmra.mxu1 %vm479_vm0, %v1986_v48  ;;  %v1950_v17 = vld [vmem:[#allocation2 + $0x23] sm:$0xff]  ;;  %v1951_v15 = vld [vmem:[#allocation2 + $0x2b] sm:$0xff] }
 0x2e2   : > { %v2022_v21 = vld [vmem:[#allocation2 + $0x29] sm:$0xff] }
 0x2e6   : > { %4095 = vmatmul.msk.f32.vlgmr.msrb.gmra.mxu0 %vm479_vm0, %v1950_v17 }
 0x2e7   : > { %4099 = vmatmul.msk.f32.vlgmr.msrb.gmra.mxu2 %vm479_vm0, %v2022_v21 }
 0x2e9   : > { %4098 = vmatmul.msk.f32.gmra.mxu1 %vm479_vm0, %v1987_v0 }
 0x2ee   : > { %4096 = vmatmul.msk.f32.gmra.mxu0 %vm479_vm0, %v1951_v15 }
 0x2ef   : > { %4100 = vmatmul.msk.f32.gmra.mxu2 %vm479_vm0, %v2023_v60 }
 0x31e   : > { %v1872_v29 = vpop.f32.mrf.mxu1 }
 0x340   : > { %v1843_v25 = vpop.f32.mrf.mxu0 }
 0x341   : > { %v1875_v52 = vpop.f32.mrf.mxu1  ;;  %v1873_v43 = vadd.f32 %v1872_v29, %v1843_v25 }
 0x348   : > { %v1906_v61 = vpop.f32.mrf.mxu2 }
 0x349   : > { %v1912_v32 = vadd.f32 %v1906_v61, %v1873_v43  ;;  %v1942_v59 = vpop.f32.mrf.mxu3 }
 0x34b   : > { %v1948_v51 = vadd.f32 %v1942_v59, %v1912_v32 }
 0x35b   : > { %v1846_v34 = vpop.f32.mrf.mxu0 }
 0x35c   : > { %v1876_v7 = vadd.f32 %v1875_v52, %v1846_v34 }
 0x35e   : > { %v2014_v45 = vpop.f32.mrf.mxu1 }
 0x362   : > { %v1909_v57 = vpop.f32.mrf.mxu2 }
 0x363   : > { %v1978_v5 = vpop.f32.mrf.mxu0  ;;  %v1913_v63 = vadd.f32 %v1909_v57, %v1876_v7  ;;  %v1945_v19 = vpop.f32.mrf.mxu3 }
 0x364   : > { %v1984_v26 = vadd.f32 %v1978_v5, %v1948_v51 }
 0x365   : > { %v1949_v31 = vadd.f32 %v1945_v19, %v1913_v63 }
 0x366   : > { %v2020_v4 = vadd.f32 %v2014_v45, %v1984_v26  ;;  %v2017_v47 = vpop.f32.mrf.mxu1 }
 0x36a   : > { %v2050_v9 = vpop.f32.mrf.mxu2 }
 0x36b   : > { %v2056_v22 = vadd.f32 %v2050_v9, %v2020_v4  ;;  %v1981_v16 = vpop.f32.mrf.mxu0 }
 0x36c   : > { %v1985_v8 = vadd.f32 %v1981_v16, %v1949_v31 }
 0x36d   : > { %v5508_v13 = vadd.f32 %v4278_v36, %v2056_v22 }
 0x36e   : > { %v2021_v2 = vadd.f32 %v2017_v47, %v1985_v8 }
 0x36f   : > { %v5511_v53 = vmul.f32 %v4279_v24, %v5508_v13 }
 0x371   : > { %v2072_v3 = vand.u32 2147483647, %v5511_v53  ;;  %v2075_v23 = vand.u32 2139095040, %v5511_v53 }
 0x372   : > { %v2053_v10 = vpop.f32.mrf.mxu2 }
 0x373   : > { %v2076_v58 = vshrl.u32 %v2075_v23, 23  ;;  %v2079_v54 = vand.u32 8388607, %v2072_v3  ;;  %v2057_v1 = vadd.f32 %v2053_v10, %v2021_v2 }
 0x375   : > { %v4102_v40 = vadd.s32 4294967169, %v2076_v58  ;;  %v2080_v49 = vor.u32 8388608, %v2079_v54  ;;  %v5517_v18 = vadd.f32 %v4278_v36, %v2057_v1 }
 0x377   : > { %v2082_v30 = vadd.s32 1, %v4102_v40  ;;  %v5520_v20 = vmul.f32 %v4279_v24, %v5517_v18  ;;  %v5522_v11 = vshll.u32 %v2080_v49, 8 }
 0x379   : > { %vm2083_vm1 = vcmp.gt.s32.totalorder %v2082_v30, 0  ;;  %v2227_v62 = vand.u32 2147483647, %v5520_v20  ;;  %v2230_v28 = vand.u32 2139095040, %v5520_v20  ;;  %v2121_v14 = vand.u32 65535, %v5522_v11 }
 0x37a   : > { %v2084_v12 = vsel %vm2083_vm1, %v2082_v30, 0  ;;  %v2122_v44 = vshrl.u32 %v5522_v11, 16 }
 0x37b   : > { %v2086_v42 = vand.u32 31, %v2084_v12  ;;  %v2231_v46 = vshrl.u32 %v2230_v28, 23  ;;  %v2085_v27 = vshrl.u32 %v2084_v12, 5  ;;  %v5532_v21 = vand.u32 8388607, %v2227_v62 }
 0x37d   : > { %v2087_v6 = vsub.s32 32, %v2086_v42  ;;  %v2089_v48 = vshll.u32 %v4604_v33, %v2086_v42  ;;  %v2092_v17 = vshll.u32 %v4605_v35, %v2086_v42  ;;  %v2095_v15 = vshll.u32 %v4606_v37, %v2086_v42 }
 0x37e   : > { %v2098_v25 = vshll.u32 %v4607_v39, %v2086_v42  ;;  %v2101_v52 = vshll.u32 %v4608_v41, %v2086_v42  ;;  %v4105_v57 = vadd.s32 4294967169, %v2231_v46  ;;  %vm2104_vm2 = vcmp.lt.s32.totalorder %v2085_v27, 1 }
 0x37f   : > { %v2090_v0 = vshrl.u32 %v4605_v35, %v2087_v6  ;;  %v2093_v60 = vshrl.u32 %v4606_v37, %v2087_v6  ;;  %v2096_v29 = vshrl.u32 %v4607_v39, %v2087_v6  ;;  %v2099_v61 = vshrl.u32 %v4608_v41, %v2087_v6 }
 0x380   : > { %v2102_v34 = vshrl.u32 %v4609_v50, %v2087_v6  ;;  %vm2107_vm3 = vcmp.lt.s32.totalorder %v2085_v27, 4  ;;  %v2088_v7 = vshrl.u32 %v4604_v33, %v2087_v6  ;;  %vm2106_vm4 = vcmp.lt.s32.totalorder %v2085_v27, 3 }
 0x381   : > { %v2091_v43 = vor.u32 %v2090_v0, %v2089_v48  ;;  %v2094_v32 = vor.u32 %v2093_v60, %v2092_v17  ;;  %v2097_v59 = vor.u32 %v2096_v29, %v2095_v15  ;;  %v2100_v51 = vor.u32 %v2099_v61, %v2098_v25 }
 0x382   : > { %v2103_v5 = vor.u32 %v2102_v34, %v2101_v52  ;;  %v2237_v19 = vadd.s32 1, %v4105_v57  ;;  %vm2105_vm5 = vcmp.lt.s32.totalorder %v2085_v27, 2  ;;  %v2235_v58 = vor.u32 8388608, %v5532_v21 }
 0x383   : > { %v2109_v26 = vsel %vm2107_vm3, %v2097_v59, 2102212464  ;;  %v2112_v45 = vsel %vm2104_vm2, %v2091_v43, %v2094_v32  ;;  %v2116_v63 = vsel %vm2104_vm2, %v2094_v32, %v2097_v59  ;;  %v2113_v4 = vsel %vm2107_vm3, %v2100_v51, 920167782 }
 0x384   : > { %v2117_v36 = vsel %vm2107_vm3, %v2103_v5, 1326507024  ;;  %v2108_v9 = vsel %vm2104_vm2, %v2088_v7, %v2091_v43  ;;  %v2114_v31 = vsel %vm2106_vm4, %v2097_v59, %v2113_v4  ;;  %v2110_v24 = vsel %vm2106_vm4, %v2094_v32, %v2109_v26 }
 0x385   : > { %v2118_v22 = vsel %vm2106_vm4, %v2100_v51, %v2117_v36  ;;  %v2115_v16 = vsel %vm2105_vm5, %v2112_v45, %v2114_v31  ;;  %vm2238_vm6 = vcmp.gt.s32.totalorder %v2237_v19, 0  ;;  %v5544_v54 = vsel %vm2105_vm5, %v2108_v9, %v2110_v24 }
 0x386   : > { %v2119_v8 = vsel %vm2105_vm5, %v2116_v63, %v2118_v22  ;;  %v2145_v2 = vand.u32 65535, %v2115_v16  ;;  %v2146_v10 = vshrl.u32 %v2115_v16, 16  ;;  %v2239_v49 = vsel %vm2238_vm6, %v2237_v19, 0 }
 0x387   : > { %v2123_v47 = vand.u32 65535, %v2119_v8  ;;  %v2124_v23 = vshrl.u32 %v2119_v8, 16  ;;  %v2241_v25 = vand.u32 31, %v2239_v49  ;;  %v5551_v57 = vshrl.u32 %v2239_v49, 5 }
 0x388   : > { %v2148_v28 = vmul.u32 %v2146_v10, %v2121_v14  ;;  %v2149_v42 = vmul.u32 %v2145_v2, %v2122_v44  ;;  %v2147_v27 = vmul.u32 %v2145_v2, %v2121_v14  ;;  %v2150_v48 = vmul.u32 %v2146_v10, %v2122_v44 }
 0x389   : > { %v2126_v1 = vmul.u32 %v2124_v23, %v2121_v14  ;;  %v2127_v40 = vmul.u32 %v2123_v47, %v2122_v44  ;;  %v2125_v30 = vmul.u32 %v2123_v47, %v2121_v14  ;;  %v2128_v12 = vmul.u32 %v2124_v23, %v2122_v44 }
 0x38a   : > { %v2151_v60 = vshll.u32 %v2148_v28, 16  ;;  %v2152_v15 = vshrl.u32 %v2148_v28, 16  ;;  %v2153_v21 = vshll.u32 %v2149_v42, 16  ;;  %v2154_v52 = vshrl.u32 %v2149_v42, 16 }
 0x38b   : > { %v2129_v6 = vshll.u32 %v2126_v1, 16  ;;  %v2130_v46 = vshrl.u32 %v2126_v1, 16  ;;  %v2131_v17 = vshll.u32 %v2127_v40, 16  ;;  %v2132_v0 = vshrl.u32 %v2127_v40, 16 }
 0x38c   : > { %vm2155_vm8 = vc.u32 %v2147_v27, %v2151_v60  ;;  %v2157_v34 = vadd.s32 %v2151_v60, %v2147_v27  ;;  %v5548_v59 = vsub.s32 32, %v2241_v25  ;;  %v2244_v26 = vshll.u32 %v4604_v33, %v2241_v25 }
 0x38d   : > { %vm2133_vm7 = vc.u32 %v2125_v30, %v2129_v6  ;;  %v2135_v29 = vadd.s32 %v2129_v6, %v2125_v30  ;;  %v2156_v32 = vsel %vm2155_vm8, 1, %v4610_v56  ;;  %v2247_v4 = vshll.u32 %v4605_v35, %v2241_v25 }
 0x38e   : > { %v2134_v61 = vsel %vm2133_vm7, 1, %v4610_v56  ;;  %v2158_v44 = vadd.s32 %v2156_v32, %v2150_v48  ;;  %vm2159_vm10 = vc.u32 %v2157_v34, %v2153_v21  ;;  %v5554_v7 = vadd.s32 %v2157_v34, %v2153_v21 }
 0x38f   : > { %v2136_v43 = vadd.s32 %v2134_v61, %v2128_v12  ;;  %vm2137_vm9 = vc.u32 %v2135_v29, %v2131_v17  ;;  %v2160_v5 = vsel %vm2159_vm10, 1, %v4610_v56  ;;  %v2245_v63 = vshrl.u32 %v4605_v35, %v5548_v59 }
 0x390   : > { %v2138_v14 = vsel %vm2137_vm9, 1, %v4610_v56  ;;  %v2162_v45 = vadd.s32 %v2160_v5, %v2158_v44  ;;  %v2248_v36 = vshrl.u32 %v4606_v37, %v5548_v59  ;;  %v2250_v9 = vshll.u32 %v4606_v37, %v2241_v25 }
 0x391   : > { %v2140_v51 = vadd.s32 %v2138_v14, %v2136_v43  ;;  %v2251_v31 = vshrl.u32 %v4607_v39, %v5548_v59  ;;  %v2253_v22 = vshll.u32 %v4607_v39, %v2241_v25  ;;  %v5566_v16 = vor.u32 %v2245_v63, %v2244_v26 }
 0x392   : > { %v2163_v24 = vadd.s32 %v2162_v45, %v2152_v15  ;;  %v5568_v8 = vor.u32 %v2248_v36, %v2247_v4  ;;  %v2254_v47 = vshrl.u32 %v4608_v41, %v5548_v59  ;;  %v2256_v10 = vshll.u32 %v4608_v41, %v2241_v25 }
 0x393   : > { %v2141_v19 = vadd.s32 %v2140_v51, %v2130_v46  ;;  %v5574_v2 = vor.u32 %v2251_v31, %v2250_v9  ;;  %v2257_v1 = vshrl.u32 %v4609_v50, %v5548_v59  ;;  %vm2259_vm12 = vcmp.lt.s32.totalorder %v5551_v57, 1 }
 0x394   : > { %v2164_v40 = vadd.s32 %v2163_v24, %v2154_v52  ;;  %v2255_v49 = vor.u32 %v2254_v47, %v2253_v22  ;;  %v5582_v12 = vshll.u32 %v2235_v58, 8  ;;  %v2165_v28 = vmul.u32 %v5522_v11, %v5544_v54 }
 0x395   : > { %v5572_v23 = vadd.s32 %v2141_v19, %v2132_v0  ;;  %v2258_v30 = vor.u32 %v2257_v1, %v2256_v10  ;;  %vm2262_vm13 = vcmp.lt.s32.totalorder %v5551_v57, 4  ;;  %v2267_v6 = vsel %vm2259_vm12, %v5566_v16, %v5568_v8 }
 0x396   : > { %v2168_v42 = vadd.s32 1, %v2164_v40  ;;  %vm2261_vm14 = vcmp.lt.s32.totalorder %v5551_v57, 3  ;;  %v2268_v46 = vsel %vm2262_vm13, %v2255_v49, 920167782  ;;  %v2271_v58 = vsel %vm2259_vm12, %v5568_v8, %v5574_v2 }
 0x397   : > { %vm2167_vm11 = vc.u32 %v5572_v23, %v5554_v7  ;;  %v2272_v11 = vsel %vm2262_vm13, %v2258_v30, 1326507024  ;;  %vm2260_vm15 = vcmp.lt.s32.totalorder %v5551_v57, 2  ;;  %v2269_v27 = vsel %vm2261_vm14, %v5574_v2, %v2268_v46  ;;  %v2409_v57 = vld [vmem:[#allocation11 + $0x18] sm:$0xff] }
 0x398   : > { %v2169_v54 = vsel %vm2167_vm11, %v2168_v42, %v2164_v40  ;;  %v2273_v48 = vsel %vm2261_vm14, %v2255_v49, %v2272_v11  ;;  %v2270_v0 = vsel %vm2260_vm15, %v2267_v6, %v2269_v27  ;;  %v2276_v15 = vand.u32 65535, %v5582_v12  ;;  %2435 = vmatpush.msrb.mxu3 %v2409_v57 }
 0x399   : > { %v2170_v17 = vadd.s32 %v2169_v54, %v2165_v28  ;;  %v2274_v60 = vsel %vm2260_vm15, %v2271_v58, %v2273_v48  ;;  %v2277_v29 = vshrl.u32 %v5582_v12, 16  ;;  %v2301_v61 = vshrl.u32 %v2270_v0, 16 }
 0x39a   : > { %v2278_v21 = vand.u32 65535, %v2274_v60  ;;  %v2279_v25 = vshrl.u32 %v2274_v60, 16  ;;  %v2300_v34 = vand.u32 65535, %v2270_v0  ;;  %v2264_v54 = vsel %vm2262_vm13, %v5574_v2, 2102212464 }
 0x39b   : > { %v2171_v52 = vadd.s32 536870912, %v2170_v17  ;;  %v2303_v44 = vmul.u32 %v2301_v61, %v2276_v15  ;;  %v2305_v47 = vmul.u32 %v2301_v61, %v2277_v29  ;;  %v4101_v60 = vld [vmem:[%s6382_s4 + $0x1] sm:$0x1]  ;;  %v2265_v2 = vsel %vm2261_vm14, %v5568_v8, %v2264_v54 }
 0x39c   : > { %v2281_v43 = vmul.u32 %v2279_v25, %v2276_v15  ;;  %v2282_v32 = vmul.u32 %v2278_v21, %v2277_v29  ;;  %v2280_v51 = vmul.u32 %v2278_v21, %v2276_v15  ;;  %v2283_v45 = vmul.u32 %v2279_v25, %v2277_v29 }
 0x39d   : > { %v5612_v14 = vshrl.u32 %v2171_v52, 30  ;;  %v2304_v63 = vmul.u32 %v2300_v34, %v2277_v29  ;;  %v2306_v19 = vshll.u32 %v2303_v44, 16  ;;  %v2302_v24 = vmul.u32 %v2300_v34, %v2276_v15 }
 0x39e   : > { %v2284_v5 = vshll.u32 %v2281_v43, 16  ;;  %v2286_v4 = vshll.u32 %v2282_v32, 16  ;;  %v2285_v1 = vshrl.u32 %v2281_v43, 16  ;;  %v2287_v0 = vshrl.u32 %v2282_v32, 16 }
 0x39f   : > { %v2173_v26 = vshll.u32 %v5612_v14, 30  ;;  %v2308_v30 = vshll.u32 %v2304_v63, 16  ;;  %vm2310_vm4 = vc.u32 %v2302_v24, %v2306_v19  ;;  %v2312_v28 = vadd.s32 %v2306_v19, %v2302_v24 }
 0x3a0   : > { %vm2288_vm1 = vc.u32 %v2280_v51, %v2284_v5  ;;  %v2290_v36 = vadd.s32 %v2284_v5, %v2280_v51  ;;  %v2311_v6 = vsel %vm2310_vm4, 1, %v4610_v56  ;;  %v2307_v15 = vshrl.u32 %v2303_v44, 16 }
 0x3a1   : > { %v2174_v9 = vsub.s32 %v2170_v17, %v2173_v26  ;;  %v2289_v31 = vsel %vm2288_vm1, 1, %v4610_v56  ;;  %v2313_v11 = vadd.s32 %v2311_v6, %v2305_v47  ;;  %vm2314_vm5 = vc.u32 %v2312_v28, %v2308_v30 }
 0x3a2   : > { %v2291_v22 = vadd.s32 %v2289_v31, %v2283_v45  ;;  %vm2292_vm2 = vc.u32 %v2290_v36, %v2286_v4  ;;  %v2315_v27 = vsel %vm2314_vm5, 1, %v4610_v56  ;;  %v2243_v17 = vshrl.u32 %v4604_v33, %v5548_v59 }
 0x3a3   : > { %vm2175_vm3 = vcmp.lt.s32.totalorder %v2174_v9, 0  ;;  %v2176_v10 = vsub.s32 0, %v2174_v9  ;;  %v2293_v40 = vsel %vm2292_vm2, 1, %v4610_v56  ;;  %v2317_v29 = vadd.s32 %v2315_v27, %v2313_v11 }
 0x3a4   : > { %v2295_v49 = vadd.s32 %v2293_v40, %v2291_v22  ;;  %v2263_v21 = vsel %vm2259_vm12, %v2243_v17, %v5566_v16  ;;  %v2166_v59 = vadd.s32 %v5554_v7, %v5572_v23  ;;  %v2309_v52 = vshrl.u32 %v2304_v63, 16 }
 0x3a5   : > { %v2177_v42 = vsel %vm2175_vm3, %v2176_v10, %v2174_v9  ;;  %v2318_v34 = vadd.s32 %v2317_v29, %v2307_v15  ;;  %v5635_v44 = vadd.f32 1e-09, %v4101_v60  ;;  %v2316_v51 = vadd.s32 %v2312_v28, %v2308_v30  ;;  %v2408_v10 = vld [vmem:[#allocation11 + $0x10] sm:$0xff] }
 0x3a6   : > { %v2178_v46 = vclz %v2177_v42  ;;  %v2296_v58 = vadd.s32 %v2295_v49, %v2285_v1  ;;  %v2266_v5 = vsel %vm2260_vm15, %v2263_v21, %v2265_v2  ;;  %v2196_v30 = vsub.s32 4, %v5612_v14  ;;  %2436 = vmatpush.msrb.mxu3 %v2408_v10 }
 0x3a7   : > { %v2319_v16 = vadd.s32 %v2318_v34, %v2309_v52  ;;  %4293 = vrcp.f32 %v5635_v44  ;;  %v2320_v7 = vmul.u32 %v5582_v12, %v2266_v5  ;;  %vm2074_vm8 = vcmp.lt.s32.totalorder %v5511_v53, 0 }
 0x3a8   : > { %v4103_v48 = vadd.s32 4294967294, %v2178_v46  ;;  %v2297_v25 = vadd.s32 %v2296_v58, %v2287_v0  ;;  %vm5652_vm9 = vcmp.le.f32.partialorder %v2072_v3, 0.7853982  ;;  %v2197_v11 = vsel %vm2074_vm8, %v2196_v30, %v5612_v14 }
 0x3a9   : > { %v2323_v8 = vadd.s32 1, %v2319_v16  ;;  %v2199_v3 = vsel %vm5652_vm9, 0, %v2197_v11  ;;  %vm2390_vm11 = vweird.f32 %v5635_v44  ;;  %v2396_v5 = vand.u32 2147483648, %v5635_v44 }
 0x3aa   : > { %vm4104_vm6 = vcmp.lt.s32.totalorder %v4103_v48, 0  ;;  %vm2322_vm7 = vc.u32 %v2297_v25, %v2316_v51  ;;  %v2216_v34 = vadd.s32 3, %v2199_v3  ;;  %v2321_v14 = vadd.s32 %v2316_v51, %v2297_v25 }
 0x3ab   : > { %v2181_v61 = vsel %vm4104_vm6, 0, %v4103_v48  ;;  %v2324_v23 = vsel %vm2322_vm7, %v2323_v8, %v2319_v16  ;;  %vm2215_vm4 = vweird.f32 %v5511_v53  ;;  %vm2229_vm5 = vcmp.lt.s32.totalorder %v5520_v20, 0 }
 0x3ac   : > { %v2182_v43 = vsub.s32 32, %v2181_v61  ;;  %v2186_v32 = vsub.s32 4294967266, %v2181_v61  ;;  %v2183_v26 = vshll.u32 %v2174_v9, %v2181_v61  ;;  %v2325_v31 = vadd.s32 %v2324_v23, %v2320_v7 }
 0x3ad   : > { %v5641_v1 = vpop.eup %4293  ;;  %vm5679_vm6 = vcmp.le.f32.partialorder %v2227_v62, 0.7853982 }
 0x3ae   : > { %v2184_v45 = vshrl.u32 %v2166_v59, %v2182_v43  ;;  %v2187_v4 = vadd.s32 127, %v2186_v32  ;;  %v2326_v47 = vadd.s32 536870912, %v2325_v31  ;;  %v2386_v28 = vmul.f32 %v5641_v1, %v5635_v44 }
 0x3af   : > { %vm2391_vm12 = vweird.f32 %v5641_v1 }
 0x3b0   : > { %v2185_v36 = vor.u32 %v2184_v45, %v2183_v26  ;;  %v2188_v19 = vshll.u32 %v2187_v4, 23  ;;  %v5643_v40 = vshrl.u32 %v2326_v47, 30  ;;  %v2387_v48 = vsub.f32 1.0, %v2386_v28  ;;  %vm5668_vm14 = vmor %vm2390_vm11, %vm2391_vm12 }
 0x3b1   : > { %v2394_v45 = vand.u32 2147483647, %v5635_v44 }
 0x3b2   : > { %v2189_v63 = vor.u32 4788187, %v2188_v19  ;;  %v2192_v24 = vcvt.s32.f32 %v2185_v36  ;;  %v2328_v12 = vshll.u32 %v5643_v40, 30  ;;  %v2388_v2 = vmul.f32 %v5641_v1, %v2387_v48 }
 0x3b3   : > { %vm2395_vm15 = vcmp.eq.f32.partialorder %v2394_v45, 8.507059e+37  ;;  %v2351_v3 = vsub.s32 4, %v5643_v40 }
 0x3b4   : > { %v2190_v22 = vand.u32 2147483647, %v2189_v63  ;;  %v2329_v46 = vsub.s32 %v2325_v31, %v2328_v12  ;;  %v2389_v26 = vadd.f32 %v5641_v1, %v2388_v2 }
 0x3b6   : > { %v2193_v9 = vmul.f32 %v2192_v24, %v2190_v22  ;;  %vm2330_vm10 = vcmp.lt.s32.totalorder %v2329_v46, 0  ;;  %v2331_v27 = vsub.s32 0, %v2329_v46  ;;  %v2217_v22 = vand.u32 3, %v2216_v34 }
 0x3b7   : > { %v2397_v24 = vor.u32 1.1754944e-38, %v2396_v5  ;;  %v2393_v47 = vsel %vm5668_vm14, %v5641_v1, %v2389_v26 }
 0x3b8   : > { %v2194_v49 = vxor.u32 2147483648, %v2193_v9  ;;  %v2332_v60 = vsel %vm2330_vm10, %v2331_v27, %v2329_v46  ;;  %vm2219_vm1 = vcmp.eq.s32.totalorder %v2217_v22, 0  ;;  %vm2222_vm2 = vcmp.eq.s32.totalorder %v2217_v22, 2 }
 0x3b9   : > { %v2333_v15 = vclz %v2332_v60  ;;  %v2398_v12 = vsel %vm2395_vm15, %v2397_v24, %v2393_v47  ;;  %vm2218_vm3 = vcmp.lt.s32.totalorder %v2217_v22, 2  ;;  %vm2370_vm10 = vweird.f32 %v5520_v20  ;;  %v4280_v22 = vld [vmem:[#allocation12 + $0x1] ss:$0 sm:$0xff] }
 0x3ba   : > { %v2195_v6 = vsel %vm2074_vm8, %v2194_v49, %v2193_v9 }
 0x3bb   : > { %v2198_v58 = vsel %vm5652_vm9, %v5511_v53, %v2195_v6  ;;  %v4106_v59 = vadd.s32 4294967294, %v2333_v15 }
 0x3bc   : > { %v2200_v54 = vmul.f32 %v2198_v58, %v2198_v58 }
 0x3bd   : > { %vm4107_vm13 = vcmp.lt.s32.totalorder %v4106_v59, 0 }
 0x3be   : > { %v2201_v17 = vmul.f32 -0.001358992, %v2200_v54  ;;  %v2208_v0 = vmul.f32 -0.00019511016, %v2200_v54  ;;  %v2336_v16 = vsel %vm4107_vm13, 0, %v4106_v59  ;;  %v2352_v59 = vsel %vm2229_vm5, %v2351_v3, %v5643_v40 }
 0x3bf   : > { %v2337_v4 = vsub.s32 32, %v2336_v16  ;;  %v2341_v8 = vsub.s32 4294967266, %v2336_v16  ;;  %v2338_v23 = vshll.u32 %v2329_v46, %v2336_v16 }
 0x3c0   : > { %v2202_v29 = vadd.f32 0.041655596, %v2201_v17  ;;  %v2209_v21 = vadd.f32 0.008332121, %v2208_v0 }
 0x3c1   : > { %v2339_v25 = vshrl.u32 %v2321_v14, %v2337_v4  ;;  %v2342_v51 = vadd.s32 127, %v2341_v8 }
 0x3c2   : > { %v2203_v61 = vmul.f32 %v2202_v29, %v2200_v54  ;;  %v2210_v52 = vmul.f32 %v2209_v21, %v2200_v54 }
 0x3c3   : > { %v2340_v44 = vor.u32 %v2339_v25, %v2338_v23  ;;  %v2343_v57 = vshll.u32 %v2342_v51, 23 }
 0x3c4   : > { %v2204_v43 = vadd.f32 -0.4999988, %v2203_v61  ;;  %v2211_v32 = vadd.f32 -0.16666654, %v2210_v52  ;;  %v2354_v52 = vsel %vm5679_vm6, 0, %v2352_v59 }
 0x3c5   : > { %v2344_v49 = vor.u32 4788187, %v2343_v57  ;;  %v2347_v42 = vcvt.s32.f32 %v2340_v44  ;;  %v2371_v5 = vadd.s32 3, %v2354_v52  ;;  %v4281_v44 = vld [vmem:[#allocation6 + $0x2] ss:$0 sm:$0xff] }
 0x3c6   : > { %v2205_v36 = vmul.f32 %v2204_v43, %v2200_v54  ;;  %v2212_v19 = vmul.f32 %v2211_v32, %v2200_v54  ;;  %v2401_v54 = vperm.slane %v2398_v12, 0 }
 0x3c7   : > { %v2345_v28 = vand.u32 2147483647, %v2344_v49  ;;  %v2372_v4 = vand.u32 3, %v2371_v5 }
 0x3c8   : > { %v2206_v63 = vadd.f32 1.0, %v2205_v36  ;;  %v2213_v31 = vadd.f32 1.0, %v2212_v19 }
 0x3c9   : > { %v2348_v1 = vmul.f32 %v2347_v42, %v2345_v28  ;;  %vm2374_vm7 = vcmp.eq.s32.totalorder %v2372_v4, 0  ;;  %vm2377_vm8 = vcmp.eq.s32.totalorder %v2372_v4, 2  ;;  %vm2373_vm9 = vcmp.lt.s32.totalorder %v2372_v4, 2 }
 0x3ca   : > { %v2214_v10 = vmul.f32 %v2213_v31, %v2198_v58  ;;  %v2223_v9 = vxor.u32 2147483648, %v2206_v63 }
 0x3cb   : > { %v2349_v17 = vxor.u32 2147483648, %v2348_v1 }
 0x3cc   : > { %v2220_v30 = vxor.u32 2147483648, %v2214_v10  ;;  %v2224_v46 = vsel %vm2222_vm2, %v2223_v9, %v2214_v10 }
 0x3cd   : > { %v2350_v60 = vsel %vm2229_vm5, %v2349_v17, %v2348_v1 }
 0x3ce   : > { %v2221_v6 = vsel %vm2219_vm1, %v2206_v63, %v2220_v30  ;;  %v2353_v53 = vsel %vm5679_vm6, %v5520_v20, %v2350_v60 }
 0x3cf   : > { %v2225_v11 = vsel %vm2218_vm3, %v2221_v6, %v2224_v46  ;;  %v2355_v29 = vmul.f32 %v2353_v53, %v2353_v53 }
 0x3d0   : > { %v2226_v27 = vsel %vm2215_vm4, nan, %v2225_v11 }
 0x3d1   : > { %v2382_v48 = vmul.f32 %v2226_v27, %v2226_v27  ;;  %v2356_v21 = vmul.f32 -0.001358992, %v2355_v29  ;;  %v2363_v2 = vmul.f32 -0.00019511016, %v2355_v29 }
 0x3d3   : > { %v2403_v58 = vmul.f32 %v2401_v54, %v2382_v48  ;;  %v2357_v62 = vadd.f32 0.041655596, %v2356_v21  ;;  %v2364_v61 = vadd.f32 0.008332121, %v2363_v2 }
 0x3d5   : > { %v2405_v15 = vadd.f32 %v2403_v58, %v5508_v13  ;;  %v2358_v34 = vmul.f32 %v2357_v62, %v2355_v29  ;;  %v2365_v14 = vmul.f32 %v2364_v61, %v2355_v29 }
 0x3d7   : > { %4108 = vmatmul.msk.f32.vlgmr.msrb.gmra.mxu3 %vm479_vm0, %v2405_v15  ;;  %v2359_v43 = vadd.f32 -0.4999988, %v2358_v34  ;;  %v2366_v32 = vadd.f32 -0.16666654, %v2365_v14 }
 0x3d9   : > { %v2360_v16 = vmul.f32 %v2359_v43, %v2355_v29  ;;  %v2367_v26 = vmul.f32 %v2366_v32, %v2355_v29 }
 0x3db   : > { %v2361_v13 = vadd.f32 1.0, %v2360_v16  ;;  %v2368_v45 = vadd.f32 1.0, %v2367_v26 }
 0x3dd   : > { %v2369_v8 = vmul.f32 %v2368_v45, %v2353_v53  ;;  %v2378_v36 = vxor.u32 2147483648, %v2361_v13 }
 0x3df   : > { %v2375_v19 = vxor.u32 2147483648, %v2369_v8  ;;  %v2379_v7 = vsel %vm2377_vm8, %v2378_v36, %v2369_v8 }
 0x3e1   : > { %v2376_v40 = vsel %vm2374_vm7, %v2361_v13, %v2375_v19 }
 0x3e2   : > { %v2380_v23 = vsel %vm2373_vm9, %v2376_v40, %v2379_v7 }
 0x3e3   : > { %v2381_v25 = vsel %vm2370_vm10, nan, %v2380_v23 }
 0x3e4   : > { %v2383_v51 = vmul.f32 %v2381_v25, %v2381_v25 }
 0x3e6   : > { %v2404_v63 = vmul.f32 %v2401_v54, %v2383_v51 }
 0x3e8   : > { %v2406_v31 = vadd.f32 %v2404_v63, %v5517_v18 }
 0x3ea   : > { %4109 = vmatmul.msk.f32.gmra.mxu3 %vm479_vm0, %v2406_v31 }
 0x45a   : > { %v2438_v24 = vpop.f32.mrf.mxu3 }
 0x45b   : > { %v2439_v47 = vadd.f32 %v4280_v22, %v2438_v24 }
 0x45d   : > { %v5696_v57 = vadd.f32 %v2439_v47, %v5268_v55 }
 0x45f   : > { %v5699_v10 = vmul.f32 %v4281_v44, %v5696_v57 }
 0x461   : > { %v2456_v20 = vand.u32 2139095040, %v5699_v10  ;;  %v2453_v49 = vand.u32 2147483647, %v5699_v10 }
 0x463   : > { %v2457_v9 = vshrl.u32 %v2456_v20, 23  ;;  %v2460_v18 = vand.u32 8388607, %v2453_v49 }
 0x465   : > { %v4110_v30 = vadd.s32 4294967169, %v2457_v9  ;;  %v2461_v6 = vor.u32 8388608, %v2460_v18 }
 0x467   : > { %v2463_v12 = vadd.s32 1, %v4110_v30  ;;  %v5717_v21 = vshll.u32 %v2461_v6, 8 }
 0x469   : > { %vm2464_vm11 = vcmp.gt.s32.totalorder %v2463_v12, 0  ;;  %v2502_v16 = vand.u32 65535, %v5717_v21  ;;  %v2503_v45 = vshrl.u32 %v5717_v21, 16 }
 0x46a   : > { %v2465_v28 = vsel %vm2464_vm11, %v2463_v12, 0 }
 0x46b   : > { %v2467_v42 = vand.u32 31, %v2465_v28  ;;  %v5705_v55 = vshrl.u32 %v2465_v28, 5 }
 0x46d   : > { %v2468_v46 = vsub.s32 32, %v2467_v42  ;;  %v2470_v11 = vshll.u32 %v4604_v33, %v2467_v42  ;;  %v2473_v54 = vshll.u32 %v4605_v35, %v2467_v42  ;;  %v2476_v48 = vshll.u32 %v4606_v37, %v2467_v42  ;;  %v2441_v52 = vpop.f32.mrf.mxu3 }
 0x46e   : > { %v2479_v58 = vshll.u32 %v4607_v39, %v2467_v42  ;;  %v2482_v60 = vshll.u32 %v4608_v41, %v2467_v42  ;;  %vm2485_vm12 = vcmp.lt.s32.totalorder %v5705_v55, 1  ;;  %vm2488_vm13 = vcmp.lt.s32.totalorder %v5705_v55, 4 }
 0x46f   : > { %v2471_v1 = vshrl.u32 %v4605_v35, %v2468_v46  ;;  %v2474_v27 = vshrl.u32 %v4606_v37, %v2468_v46  ;;  %v2477_v17 = vshrl.u32 %v4607_v39, %v2468_v46  ;;  %v2480_v0 = vshrl.u32 %v4608_v41, %v2468_v46 }
 0x470   : > { %v2483_v3 = vshrl.u32 %v4609_v50, %v2468_v46  ;;  %vm2487_vm14 = vcmp.lt.s32.totalorder %v5705_v55, 3  ;;  %v2442_v43 = vadd.f32 %v4280_v22, %v2441_v52  ;;  %vm2486_vm15 = vcmp.lt.s32.totalorder %v5705_v55, 2 }
 0x471   : > { %v2472_v53 = vor.u32 %v2471_v1, %v2470_v11  ;;  %v2475_v15 = vor.u32 %v2474_v27, %v2473_v54  ;;  %v2478_v29 = vor.u32 %v2477_v17, %v2476_v48  ;;  %v2481_v2 = vor.u32 %v2480_v0, %v2479_v58 }
 0x472   : > { %v2484_v59 = vor.u32 %v2483_v3, %v2482_v60  ;;  %v5742_v4 = vadd.f32 %v2442_v43, %v5321_v38  ;;  %v2469_v54 = vshrl.u32 %v4604_v33, %v2468_v46 }
 0x473   : > { %v2493_v62 = vsel %vm2485_vm12, %v2472_v53, %v2475_v15  ;;  %v2497_v61 = vsel %vm2485_vm12, %v2475_v15, %v2478_v29  ;;  %v2494_v34 = vsel %vm2488_vm13, %v2481_v2, 920167782 }
 0x474   : > { %v2498_v14 = vsel %vm2488_vm13, %v2484_v59, 1326507024  ;;  %v2495_v32 = vsel %vm2487_vm14, %v2478_v29, %v2494_v34  ;;  %v5745_v63 = vmul.f32 %v4281_v44, %v5742_v4  ;;  %v2490_v44 = vsel %vm2488_vm13, %v2478_v29, 2102212464 }
 0x475   : > { %v2499_v5 = vsel %vm2487_vm14, %v2481_v2, %v2498_v14  ;;  %v2496_v26 = vsel %vm2486_vm15, %v2493_v62, %v2495_v32  ;;  %v2489_v60 = vsel %vm2485_vm12, %v2469_v54, %v2472_v53  ;;  %v2491_v3 = vsel %vm2487_vm14, %v2475_v15, %v2490_v44 }
 0x476   : > { %v2500_v13 = vsel %vm2486_vm15, %v2497_v61, %v2499_v5  ;;  %v2526_v19 = vand.u32 65535, %v2496_v26  ;;  %v2527_v40 = vshrl.u32 %v2496_v26, 16  ;;  %v2611_v42 = vand.u32 2139095040, %v5745_v63 }
 0x477   : > { %v2504_v8 = vand.u32 65535, %v2500_v13  ;;  %v2505_v36 = vshrl.u32 %v2500_v13, 16  ;;  %v2608_v46 = vand.u32 2147483647, %v5745_v63  ;;  %v2492_v53 = vsel %vm2486_vm15, %v2489_v60, %v2491_v3 }
 0x478   : > { %v2529_v25 = vmul.u32 %v2527_v40, %v2502_v16  ;;  %v2530_v51 = vmul.u32 %v2526_v19, %v2503_v45  ;;  %v2528_v47 = vmul.u32 %v2526_v19, %v2502_v16  ;;  %v2531_v20 = vmul.u32 %v2527_v40, %v2503_v45 }
 0x479   : > { %v2507_v7 = vmul.u32 %v2505_v36, %v2502_v16  ;;  %v2508_v23 = vmul.u32 %v2504_v8, %v2503_v45  ;;  %v2506_v31 = vmul.u32 %v2504_v8, %v2502_v16  ;;  %v2509_v24 = vmul.u32 %v2505_v36, %v2503_v45 }
 0x47a   : > { %v2532_v9 = vshll.u32 %v2529_v25, 16  ;;  %v2534_v12 = vshll.u32 %v2530_v51, 16  ;;  %v2612_v0 = vshrl.u32 %v2611_v42, 23  ;;  %v2533_v29 = vshrl.u32 %v2529_v25, 16 }
 0x47b   : > { %v2510_v22 = vshll.u32 %v2507_v7, 16  ;;  %v2512_v30 = vshll.u32 %v2508_v23, 16  ;;  %v2511_v48 = vshrl.u32 %v2507_v7, 16  ;;  %v2513_v59 = vshrl.u32 %v2508_v23, 16 }
 0x47c   : > { %vm2536_vm2 = vc.u32 %v2528_v47, %v2532_v9  ;;  %v2538_v28 = vadd.s32 %v2532_v9, %v2528_v47  ;;  %v4113_v61 = vadd.s32 4294967169, %v2612_v0  ;;  %v2535_v52 = vshrl.u32 %v2530_v51, 16 }
 0x47d   : > { %vm2514_vm1 = vc.u32 %v2506_v31, %v2510_v22  ;;  %v2516_v38 = vadd.s32 %v2510_v22, %v2506_v31  ;;  %v2537_v11 = vsel %vm2536_vm2, 1, %v4610_v56  ;;  %v2615_v15 = vand.u32 8388607, %v2608_v46 }
 0x47e   : > { %v2515_v18 = vsel %vm2514_vm1, 1, %v4610_v56  ;;  %v2539_v27 = vadd.s32 %v2537_v11, %v2531_v20  ;;  %vm2540_vm4 = vc.u32 %v2538_v28, %v2534_v12  ;;  %v5762_v43 = vadd.s32 %v2538_v28, %v2534_v12 }
 0x47f   : > { %v2517_v6 = vadd.s32 %v2515_v18, %v2509_v24  ;;  %vm2518_vm3 = vc.u32 %v2516_v38, %v2512_v30  ;;  %v2541_v58 = vsel %vm2540_vm4, 1, %v4610_v56  ;;  %v2618_v32 = vadd.s32 1, %v4113_v61 }
 0x480   : > { %v2519_v1 = vsel %vm2518_vm3, 1, %v4610_v56  ;;  %v2543_v2 = vadd.s32 %v2541_v58, %v2539_v27  ;;  %v2546_v13 = vmul.u32 %v5717_v21, %v2492_v53  ;;  %v2616_v19 = vor.u32 8388608, %v2615_v15 }
 0x481   : > { %v2521_v17 = vadd.s32 %v2519_v1, %v2517_v6  ;;  %vm2619_vm6 = vcmp.gt.s32.totalorder %v2618_v32, 0  ;;  %vm2455_vm2 = vcmp.lt.s32.totalorder %v5699_v10, 0  ;;  %vm5860_vm4 = vcmp.le.f32.partialorder %v2453_v49, 0.7853982 }
 0x482   : > { %v2544_v34 = vadd.s32 %v2543_v2, %v2533_v29  ;;  %v2620_v26 = vsel %vm2619_vm6, %v2618_v32, 0  ;;  %v5805_v11 = vshll.u32 %v2616_v19, 8 }
 0x483   : > { %v2522_v62 = vadd.s32 %v2521_v17, %v2511_v48  ;;  %v2622_v45 = vand.u32 31, %v2620_v26  ;;  %v5773_v55 = vshrl.u32 %v2620_v26, 5 }
 0x484   : > { %v2545_v5 = vadd.s32 %v2544_v34, %v2535_v52  ;;  %v2657_v29 = vand.u32 65535, %v5805_v11  ;;  %v2658_v2 = vshrl.u32 %v5805_v11, 16 }
 0x485   : > { %v5760_v14 = vadd.s32 %v2522_v62, %v2513_v59  ;;  %v5771_v40 = vsub.s32 32, %v2622_v45  ;;  %v2625_v7 = vshll.u32 %v4604_v33, %v2622_v45  ;;  %v2628_v23 = vshll.u32 %v4605_v35, %v2622_v45 }
 0x486   : > { %v2549_v16 = vadd.s32 1, %v2545_v5  ;;  %v2631_v25 = vshll.u32 %v4606_v37, %v2622_v45  ;;  %v2634_v22 = vshll.u32 %v4607_v39, %v2622_v45  ;;  %v2637_v20 = vshll.u32 %v4608_v41, %v2622_v45 }
 0x487   : > { %vm2548_vm5 = vc.u32 %v5760_v14, %v5762_v43  ;;  %v2626_v31 = vshrl.u32 %v4605_v35, %v5771_v40  ;;  %v2629_v21 = vshrl.u32 %v4606_v37, %v5771_v40  ;;  %v2632_v24 = vshrl.u32 %v4607_v39, %v5771_v40 }
 0x488   : > { %v2550_v8 = vsel %vm2548_vm5, %v2549_v16, %v2545_v5  ;;  %v2635_v47 = vshrl.u32 %v4608_v41, %v5771_v40  ;;  %v2638_v9 = vshrl.u32 %v4609_v50, %v5771_v40  ;;  %vm2640_vm7 = vcmp.lt.s32.totalorder %v5773_v55, 1 }
 0x489   : > { %v2551_v36 = vadd.s32 %v2550_v8, %v2546_v13  ;;  %v5792_v38 = vor.u32 %v2626_v31, %v2625_v7  ;;  %v5794_v12 = vor.u32 %v2629_v21, %v2628_v23  ;;  %v5796_v18 = vor.u32 %v2632_v24, %v2631_v25  ;;  %v2447_v23 = vld [vmem:[#allocation6 + $0x2] sm:$0x1] }
 0x48a   : > { %v2636_v28 = vor.u32 %v2635_v47, %v2634_v22  ;;  %v2639_v42 = vor.u32 %v2638_v9, %v2637_v20  ;;  %vm2643_vm8 = vcmp.lt.s32.totalorder %v5773_v55, 4  ;;  %vm2642_vm9 = vcmp.lt.s32.totalorder %v5773_v55, 3 }
 0x48b   : > { %v2552_v51 = vadd.s32 536870912, %v2551_v36  ;;  %v2648_v6 = vsel %vm2640_vm7, %v5792_v38, %v5794_v12  ;;  %v2652_v1 = vsel %vm2640_vm7, %v5794_v12, %v5796_v18  ;;  %vm2641_vm10 = vcmp.lt.s32.totalorder %v5773_v55, 2 }
 0x48c   : > { %v2649_v54 = vsel %vm2643_vm8, %v2636_v28, 920167782  ;;  %v2653_v27 = vsel %vm2643_vm8, %v2639_v42, 1326507024  ;;  %v2547_v13 = vadd.s32 %v5762_v43, %v5760_v14  ;;  %v5831_v42 = vadd.f32 1e-09, %v2447_v23 }
 0x48d   : > { %v5790_v30 = vshrl.u32 %v2552_v51, 30  ;;  %v2650_v17 = vsel %vm2642_vm9, %v5796_v18, %v2649_v54  ;;  %v2654_v0 = vsel %vm2642_vm9, %v2636_v28, %v2653_v27 }
 0x48e   : > { %v2651_v58 = vsel %vm2641_vm10, %v2648_v6, %v2650_v17  ;;  %v2655_v3 = vsel %vm2641_vm10, %v2652_v1, %v2654_v0  ;;  %4295 = vrcp.f32 %v5831_v42  ;;  %vm2771_vm5 = vweird.f32 %v5831_v42 }
 0x48f   : > { %v2554_v44 = vshll.u32 %v5790_v30, 30  ;;  %v2659_v59 = vand.u32 65535, %v2655_v3  ;;  %v2660_v62 = vshrl.u32 %v2655_v3, 16  ;;  %v2682_v52 = vshrl.u32 %v2651_v58, 16 }
 0x490   : > { %v2681_v5 = vand.u32 65535, %v2651_v58  ;;  %v2645_v3 = vsel %vm2643_vm8, %v5796_v18, 2102212464 }
 0x491   : > { %v2555_v48 = vsub.s32 %v2551_v36, %v2554_v44  ;;  %v2662_v32 = vmul.u32 %v2660_v62, %v2657_v29  ;;  %v2663_v53 = vmul.u32 %v2659_v59, %v2658_v2  ;;  %v2661_v16 = vmul.u32 %v2659_v59, %v2657_v29 }
 0x492   : > { %v2664_v45 = vmul.u32 %v2660_v62, %v2658_v2  ;;  %v2684_v36 = vmul.u32 %v2682_v52, %v2657_v29  ;;  %v2683_v7 = vmul.u32 %v2681_v5, %v2657_v29  ;;  %v2685_v31 = vmul.u32 %v2681_v5, %v2658_v2 }
 0x493   : > { %vm2556_vm11 = vcmp.lt.s32.totalorder %v2555_v48, 0  ;;  %v2557_v60 = vsub.s32 0, %v2555_v48  ;;  %v2665_v26 = vshll.u32 %v2662_v32, 16  ;;  %v2667_v8 = vshll.u32 %v2663_v53, 16 }
 0x494   : > { %v2687_v21 = vshll.u32 %v2684_v36, 16  ;;  %v2666_v47 = vshrl.u32 %v2662_v32, 16  ;;  %v2686_v14 = vmul.u32 %v2682_v52, %v2658_v2  ;;  %v2689_v54 = vshll.u32 %v2685_v31, 16 }
 0x495   : > { %v2558_v61 = vsel %vm2556_vm11, %v2557_v60, %v2555_v48  ;;  %vm2669_vm13 = vc.u32 %v2661_v16, %v2665_v26  ;;  %v2671_v19 = vadd.s32 %v2665_v26, %v2661_v16  ;;  %v2624_v29 = vshrl.u32 %v4604_v33, %v5771_v40 }
 0x496   : > { %v2559_v34 = vclz %v2558_v61  ;;  %v2670_v51 = vsel %vm2669_vm13, 1, %v4610_v56  ;;  %vm2691_vm15 = vc.u32 %v2683_v7, %v2687_v21  ;;  %v2693_v27 = vadd.s32 %v2687_v21, %v2683_v7 }
 0x497   : > { %v2672_v20 = vadd.s32 %v2670_v51, %v2664_v45  ;;  %vm2673_vm14 = vc.u32 %v2671_v19, %v2667_v8  ;;  %v2692_v1 = vsel %vm2691_vm15, 1, %v4610_v56  ;;  %v2668_v2 = vshrl.u32 %v2663_v53, 16 }
 0x498   : > { %v4111_v15 = vadd.s32 4294967294, %v2559_v34  ;;  %v2674_v44 = vsel %vm2673_vm14, 1, %v4610_v56  ;;  %v2694_v0 = vadd.s32 %v2692_v1, %v2686_v14  ;;  %vm2695_vm1 = vc.u32 %v2693_v27, %v2689_v54 }
 0x499   : > { %v2676_v6 = vadd.s32 %v2674_v44, %v2672_v20  ;;  %v2696_v59 = vsel %vm2695_vm1, 1, %v4610_v56  ;;  %v2688_v52 = vshrl.u32 %v2684_v36, 16  ;;  %v2644_v32 = vsel %vm2640_vm7, %v2624_v29, %v5792_v38 }
 0x49a   : > { %vm4112_vm12 = vcmp.lt.s32.totalorder %v4111_v15, 0  ;;  %v2698_v34 = vadd.s32 %v2696_v59, %v2694_v0  ;;  %v2646_v5 = vsel %vm2642_vm9, %v5794_v12, %v2645_v3  ;;  %v2690_v40 = vshrl.u32 %v2685_v31, 16  ;;  %v2799_v12 = vld [vmem:[#allocation8 + $0xf8] sm:$0xff] }
 0x49b   : > { %v2562_v25 = vsel %vm4112_vm12, 0, %v4111_v15  ;;  %v4296_v15 = vpop.eup %4295  ;;  %v5850_v26 = vadd.s32 %v2693_v27, %v2689_v54  ;;  %v2647_v45 = vsel %vm2641_vm10, %v2644_v32, %v2646_v5  ;;  %v2577_v7 = vsub.s32 4, %v5790_v30  ;;  %2820 = vmatpush.msra.mxu0 %v2799_v12 }
 0x49c   : > { %v2563_v22 = vsub.s32 32, %v2562_v25  ;;  %v2567_v24 = vsub.s32 4294967266, %v2562_v25  ;;  %v2564_v9 = vshll.u32 %v2555_v48, %v2562_v25  ;;  %v2677_v48 = vadd.s32 %v2676_v6, %v2666_v47 }
 0x49d   : > { %v2699_v53 = vadd.s32 %v2698_v34, %v2688_v52  ;;  %v2767_v38 = vmul.f32 %v4296_v15, %v5831_v42  ;;  %v2701_v23 = vmul.u32 %v5805_v11, %v2647_v45  ;;  %v2578_v49 = vsel %vm2455_vm2, %v2577_v7, %v5790_v30 }
 0x49e   : > { %v2565_v43 = vshrl.u32 %v2547_v13, %v2563_v22  ;;  %v2568_v28 = vadd.s32 127, %v2567_v24  ;;  %v5848_v18 = vadd.s32 %v2677_v48, %v2668_v2  ;;  %vm2772_vm6 = vweird.f32 %v4296_v15 }
 0x49f   : > { %v2700_v8 = vadd.s32 %v2699_v53, %v2690_v40  ;;  %v2768_v31 = vsub.f32 1.0, %v2767_v38  ;;  %v2777_v30 = vand.u32 2147483648, %v5831_v42  ;;  %vm2773_vm7 = vmor %vm2771_vm5, %vm2772_vm6  ;;  %v2862_v53 = vld [vmem:[#allocation8 + $0x108] sm:$0xff]  ;;  %vm2596_vm14 = vweird.f32 %v5699_v10 }
 0x4a0   : > { %v2566_v17 = vor.u32 %v2565_v43, %v2564_v9  ;;  %v2569_v58 = vshll.u32 %v2568_v28, 23  ;;  %vm2703_vm3 = vc.u32 %v5848_v18, %v5850_v26  ;;  %v2580_v28 = vsel %vm5860_vm4, 0, %v2578_v49  ;;  %2883 = vmatpush.msra.mxu2 %v2862_v53  ;;  %v2795_v49 = vld [vmem:[#allocation2 + $0xe] sm:$0xff] }
 0x4a1   : > { %v2704_v19 = vadd.s32 1, %v2700_v8  ;;  %v2769_v14 = vmul.f32 %v4296_v15, %v2768_v31  ;;  %v2597_v27 = vadd.s32 3, %v2580_v28  ;;  %v2778_v59 = vor.u32 1.1754944e-38, %v2777_v30  ;;  %v2794_v31 = vld [vmem:[#allocation8 + $0xe8] sm:$0xff] }
 0x4a2   : > { %v2570_v60 = vor.u32 4788187, %v2569_v58  ;;  %v2573_v61 = vcvt.s32.f32 %v2566_v17  ;;  %v2775_v58 = vand.u32 2147483647, %v5831_v42  ;;  %v2702_v7 = vadd.s32 %v5850_v26, %v5848_v18  ;;  %2849 = vmatpush.msra.mxu1 %v2794_v31  ;;  %v2793_v18 = vld [vmem:[#allocation8 + $0xe0] sm:$0xff]  ;;  %v3003_v31 = vld [vmem:[#allocation2 + $0x43] sm:$0xff] }
 0x4a3   : > { %v2705_v51 = vsel %vm2703_vm3, %v2704_v19, %v2700_v8  ;;  %v2770_v17 = vadd.f32 %v4296_v15, %v2769_v14  ;;  %v2796_v30 = vld [vmem:[#allocation2 + $0x16] sm:$0xff]  ;;  %vm2610_vm15 = vcmp.lt.s32.totalorder %v5745_v63, 0  ;;  %vm5895_vm1 = vcmp.le.f32.partialorder %v2608_v46, 0.7853982 }
 0x4a4   : > { %v2571_v62 = vand.u32 2147483647, %v2570_v60  ;;  %v2706_v21 = vadd.s32 %v2705_v51, %v2701_v23  ;;  %vm2776_vm9 = vcmp.eq.f32.partialorder %v2775_v58, 8.507059e+37  ;;  %2850 = vmatpush.msra.mxu1 %v2793_v18  ;;  %v2970_v58 = vld [vmem:[#allocation8 + $0x138] sm:$0xff]  ;;  %vm2751_vm5 = vweird.f32 %v5745_v63 }
 0x4a6   : > { %v2574_v16 = vmul.f32 %v2573_v61, %v2571_v62  ;;  %v2707_v47 = vadd.s32 536870912, %v2706_v21  ;;  %v2598_v62 = vand.u32 3, %v2597_v27  ;;  %v2774_v61 = vsel %vm2773_vm7, %v4296_v15, %v2770_v17  ;;  %v3006_v27 = vld [vmem:[#allocation8 + $0x148] sm:$0xff]  ;;  %2991 = vmatpush.msrb.mxu1 %v2970_v58 }
 0x4a7   : > { %v5878_v40 = vsel %vm2776_vm9, %v2778_v59, %v2774_v61  ;;  %v2934_v17 = vld [vmem:[#allocation8 + $0x128] sm:$0xff] }
 0x4a8   : > { %v2575_v13 = vxor.u32 2147483648, %v2574_v16  ;;  %v5870_v43 = vshrl.u32 %v2707_v47, 30  ;;  %vm2600_vm10 = vcmp.eq.s32.totalorder %v2598_v62, 0  ;;  %vm2603_vm11 = vcmp.eq.s32.totalorder %v2598_v62, 2 }
 0x4a9   : > { %vm2599_vm12 = vcmp.lt.s32.totalorder %v2598_v62, 2  ;;  %v2782_v8 = vperm.slane %v5878_v40, 0 }
 0x4aa   : > { %v2576_v36 = vsel %vm2455_vm2, %v2575_v13, %v2574_v16  ;;  %v2709_v11 = vshll.u32 %v5870_v43, 30 }
 0x4ab   : > { %v2579_v55 = vsel %vm5860_vm4, %v5699_v10, %v2576_v36  ;;  %v2861_v36 = vld [vmem:[#allocation8 + $0x100] sm:$0xff] }
 0x4ac   : > { %v2581_v25 = vmul.f32 %v2579_v55, %v2579_v55  ;;  %v2710_v0 = vsub.s32 %v2706_v21, %v2709_v11  ;;  %2884 = vmatpush.msra.mxu2 %v2861_v36  ;;  %v2798_v21 = vld [vmem:[#allocation8 + $0xf0] sm:$0xff] }
 0x4ad   : > { %2821 = vmatpush.msra.mxu0 %v2798_v21 }
 0x4ae   : > { %v2582_v22 = vmul.f32 -0.001358992, %v2581_v25  ;;  %v2589_v24 = vmul.f32 -0.00019511016, %v2581_v25  ;;  %vm2711_vm8 = vcmp.lt.s32.totalorder %v2710_v0, 0  ;;  %v2712_v3 = vsub.s32 0, %v2710_v0  ;;  %4116 = vmatmul.msk.f32.vlgmr.msra.gmra.mxu0 %vm479_vm0, %v2795_v49  ;;  %3027 = vmatpush.msrb.mxu2 %v3006_v27 }
 0x4af   : > { %2955 = vmatpush.msrb.mxu0 %v2934_v17 }
 0x4b0   : > { %v2583_v20 = vadd.f32 0.041655596, %v2582_v22  ;;  %v2590_v9 = vadd.f32 0.008332121, %v2589_v24  ;;  %v2713_v52 = vsel %vm2711_vm8, %v2712_v3, %v2710_v0  ;;  %v2933_v3 = vld [vmem:[#allocation8 + $0x120] sm:$0xff] }
 0x4b1   : > { %v2714_v5 = vclz %v2713_v52  ;;  %v2732_v52 = vsub.s32 4, %v5870_v43  ;;  %2956 = vmatpush.msrb.mxu0 %v2933_v3 }
 0x4b2   : > { %v2584_v44 = vmul.f32 %v2583_v20, %v2581_v25  ;;  %v2591_v6 = vmul.f32 %v2590_v9, %v2581_v25  ;;  %v2790_v9 = vld [vmem:[#allocation2 + $0x5] sm:$0xff] }
 0x4b3   : > { %v4114_v42 = vadd.s32 4294967294, %v2714_v5  ;;  %4118 = vmatmul.msk.f32.vlgmr.msra.gmra.mxu1 %vm479_vm0, %v2790_v9 }
 0x4b4   : > { %v2585_v54 = vadd.f32 -0.4999988, %v2584_v44  ;;  %v2592_v1 = vadd.f32 -0.16666654, %v2591_v6  ;;  %v2898_v44 = vld [vmem:[#allocation8 + $0x118] sm:$0xff] }
 0x4b5   : > { %vm4115_vm13 = vcmp.lt.s32.totalorder %v4114_v42, 0  ;;  %2919 = vmatpush.msra.mxu3 %v2898_v44 }
 0x4b6   : > { %v2586_v48 = vmul.f32 %v2585_v54, %v2581_v25  ;;  %v2593_v60 = vmul.f32 %v2592_v1, %v2581_v25  ;;  %v2717_v38 = vsel %vm4115_vm13, 0, %v4114_v42  ;;  %v2858_v25 = vld [vmem:[#allocation2 + $0x17] sm:$0xff]  ;;  %v2897_v54 = vld [vmem:[#allocation8 + $0x110] sm:$0xff]  ;;  %4117 = vmatmul.msk.f32.gmra.mxu0 %vm479_vm0, %v2796_v30 }
 0x4b7   : > { %v2722_v23 = vsub.s32 4294967266, %v2717_v38  ;;  %4120 = vmatmul.msk.f32.vlgmr.msra.gmra.mxu2 %vm479_vm0, %v2858_v25  ;;  %v2719_v10 = vshll.u32 %v2710_v0, %v2717_v38  ;;  %2920 = vmatpush.msra.mxu3 %v2897_v54  ;;  %v2966_v42 = vld [vmem:[#allocation2 + $0x32] sm:$0xff]  ;;  %v2967_v25 = vld [vmem:[#allocation2 + $0x3a] sm:$0xff] }
 0x4b8   : > { %v2587_v29 = vadd.f32 1.0, %v2586_v48  ;;  %v2594_v2 = vadd.f32 1.0, %v2593_v60  ;;  %v3005_v48 = vld [vmem:[#allocation8 + $0x140] sm:$0xff] }
 0x4b9   : > { %v2723_v24 = vadd.s32 127, %v2722_v23  ;;  %v2791_v60 = vld [vmem:[#allocation2 + $0xd] sm:$0xff]  ;;  %3028 = vmatpush.msrb.mxu2 %v3005_v48 }
 0x4ba   : > { %v2595_v34 = vmul.f32 %v2594_v2, %v2579_v55  ;;  %v2604_v32 = vxor.u32 2147483648, %v2587_v29  ;;  %v2718_v55 = vsub.s32 32, %v2717_v38 }
 0x4bb   : > { %v2724_v20 = vshll.u32 %v2723_v24, 23  ;;  %4119 = vmatmul.msk.f32.gmra.mxu1 %vm479_vm0, %v2791_v60 }
 0x4bc   : > { %v2601_v16 = vxor.u32 2147483648, %v2595_v34  ;;  %v2605_v45 = vsel %vm2603_vm11, %v2604_v32, %v2595_v34  ;;  %v2720_v22 = vshrl.u32 %v2702_v7, %v2718_v55 }
 0x4bd   : > { %v2725_v28 = vor.u32 4788187, %v2724_v20 }
 0x4be   : > { %v2602_v13 = vsel %vm2600_vm10, %v2587_v29, %v2601_v16  ;;  %v2721_v26 = vor.u32 %v2720_v22, %v2719_v10  ;;  %v2969_v29 = vld [vmem:[#allocation8 + $0x130] sm:$0xff]  ;;  %v2733_v16 = vsel %vm2610_vm15, %v2732_v52, %v5870_v43  ;;  %v4283_v52 = vld [vmem:[%s6382_s4 + $0x2] ss:$0 sm:$0xff] }
 0x4bf   : > { %v2606_v15 = vsel %vm2599_vm12, %v2602_v13, %v2605_v45  ;;  %v2726_v6 = vand.u32 2147483647, %v2725_v28  ;;  %2992 = vmatpush.msrb.mxu1 %v2969_v29  ;;  %v3002_v45 = vld [vmem:[#allocation2 + $0x3b] sm:$0xff] }
 0x4c0   : > { %v2607_v19 = vsel %vm2596_vm14, nan, %v2606_v15  ;;  %v2728_v11 = vcvt.s32.f32 %v2721_v26  ;;  %v2735_v15 = vsel %vm5895_vm1, 0, %v2733_v16 }
 0x4c1   : > { %v2763_v51 = vmul.f32 %v2607_v19, %v2607_v19  ;;  %v2752_v7 = vadd.s32 3, %v2735_v15 }
 0x4c2   : > { %v2729_v1 = vmul.f32 %v2728_v11, %v2726_v6  ;;  %v2931_v6 = vld [vmem:[#allocation2 + $0x31] sm:$0xff] }
 0x4c3   : > { %v2784_v47 = vmul.f32 %v2782_v8, %v2763_v51  ;;  %4126 = vmatmul.msk.f32.vlgmr.msrb.gmra.mxu1 %vm479_vm0, %v2966_v42  ;;  %v2753_v21 = vand.u32 3, %v2752_v7 }
 0x4c4   : > { %v2730_v0 = vxor.u32 2147483648, %v2729_v1 }
 0x4c5   : > { %v2786_v14 = vadd.f32 %v2784_v47, %v5696_v57  ;;  %vm2755_vm2 = vcmp.eq.s32.totalorder %v2753_v21, 0  ;;  %vm2758_vm3 = vcmp.eq.s32.totalorder %v2753_v21, 2  ;;  %vm2754_vm4 = vcmp.lt.s32.totalorder %v2753_v21, 2 }
 0x4c6   : > { %v2731_v59 = vsel %vm2610_vm15, %v2730_v0, %v2729_v1 }
 0x4c7   : > { %2788 = vst.msk [vmem:[#allocation2 + $0x20] sm:$0xff] %vm479_vm0, %v2786_v14  ;;  %v2734_v34 = vsel %vm5895_vm1, %v5745_v63, %v2731_v59  ;;  %v4282_v59 = vld [vmem:[#allocation9 + $0x2] ss:$0 sm:$0xff] }
 0x4c8   : > { %v2736_v46 = vmul.f32 %v2734_v34, %v2734_v34 }
 0x4ca   : > { %v2737_v32 = vmul.f32 -0.001358992, %v2736_v46  ;;  %v2744_v5 = vmul.f32 -0.00019511016, %v2736_v46 }
 0x4cb   : > { %4127 = vmatmul.msk.f32.gmra.mxu1 %vm479_vm0, %v2967_v25 }
 0x4cc   : > { %v2738_v53 = vadd.f32 0.041655596, %v2737_v32  ;;  %v2745_v13 = vadd.f32 0.008332121, %v2744_v5 }
 0x4ce   : > { %v2859_v62 = vld [vmem:[#allocation2 + $0x1f] sm:$0xff]  ;;  %v2739_v38 = vmul.f32 %v2738_v53, %v2736_v46  ;;  %v2746_v12 = vmul.f32 %v2745_v13, %v2736_v46 }
 0x4cf   : > { %v2894_v61 = vld [vmem:[#allocation2 + $0x20] sm:$0xff]  ;;  %4121 = vmatmul.msk.f32.gmra.mxu2 %vm479_vm0, %v2859_v62 }
 0x4d0   : > { %4122 = vmatmul.msk.f32.vlgmr.msra.gmra.mxu3 %vm479_vm0, %v2894_v61  ;;  %v2740_v36 = vadd.f32 -0.4999988, %v2739_v38  ;;  %v2747_v19 = vadd.f32 -0.16666654, %v2746_v12 }
 0x4d2   : > { %v2741_v55 = vmul.f32 %v2740_v36, %v2736_v46  ;;  %v2748_v23 = vmul.f32 %v2747_v19, %v2736_v46 }
 0x4d4   : > { %v2742_v43 = vadd.f32 1.0, %v2741_v55  ;;  %v2749_v51 = vadd.f32 1.0, %v2748_v23 }
 0x4d6   : > { %v2750_v10 = vmul.f32 %v2749_v51, %v2734_v34  ;;  %v2759_v22 = vxor.u32 2147483648, %v2742_v43 }
 0x4d7   : > { %4128 = vmatmul.msk.f32.vlgmr.msrb.gmra.mxu2 %vm479_vm0, %v3002_v45 }
 0x4d8   : > { %v2756_v24 = vxor.u32 2147483648, %v2750_v10  ;;  %v2760_v47 = vsel %vm2758_vm3, %v2759_v22, %v2750_v10 }
 0x4da   : > { %v2757_v49 = vsel %vm2755_vm2, %v2742_v43, %v2756_v24 }
 0x4db   : > { %v2761_v18 = vsel %vm2754_vm4, %v2757_v49, %v2760_v47 }
 0x4dc   : > { %v2762_v26 = vsel %vm2751_vm5, nan, %v2761_v18 }
 0x4dd   : > { %v2764_v20 = vmul.f32 %v2762_v26, %v2762_v26 }
 0x4df   : > { %4129 = vmatmul.msk.f32.gmra.mxu2 %vm479_vm0, %v3003_v31  ;;  %v2785_v9 = vmul.f32 %v2782_v8, %v2764_v20 }
 0x4e1   : > { %v2787_v14 = vadd.f32 %v2785_v9, %v5742_v4 }
 0x4e3   : > { %2789 = vst.msk [vmem:[#allocation2 + $0x28] sm:$0xff] %vm479_vm0, %v2787_v14 }
 0x4ea   : > { %v2895_v28 = vld [vmem:[#allocation2 + $0x28] sm:$0xff] }
 0x4eb   : > { %v2930_v44 = vld [vmem:[#allocation2 + $0x29] sm:$0xff]  ;;  %4123 = vmatmul.msk.f32.gmra.mxu3 %vm479_vm0, %v2895_v28 }
 0x4ec   : > { %4124 = vmatmul.msk.f32.vlgmr.msrb.gmra.mxu0 %vm479_vm0, %v2930_v44 }
 0x4f4   : > { %4125 = vmatmul.msk.f32.gmra.mxu0 %vm479_vm0, %v2931_v6 }
 0x52b   : > { %v2823_v11 = vpop.f32.mrf.mxu0 }
 0x530   : > { %v2852_v63 = vpop.f32.mrf.mxu1 }
 0x531   : > { %v2853_v40 = vadd.f32 %v2852_v63, %v2823_v11 }
 0x533   : > { %v2826_v30 = vpop.f32.mrf.mxu0 }
 0x538   : > { %v2855_v1 = vpop.f32.mrf.mxu1 }
 0x539   : > { %v2856_v29 = vadd.f32 %v2855_v1, %v2826_v30 }
 0x53a   : > { %v2886_v54 = vpop.f32.mrf.mxu2 }
 0x53b   : > { %v2892_v17 = vadd.f32 %v2886_v54, %v2853_v40 }
 0x540   : > { %v2994_v0 = vpop.f32.mrf.mxu1 }
 0x548   : > { %v2997_v53 = vpop.f32.mrf.mxu1 }
 0x552   : > { %v2889_v8 = vpop.f32.mrf.mxu2 }
 0x553   : > { %v2922_v27 = vpop.f32.mrf.mxu3  ;;  %v2893_v62 = vadd.f32 %v2889_v8, %v2856_v29 }
 0x554   : > { %v2928_v58 = vadd.f32 %v2922_v27, %v2892_v17 }
 0x55a   : > { %v3030_v3 = vpop.f32.mrf.mxu2 }
 0x562   : > { %v3033_v15 = vpop.f32.mrf.mxu2 }
 0x569   : > { %v2958_v48 = vpop.f32.mrf.mxu0 }
 0x56a   : > { %v2964_v60 = vadd.f32 %v2958_v48, %v2928_v58 }
 0x56c   : > { %v3000_v2 = vadd.f32 %v2994_v0, %v2964_v60 }
 0x56e   : > { %v3036_v61 = vadd.f32 %v3030_v3, %v3000_v2  ;;  %v2925_v34 = vpop.f32.mrf.mxu3 }
 0x56f   : > { %v2929_v46 = vadd.f32 %v2925_v34, %v2893_v62 }
 0x570   : > { %v5928_v32 = vadd.f32 %v4282_v59, %v3036_v61 }
 0x571   : > { %v2961_v5 = vpop.f32.mrf.mxu0 }
 0x572   : > { %v5931_v16 = vmul.f32 %v4283_v52, %v5928_v32  ;;  %v2965_v42 = vadd.f32 %v2961_v5, %v2929_v46 }
 0x574   : > { %v3052_v13 = vand.u32 2147483647, %v5931_v16  ;;  %v3055_v45 = vand.u32 2139095040, %v5931_v16  ;;  %v3001_v38 = vadd.f32 %v2997_v53, %v2965_v42 }
 0x576   : > { %v3056_v12 = vshrl.u32 %v3055_v45, 23  ;;  %v3059_v36 = vand.u32 8388607, %v3052_v13  ;;  %v3037_v19 = vadd.f32 %v3033_v15, %v3001_v38 }
 0x578   : > { %v4131_v7 = vadd.s32 4294967169, %v3056_v12  ;;  %v3060_v55 = vor.u32 8388608, %v3059_v36  ;;  %v5937_v23 = vadd.f32 %v4282_v59, %v3037_v19 }
 0x57a   : > { %v3062_v25 = vadd.s32 1, %v4131_v7  ;;  %v5940_v43 = vmul.f32 %v4283_v52, %v5937_v23  ;;  %v5942_v51 = vshll.u32 %v3060_v55, 8 }
 0x57c   : > { %vm3063_vm6 = vcmp.gt.s32.totalorder %v3062_v25, 0  ;;  %v3207_v21 = vand.u32 2147483647, %v5940_v43  ;;  %v3210_v10 = vand.u32 2139095040, %v5940_v43  ;;  %v3101_v49 = vand.u32 65535, %v5942_v51 }
 0x57d   : > { %v3064_v31 = vsel %vm3063_vm6, %v3062_v25, 0  ;;  %v3102_v47 = vshrl.u32 %v5942_v51, 16 }
 0x57e   : > { %v3066_v22 = vand.u32 31, %v3064_v31  ;;  %v3211_v18 = vshrl.u32 %v3210_v10, 23  ;;  %v3065_v26 = vshrl.u32 %v3064_v31, 5  ;;  %v5952_v14 = vand.u32 8388607, %v3207_v21 }
 0x580   : > { %v3067_v24 = vsub.s32 32, %v3066_v22  ;;  %v3069_v20 = vshll.u32 %v4604_v33, %v3066_v22  ;;  %v3072_v9 = vshll.u32 %v4605_v35, %v3066_v22  ;;  %v3075_v6 = vshll.u32 %v4606_v37, %v3066_v22 }
 0x581   : > { %v3078_v11 = vshll.u32 %v4607_v39, %v3066_v22  ;;  %v3081_v1 = vshll.u32 %v4608_v41, %v3066_v22  ;;  %v4134_v17 = vadd.s32 4294967169, %v3211_v18  ;;  %vm3084_vm7 = vcmp.lt.s32.totalorder %v3065_v26, 1 }
 0x582   : > { %v3070_v28 = vshrl.u32 %v4605_v35, %v3067_v24  ;;  %v3073_v44 = vshrl.u32 %v4606_v37, %v3067_v24  ;;  %v3076_v63 = vshrl.u32 %v4607_v39, %v3067_v24  ;;  %v3079_v54 = vshrl.u32 %v4608_v41, %v3067_v24 }
 0x583   : > { %v3082_v30 = vshrl.u32 %v4609_v50, %v3067_v24  ;;  %vm3087_vm8 = vcmp.lt.s32.totalorder %v3065_v26, 4  ;;  %v3068_v48 = vshrl.u32 %v4604_v33, %v3067_v24  ;;  %vm3086_vm9 = vcmp.lt.s32.totalorder %v3065_v26, 3 }
 0x584   : > { %v3071_v40 = vor.u32 %v3070_v28, %v3069_v20  ;;  %v3074_v8 = vor.u32 %v3073_v44, %v3072_v9  ;;  %v3077_v27 = vor.u32 %v3076_v63, %v3075_v6  ;;  %v3080_v58 = vor.u32 %v3079_v54, %v3078_v11 }
 0x585   : > { %v3083_v0 = vor.u32 %v3082_v30, %v3081_v1  ;;  %v3217_v62 = vadd.s32 1, %v4134_v17  ;;  %vm3085_vm10 = vcmp.lt.s32.totalorder %v3065_v26, 2  ;;  %v3215_v12 = vor.u32 8388608, %v5952_v14 }
 0x586   : > { %v3089_v60 = vsel %vm3087_vm8, %v3077_v27, 2102212464  ;;  %v3092_v3 = vsel %vm3084_vm7, %v3071_v40, %v3074_v8  ;;  %v3096_v29 = vsel %vm3084_vm7, %v3074_v8, %v3077_v27  ;;  %v3093_v2 = vsel %vm3087_vm8, %v3080_v58, 920167782 }
 0x587   : > { %v3097_v59 = vsel %vm3087_vm8, %v3083_v0, 1326507024  ;;  %v3088_v61 = vsel %vm3084_vm7, %v3068_v48, %v3071_v40  ;;  %v3094_v52 = vsel %vm3086_vm9, %v3077_v27, %v3093_v2  ;;  %v3090_v46 = vsel %vm3086_vm9, %v3074_v8, %v3089_v60 }
 0x588   : > { %v3098_v34 = vsel %vm3086_vm9, %v3080_v58, %v3097_v59  ;;  %v3095_v5 = vsel %vm3085_vm10, %v3092_v3, %v3094_v52  ;;  %vm3218_vm11 = vcmp.gt.s32.totalorder %v3217_v62, 0  ;;  %v5964_v36 = vsel %vm3085_vm10, %v3088_v61, %v3090_v46 }
 0x589   : > { %v3099_v42 = vsel %vm3085_vm10, %v3096_v29, %v3098_v34  ;;  %v3125_v15 = vand.u32 65535, %v3095_v5  ;;  %v3126_v38 = vshrl.u32 %v3095_v5, 16  ;;  %v3219_v55 = vsel %vm3218_vm11, %v3217_v62, 0 }
 0x58a   : > { %v3103_v53 = vand.u32 65535, %v3099_v42  ;;  %v3104_v45 = vshrl.u32 %v3099_v42, 16  ;;  %v3221_v11 = vand.u32 31, %v3219_v55  ;;  %v5971_v17 = vshrl.u32 %v3219_v55, 5 }
 0x58b   : > { %v3128_v10 = vmul.u32 %v3126_v38, %v3101_v49  ;;  %v3129_v22 = vmul.u32 %v3125_v15, %v3102_v47  ;;  %v3127_v26 = vmul.u32 %v3125_v15, %v3101_v49  ;;  %v3130_v20 = vmul.u32 %v3126_v38, %v3102_v47 }
 0x58c   : > { %v3106_v19 = vmul.u32 %v3104_v45, %v3101_v49  ;;  %v3107_v7 = vmul.u32 %v3103_v53, %v3102_v47  ;;  %v3105_v25 = vmul.u32 %v3103_v53, %v3101_v49  ;;  %v3108_v31 = vmul.u32 %v3104_v45, %v3102_v47 }
 0x58d   : > { %v3131_v44 = vshll.u32 %v3128_v10, 16  ;;  %v3132_v6 = vshrl.u32 %v3128_v10, 16  ;;  %v3133_v14 = vshll.u32 %v3129_v22, 16  ;;  %v3134_v1 = vshrl.u32 %v3129_v22, 16 }
 0x58e   : > { %v3109_v24 = vshll.u32 %v3106_v19, 16  ;;  %v3110_v18 = vshrl.u32 %v3106_v19, 16  ;;  %v3111_v9 = vshll.u32 %v3107_v7, 16  ;;  %v3112_v28 = vshrl.u32 %v3107_v7, 16 }
 0x58f   : > { %vm3135_vm13 = vc.u32 %v3127_v26, %v3131_v44  ;;  %v3137_v30 = vadd.s32 %v3131_v44, %v3127_v26  ;;  %v5968_v27 = vsub.s32 32, %v3221_v11  ;;  %v3224_v60 = vshll.u32 %v4604_v33, %v3221_v11 }
 0x590   : > { %vm3113_vm12 = vc.u32 %v3105_v25, %v3109_v24  ;;  %v3115_v63 = vadd.s32 %v3109_v24, %v3105_v25  ;;  %v3136_v8 = vsel %vm3135_vm13, 1, %v4610_v56  ;;  %v3227_v2 = vshll.u32 %v4605_v35, %v3221_v11 }
 0x591   : > { %v3114_v54 = vsel %vm3113_vm12, 1, %v4610_v56  ;;  %v3138_v47 = vadd.s32 %v3136_v8, %v3130_v20  ;;  %vm3139_vm15 = vc.u32 %v3137_v30, %v3133_v14  ;;  %v5974_v48 = vadd.s32 %v3137_v30, %v3133_v14 }
 0x592   : > { %v3116_v40 = vadd.s32 %v3114_v54, %v3108_v31  ;;  %vm3117_vm14 = vc.u32 %v3115_v63, %v3111_v9  ;;  %v3140_v0 = vsel %vm3139_vm15, 1, %v4610_v56  ;;  %v3225_v29 = vshrl.u32 %v4605_v35, %v5968_v27 }
 0x593   : > { %v3118_v49 = vsel %vm3117_vm14, 1, %v4610_v56  ;;  %v3142_v3 = vadd.s32 %v3140_v0, %v3138_v47  ;;  %v3228_v59 = vshrl.u32 %v4606_v37, %v5968_v27  ;;  %v3230_v61 = vshll.u32 %v4606_v37, %v3221_v11 }
 0x594   : > { %v3120_v58 = vadd.s32 %v3118_v49, %v3116_v40  ;;  %v3231_v52 = vshrl.u32 %v4607_v39, %v5968_v27  ;;  %v3233_v34 = vshll.u32 %v4607_v39, %v3221_v11  ;;  %v5986_v5 = vor.u32 %v3225_v29, %v3224_v60 }
 0x595   : > { %v3143_v46 = vadd.s32 %v3142_v3, %v3132_v6  ;;  %v5988_v42 = vor.u32 %v3228_v59, %v3227_v2  ;;  %v3234_v53 = vshrl.u32 %v4608_v41, %v5968_v27  ;;  %v3236_v38 = vshll.u32 %v4608_v41, %v3221_v11 }
 0x596   : > { %v3121_v62 = vadd.s32 %v3120_v58, %v3110_v18  ;;  %v5994_v15 = vor.u32 %v3231_v52, %v3230_v61  ;;  %v3237_v19 = vshrl.u32 %v4609_v50, %v5968_v27  ;;  %vm3239_vm2 = vcmp.lt.s32.totalorder %v5971_v17, 1 }
 0x597   : > { %v3144_v7 = vadd.s32 %v3143_v46, %v3134_v1  ;;  %v3235_v55 = vor.u32 %v3234_v53, %v3233_v34  ;;  %v6002_v31 = vshll.u32 %v3215_v12, 8  ;;  %v3145_v10 = vmul.u32 %v5942_v51, %v5964_v36 }
 0x598   : > { %v5992_v45 = vadd.s32 %v3121_v62, %v3112_v28  ;;  %v3238_v25 = vor.u32 %v3237_v19, %v3236_v38  ;;  %vm3242_vm3 = vcmp.lt.s32.totalorder %v5971_v17, 4  ;;  %v3247_v24 = vsel %vm3239_vm2, %v5986_v5, %v5988_v42 }
 0x599   : > { %v3148_v22 = vadd.s32 1, %v3144_v7  ;;  %vm3241_vm4 = vcmp.lt.s32.totalorder %v5971_v17, 3  ;;  %v3248_v18 = vsel %vm3242_vm3, %v3235_v55, 920167782  ;;  %v3251_v12 = vsel %vm3239_vm2, %v5988_v42, %v5994_v15 }
 0x59a   : > { %vm3147_vm1 = vc.u32 %v5992_v45, %v5974_v48  ;;  %v3252_v51 = vsel %vm3242_vm3, %v3238_v25, 1326507024  ;;  %vm3240_vm5 = vcmp.lt.s32.totalorder %v5971_v17, 2  ;;  %v3249_v26 = vsel %vm3241_vm4, %v5994_v15, %v3248_v18  ;;  %v3389_v17 = vld [vmem:[#allocation11 + $0x28] sm:$0xff] }
 0x59b   : > { %v3149_v36 = vsel %vm3147_vm1, %v3148_v22, %v3144_v7  ;;  %v3253_v20 = vsel %vm3241_vm4, %v3235_v55, %v3252_v51  ;;  %v3250_v28 = vsel %vm3240_vm5, %v3247_v24, %v3249_v26  ;;  %v3256_v6 = vand.u32 65535, %v6002_v31  ;;  %3415 = vmatpush.msrb.mxu3 %v3389_v17 }
 0x59c   : > { %v3150_v9 = vadd.s32 %v3149_v36, %v3145_v10  ;;  %v3254_v44 = vsel %vm3240_vm5, %v3251_v12, %v3253_v20  ;;  %v3257_v63 = vshrl.u32 %v6002_v31, 16  ;;  %v3281_v54 = vshrl.u32 %v3250_v28, 16 }
 0x59d   : > { %v3258_v14 = vand.u32 65535, %v3254_v44  ;;  %v3259_v11 = vshrl.u32 %v3254_v44, 16  ;;  %v3280_v30 = vand.u32 65535, %v3250_v28  ;;  %v3244_v36 = vsel %vm3242_vm3, %v5994_v15, 2102212464 }
 0x59e   : > { %v3151_v1 = vadd.s32 536870912, %v3150_v9  ;;  %v3283_v47 = vmul.u32 %v3281_v54, %v3256_v6  ;;  %v3285_v53 = vmul.u32 %v3281_v54, %v3257_v63  ;;  %v4130_v44 = vld [vmem:[%s6382_s4 + $0x2] sm:$0x1]  ;;  %v3245_v15 = vsel %vm3241_vm4, %v5988_v42, %v3244_v36 }
 0x59f   : > { %v3261_v40 = vmul.u32 %v3259_v11, %v3256_v6  ;;  %v3262_v8 = vmul.u32 %v3258_v14, %v3257_v63  ;;  %v3260_v58 = vmul.u32 %v3258_v14, %v3256_v6  ;;  %v3263_v3 = vmul.u32 %v3259_v11, %v3257_v63 }
 0x5a0   : > { %v6032_v49 = vshrl.u32 %v3151_v1, 30  ;;  %v3284_v29 = vmul.u32 %v3280_v30, %v3257_v63  ;;  %v3286_v62 = vshll.u32 %v3283_v47, 16  ;;  %v3282_v46 = vmul.u32 %v3280_v30, %v3256_v6 }
 0x5a1   : > { %v3264_v0 = vshll.u32 %v3261_v40, 16  ;;  %v3266_v2 = vshll.u32 %v3262_v8, 16  ;;  %v3265_v19 = vshrl.u32 %v3261_v40, 16  ;;  %v3267_v28 = vshrl.u32 %v3262_v8, 16 }
 0x5a2   : > { %v3153_v60 = vshll.u32 %v6032_v49, 30  ;;  %v3288_v25 = vshll.u32 %v3284_v29, 16  ;;  %vm3290_vm9 = vc.u32 %v3282_v46, %v3286_v62  ;;  %v3292_v10 = vadd.s32 %v3286_v62, %v3282_v46 }
 0x5a3   : > { %vm3268_vm6 = vc.u32 %v3260_v58, %v3264_v0  ;;  %v3270_v59 = vadd.s32 %v3264_v0, %v3260_v58  ;;  %v3291_v24 = vsel %vm3290_vm9, 1, %v4610_v56  ;;  %v3287_v6 = vshrl.u32 %v3283_v47, 16 }
 0x5a4   : > { %v3154_v61 = vsub.s32 %v3150_v9, %v3153_v60  ;;  %v3269_v52 = vsel %vm3268_vm6, 1, %v4610_v56  ;;  %v3293_v51 = vadd.s32 %v3291_v24, %v3285_v53  ;;  %vm3294_vm10 = vc.u32 %v3292_v10, %v3288_v25 }
 0x5a5   : > { %v3271_v34 = vadd.s32 %v3269_v52, %v3263_v3  ;;  %vm3272_vm7 = vc.u32 %v3270_v59, %v3266_v2  ;;  %v3295_v26 = vsel %vm3294_vm10, 1, %v4610_v56  ;;  %v3223_v9 = vshrl.u32 %v4604_v33, %v5968_v27 }
 0x5a6   : > { %vm3155_vm8 = vcmp.lt.s32.totalorder %v3154_v61, 0  ;;  %v3156_v38 = vsub.s32 0, %v3154_v61  ;;  %v3273_v7 = vsel %vm3272_vm7, 1, %v4610_v56  ;;  %v3297_v63 = vadd.s32 %v3295_v26, %v3293_v51 }
 0x5a7   : > { %v3275_v55 = vadd.s32 %v3273_v7, %v3271_v34  ;;  %v3243_v14 = vsel %vm3239_vm2, %v3223_v9, %v5986_v5  ;;  %v3146_v27 = vadd.s32 %v5974_v48, %v5992_v45  ;;  %v3289_v1 = vshrl.u32 %v3284_v29, 16 }
 0x5a8   : > { %v3157_v22 = vsel %vm3155_vm8, %v3156_v38, %v3154_v61  ;;  %v3298_v30 = vadd.s32 %v3297_v63, %v3287_v6  ;;  %v6055_v47 = vadd.f32 1e-09, %v4130_v44  ;;  %v3296_v58 = vadd.s32 %v3292_v10, %v3288_v25  ;;  %v3388_v38 = vld [vmem:[#allocation11 + $0x20] sm:$0xff] }
 0x5a9   : > { %v3158_v18 = vclz %v3157_v22  ;;  %v3276_v12 = vadd.s32 %v3275_v55, %v3265_v19  ;;  %v3246_v0 = vsel %vm3240_vm5, %v3243_v14, %v3245_v15  ;;  %v3176_v25 = vsub.s32 4, %v6032_v49  ;;  %3416 = vmatpush.msrb.mxu3 %v3388_v38 }
 0x5aa   : > { %v3299_v5 = vadd.s32 %v3298_v30, %v3289_v1  ;;  %4297 = vrcp.f32 %v6055_v47  ;;  %v3300_v48 = vmul.u32 %v6002_v31, %v3246_v0  ;;  %vm3054_vm13 = vcmp.lt.s32.totalorder %v5931_v16, 0 }
 0x5ab   : > { %v4132_v20 = vadd.s32 4294967294, %v3158_v18  ;;  %v3277_v11 = vadd.s32 %v3276_v12, %v3267_v28  ;;  %vm6072_vm14 = vcmp.le.f32.partialorder %v3052_v13, 0.7853982  ;;  %v3177_v51 = vsel %vm3054_vm13, %v3176_v25, %v6032_v49 }
 0x5ac   : > { %v3303_v42 = vadd.s32 1, %v3299_v5  ;;  %v3179_v13 = vsel %vm6072_vm14, 0, %v3177_v51  ;;  %vm3370_vm1 = vweird.f32 %v6055_v47  ;;  %v3376_v0 = vand.u32 2147483648, %v6055_v47 }
 0x5ad   : > { %vm4133_vm11 = vcmp.lt.s32.totalorder %v4132_v20, 0  ;;  %vm3302_vm12 = vc.u32 %v3277_v11, %v3296_v58  ;;  %v3196_v30 = vadd.s32 3, %v3179_v13  ;;  %v3301_v49 = vadd.s32 %v3296_v58, %v3277_v11 }
 0x5ae   : > { %v3161_v54 = vsel %vm4133_vm11, 0, %v4132_v20  ;;  %v3304_v45 = vsel %vm3302_vm12, %v3303_v42, %v3299_v5  ;;  %vm3195_vm9 = vweird.f32 %v5931_v16  ;;  %vm3209_vm10 = vcmp.lt.s32.totalorder %v5940_v43, 0 }
 0x5af   : > { %v3162_v40 = vsub.s32 32, %v3161_v54  ;;  %v3166_v8 = vsub.s32 4294967266, %v3161_v54  ;;  %v3163_v60 = vshll.u32 %v3154_v61, %v3161_v54  ;;  %v3305_v52 = vadd.s32 %v3304_v45, %v3300_v48 }
 0x5b0   : > { %v6061_v19 = vpop.eup %4297  ;;  %vm6099_vm11 = vcmp.le.f32.partialorder %v3207_v21, 0.7853982 }
 0x5b1   : > { %v3164_v3 = vshrl.u32 %v3146_v27, %v3162_v40  ;;  %v3167_v2 = vadd.s32 127, %v3166_v8  ;;  %v3306_v53 = vadd.s32 536870912, %v3305_v52  ;;  %v3366_v10 = vmul.f32 %v6061_v19, %v6055_v47 }
 0x5b2   : > { %vm3371_vm2 = vweird.f32 %v6061_v19 }
 0x5b3   : > { %v3165_v59 = vor.u32 %v3164_v3, %v3163_v60  ;;  %v3168_v62 = vshll.u32 %v3167_v2, 23  ;;  %v6063_v7 = vshrl.u32 %v3306_v53, 30  ;;  %v3367_v20 = vsub.f32 1.0, %v3366_v10  ;;  %vm6088_vm4 = vmor %vm3370_vm1, %vm3371_vm2 }
 0x5b4   : > { %v3374_v3 = vand.u32 2147483647, %v6055_v47 }
 0x5b5   : > { %v3169_v29 = vor.u32 4788187, %v3168_v62  ;;  %v3172_v46 = vcvt.s32.f32 %v3165_v59  ;;  %v3308_v31 = vshll.u32 %v6063_v7, 30  ;;  %v3368_v15 = vmul.f32 %v6061_v19, %v3367_v20 }
 0x5b6   : > { %vm3375_vm5 = vcmp.eq.f32.partialorder %v3374_v3, 8.507059e+37  ;;  %v3331_v13 = vsub.s32 4, %v6063_v7 }
 0x5b7   : > { %v3170_v34 = vand.u32 2147483647, %v3169_v29  ;;  %v3309_v18 = vsub.s32 %v3305_v52, %v3308_v31  ;;  %v3369_v60 = vadd.f32 %v6061_v19, %v3368_v15 }
 0x5b9   : > { %v3173_v61 = vmul.f32 %v3172_v46, %v3170_v34  ;;  %vm3310_vm15 = vcmp.lt.s32.totalorder %v3309_v18, 0  ;;  %v3311_v26 = vsub.s32 0, %v3309_v18  ;;  %v3197_v34 = vand.u32 3, %v3196_v30 }
 0x5ba   : > { %v3377_v46 = vor.u32 1.1754944e-38, %v3376_v0  ;;  %v3373_v53 = vsel %vm6088_vm4, %v6061_v19, %v3369_v60 }
 0x5bb   : > { %v3174_v55 = vxor.u32 2147483648, %v3173_v61  ;;  %v3312_v44 = vsel %vm3310_vm15, %v3311_v26, %v3309_v18  ;;  %vm3199_vm6 = vcmp.eq.s32.totalorder %v3197_v34, 0  ;;  %vm3202_vm7 = vcmp.eq.s32.totalorder %v3197_v34, 2 }
 0x5bc   : > { %v3313_v6 = vclz %v3312_v44  ;;  %v3378_v31 = vsel %vm3375_vm5, %v3377_v46, %v3373_v53  ;;  %vm3198_vm8 = vcmp.lt.s32.totalorder %v3197_v34, 2  ;;  %vm3350_vm15 = vweird.f32 %v5940_v43  ;;  %v4284_v34 = vld [vmem:[#allocation12 + $0x2] ss:$0 sm:$0xff] }
 0x5bd   : > { %v3175_v24 = vsel %vm3054_vm13, %v3174_v55, %v3173_v61 }
 0x5be   : > { %v3178_v12 = vsel %vm6072_vm14, %v5931_v16, %v3175_v24  ;;  %v4135_v27 = vadd.s32 4294967294, %v3313_v6 }
 0x5bf   : > { %v3180_v36 = vmul.f32 %v3178_v12, %v3178_v12 }
 0x5c0   : > { %vm4136_vm3 = vcmp.lt.s32.totalorder %v4135_v27, 0 }
 0x5c1   : > { %v3181_v9 = vmul.f32 -0.001358992, %v3180_v36  ;;  %v3188_v28 = vmul.f32 -0.00019511016, %v3180_v36  ;;  %v3316_v5 = vsel %vm4136_vm3, 0, %v4135_v27  ;;  %v3332_v27 = vsel %vm3209_vm10, %v3331_v13, %v6063_v7 }
 0x5c2   : > { %v3317_v2 = vsub.s32 32, %v3316_v5  ;;  %v3321_v42 = vsub.s32 4294967266, %v3316_v5  ;;  %v3318_v45 = vshll.u32 %v3309_v18, %v3316_v5 }
 0x5c3   : > { %v3182_v63 = vadd.f32 0.041655596, %v3181_v9  ;;  %v3189_v14 = vadd.f32 0.008332121, %v3188_v28 }
 0x5c4   : > { %v3319_v11 = vshrl.u32 %v3301_v49, %v3317_v2  ;;  %v3322_v58 = vadd.s32 127, %v3321_v42 }
 0x5c5   : > { %v3183_v54 = vmul.f32 %v3182_v63, %v3180_v36  ;;  %v3190_v1 = vmul.f32 %v3189_v14, %v3180_v36 }
 0x5c6   : > { %v3320_v47 = vor.u32 %v3319_v11, %v3318_v45  ;;  %v3323_v17 = vshll.u32 %v3322_v58, 23 }
 0x5c7   : > { %v3184_v40 = vadd.f32 -0.4999988, %v3183_v54  ;;  %v3191_v8 = vadd.f32 -0.16666654, %v3190_v1  ;;  %v3334_v1 = vsel %vm6099_vm11, 0, %v3332_v27 }
 0x5c8   : > { %v3324_v55 = vor.u32 4788187, %v3323_v17  ;;  %v3327_v22 = vcvt.s32.f32 %v3320_v47  ;;  %v3351_v0 = vadd.s32 3, %v3334_v1  ;;  %v4285_v47 = vld [vmem:[%s6385_s7] ss:$0 sm:$0xff] }
 0x5c9   : > { %v3185_v59 = vmul.f32 %v3184_v40, %v3180_v36  ;;  %v3192_v62 = vmul.f32 %v3191_v8, %v3180_v36  ;;  %v3381_v36 = vperm.slane %v3378_v31, 0 }
 0x5ca   : > { %v3325_v10 = vand.u32 2147483647, %v3324_v55  ;;  %v3352_v2 = vand.u32 3, %v3351_v0 }
 0x5cb   : > { %v3186_v29 = vadd.f32 1.0, %v3185_v59  ;;  %v3193_v52 = vadd.f32 1.0, %v3192_v62 }
 0x5cc   : > { %v3328_v19 = vmul.f32 %v3327_v22, %v3325_v10  ;;  %vm3354_vm12 = vcmp.eq.s32.totalorder %v3352_v2, 0  ;;  %vm3357_vm13 = vcmp.eq.s32.totalorder %v3352_v2, 2  ;;  %vm3353_vm14 = vcmp.lt.s32.totalorder %v3352_v2, 2 }
 0x5cd   : > { %v3194_v38 = vmul.f32 %v3193_v52, %v3178_v12  ;;  %v3203_v61 = vxor.u32 2147483648, %v3186_v29 }
 0x5ce   : > { %v3329_v9 = vxor.u32 2147483648, %v3328_v19 }
 0x5cf   : > { %v3200_v25 = vxor.u32 2147483648, %v3194_v38  ;;  %v3204_v18 = vsel %vm3202_vm7, %v3203_v61, %v3194_v38 }
 0x5d0   : > { %v3330_v44 = vsel %vm3209_vm10, %v3329_v9, %v3328_v19 }
 0x5d1   : > { %v3201_v24 = vsel %vm3199_vm6, %v3186_v29, %v3200_v25  ;;  %v3333_v16 = vsel %vm6099_vm11, %v5940_v43, %v3330_v44 }
 0x5d2   : > { %v3205_v51 = vsel %vm3198_vm8, %v3201_v24, %v3204_v18  ;;  %v3335_v63 = vmul.f32 %v3333_v16, %v3333_v16 }
 0x5d3   : > { %v3206_v26 = vsel %vm3195_vm9, nan, %v3205_v51 }
 0x5d4   : > { %v3362_v20 = vmul.f32 %v3206_v26, %v3206_v26  ;;  %v3336_v14 = vmul.f32 -0.001358992, %v3335_v63  ;;  %v3343_v15 = vmul.f32 -0.00019511016, %v3335_v63 }
 0x5d6   : > { %v3383_v12 = vmul.f32 %v3381_v36, %v3362_v20  ;;  %v3337_v21 = vadd.f32 0.041655596, %v3336_v14  ;;  %v3344_v54 = vadd.f32 0.008332121, %v3343_v15 }
 0x5d8   : > { %v3385_v6 = vadd.f32 %v3383_v12, %v5928_v32  ;;  %v3338_v30 = vmul.f32 %v3337_v21, %v3335_v63  ;;  %v3345_v49 = vmul.f32 %v3344_v54, %v3335_v63 }
 0x5da   : > { %4137 = vmatmul.msk.f32.vlgmr.msrb.gmra.mxu3 %vm479_vm0, %v3385_v6  ;;  %v3339_v40 = vadd.f32 -0.4999988, %v3338_v30  ;;  %v3346_v8 = vadd.f32 -0.16666654, %v3345_v49 }
 0x5dc   : > { %v3340_v5 = vmul.f32 %v3339_v40, %v3335_v63  ;;  %v3347_v60 = vmul.f32 %v3346_v8, %v3335_v63 }
 0x5de   : > { %v3341_v32 = vadd.f32 1.0, %v3340_v5  ;;  %v3348_v3 = vadd.f32 1.0, %v3347_v60 }
 0x5e0   : > { %v3349_v42 = vmul.f32 %v3348_v3, %v3333_v16  ;;  %v3358_v59 = vxor.u32 2147483648, %v3341_v32 }
 0x5e2   : > { %v3355_v62 = vxor.u32 2147483648, %v3349_v42  ;;  %v3359_v48 = vsel %vm3357_vm13, %v3358_v59, %v3349_v42 }
 0x5e4   : > { %v3356_v7 = vsel %vm3354_vm12, %v3341_v32, %v3355_v62 }
 0x5e5   : > { %v3360_v45 = vsel %vm3353_vm14, %v3356_v7, %v3359_v48 }
 0x5e6   : > { %v3361_v11 = vsel %vm3350_vm15, nan, %v3360_v45 }
 0x5e7   : > { %v3363_v58 = vmul.f32 %v3361_v11, %v3361_v11 }
 0x5e9   : > { %v3384_v29 = vmul.f32 %v3381_v36, %v3363_v58 }
 0x5eb   : > { %v3386_v52 = vadd.f32 %v3384_v29, %v5937_v23 }
 0x5ed   : > { %4138 = vmatmul.msk.f32.gmra.mxu3 %vm479_vm0, %v3386_v52 }
 0x65d   : > { %v3418_v46 = vpop.f32.mrf.mxu3 }
 0x65e   : > { %v3419_v53 = vadd.f32 %v4284_v34, %v3418_v46 }
 0x660   : > { %v6119_v17 = vadd.f32 %v3419_v53, %v5696_v57 }
 0x662   : > { %v6122_v43 = vmul.f32 %v4285_v47, %v6119_v17 }
 0x664   : > { %v3435_v38 = vand.u32 2139095040, %v6122_v43  ;;  %v3432_v23 = vand.u32 2147483647, %v6122_v43 }
 0x666   : > { %v3436_v61 = vshrl.u32 %v3435_v38, 23  ;;  %v3439_v31 = vand.u32 8388607, %v3432_v23 }
 0x668   : > { %v4139_v55 = vadd.s32 4294967169, %v3436_v61  ;;  %v3440_v24 = vor.u32 8388608, %v3439_v31 }
 0x66a   : > { %v3442_v25 = vadd.s32 1, %v4139_v55  ;;  %v6140_v14 = vshll.u32 %v3440_v24, 8 }
 0x66c   : > { %vm3443_vm1 = vcmp.gt.s32.totalorder %v3442_v25, 0  ;;  %v3481_v5 = vand.u32 65535, %v6140_v14  ;;  %v3482_v3 = vshrl.u32 %v6140_v14, 16 }
 0x66d   : > { %v3444_v10 = vsel %vm3443_vm1, %v3442_v25, 0 }
 0x66e   : > { %v3446_v22 = vand.u32 31, %v3444_v10  ;;  %v6128_v57 = vshrl.u32 %v3444_v10, 5 }
 0x670   : > { %v3447_v18 = vsub.s32 32, %v3446_v22  ;;  %v3449_v51 = vshll.u32 %v4604_v33, %v3446_v22  ;;  %v3452_v36 = vshll.u32 %v4605_v35, %v3446_v22  ;;  %v3455_v20 = vshll.u32 %v4606_v37, %v3446_v22  ;;  %v3421_v1 = vpop.f32.mrf.mxu3 }
 0x671   : > { %v3458_v12 = vshll.u32 %v4607_v39, %v3446_v22  ;;  %v3461_v44 = vshll.u32 %v4608_v41, %v3446_v22  ;;  %vm3464_vm2 = vcmp.lt.s32.totalorder %v6128_v57, 1  ;;  %vm3467_vm3 = vcmp.lt.s32.totalorder %v6128_v57, 4 }
 0x672   : > { %v3450_v19 = vshrl.u32 %v4605_v35, %v3447_v18  ;;  %v3453_v26 = vshrl.u32 %v4606_v37, %v3447_v18  ;;  %v3456_v9 = vshrl.u32 %v4607_v39, %v3447_v18  ;;  %v3459_v28 = vshrl.u32 %v4608_v41, %v3447_v18 }
 0x673   : > { %v3462_v13 = vshrl.u32 %v4609_v50, %v3447_v18  ;;  %vm3466_vm4 = vcmp.lt.s32.totalorder %v6128_v57, 3  ;;  %v3422_v40 = vadd.f32 %v4284_v34, %v3421_v1  ;;  %vm3465_vm5 = vcmp.lt.s32.totalorder %v6128_v57, 2 }
 0x674   : > { %v3451_v16 = vor.u32 %v3450_v19, %v3449_v51  ;;  %v3454_v6 = vor.u32 %v3453_v26, %v3452_v36  ;;  %v3457_v63 = vor.u32 %v3456_v9, %v3455_v20  ;;  %v3460_v15 = vor.u32 %v3459_v28, %v3458_v12 }
 0x675   : > { %v3463_v27 = vor.u32 %v3462_v13, %v3461_v44  ;;  %v6165_v2 = vadd.f32 %v3422_v40, %v5742_v4  ;;  %v3448_v36 = vshrl.u32 %v4604_v33, %v3447_v18 }
 0x676   : > { %v3472_v21 = vsel %vm3464_vm2, %v3451_v16, %v3454_v6  ;;  %v3476_v54 = vsel %vm3464_vm2, %v3454_v6, %v3457_v63  ;;  %v3473_v30 = vsel %vm3467_vm3, %v3460_v15, 920167782 }
 0x677   : > { %v3477_v49 = vsel %vm3467_vm3, %v3463_v27, 1326507024  ;;  %v3474_v8 = vsel %vm3466_vm4, %v3457_v63, %v3473_v30  ;;  %v6168_v29 = vmul.f32 %v4285_v47, %v6165_v2  ;;  %v3469_v47 = vsel %vm3467_vm3, %v3457_v63, 2102212464 }
 0x678   : > { %v3478_v0 = vsel %vm3466_vm4, %v3460_v15, %v3477_v49  ;;  %v3475_v60 = vsel %vm3465_vm5, %v3472_v21, %v3474_v8  ;;  %v3468_v44 = vsel %vm3464_vm2, %v3448_v36, %v3451_v16  ;;  %v3470_v13 = vsel %vm3466_vm4, %v3454_v6, %v3469_v47 }
 0x679   : > { %v3479_v32 = vsel %vm3465_vm5, %v3476_v54, %v3478_v0  ;;  %v3505_v62 = vand.u32 65535, %v3475_v60  ;;  %v3506_v7 = vshrl.u32 %v3475_v60, 16  ;;  %v3590_v22 = vand.u32 2139095040, %v6168_v29 }
 0x67a   : > { %v3483_v42 = vand.u32 65535, %v3479_v32  ;;  %v3484_v59 = vshrl.u32 %v3479_v32, 16  ;;  %v3587_v18 = vand.u32 2147483647, %v6168_v29  ;;  %v3471_v16 = vsel %vm3465_vm5, %v3468_v44, %v3470_v13 }
 0x67b   : > { %v3508_v11 = vmul.u32 %v3506_v7, %v3481_v5  ;;  %v3509_v58 = vmul.u32 %v3505_v62, %v3482_v3  ;;  %v3507_v53 = vmul.u32 %v3505_v62, %v3481_v5  ;;  %v3510_v38 = vmul.u32 %v3506_v7, %v3482_v3 }
 0x67c   : > { %v3486_v48 = vmul.u32 %v3484_v59, %v3481_v5  ;;  %v3487_v45 = vmul.u32 %v3483_v42, %v3482_v3  ;;  %v3485_v52 = vmul.u32 %v3483_v42, %v3481_v5  ;;  %v3488_v46 = vmul.u32 %v3484_v59, %v3482_v3 }
 0x67d   : > { %v3511_v61 = vshll.u32 %v3508_v11, 16  ;;  %v3513_v25 = vshll.u32 %v3509_v58, 16  ;;  %v3591_v28 = vshrl.u32 %v3590_v22, 23  ;;  %v3512_v63 = vshrl.u32 %v3508_v11, 16 }
 0x67e   : > { %v3489_v34 = vshll.u32 %v3486_v48, 16  ;;  %v3491_v55 = vshll.u32 %v3487_v45, 16  ;;  %v3490_v20 = vshrl.u32 %v3486_v48, 16  ;;  %v3492_v27 = vshrl.u32 %v3487_v45, 16 }
 0x67f   : > { %vm3515_vm7 = vc.u32 %v3507_v53, %v3511_v61  ;;  %v3517_v10 = vadd.s32 %v3511_v61, %v3507_v53  ;;  %v4142_v54 = vadd.s32 4294967169, %v3591_v28  ;;  %v3514_v1 = vshrl.u32 %v3509_v58, 16 }
 0x680   : > { %vm3493_vm6 = vc.u32 %v3485_v52, %v3489_v34  ;;  %v3495_v4 = vadd.s32 %v3489_v34, %v3485_v52  ;;  %v3516_v51 = vsel %vm3515_vm7, 1, %v4610_v56  ;;  %v3594_v6 = vand.u32 8388607, %v3587_v18 }
 0x681   : > { %v3494_v31 = vsel %vm3493_vm6, 1, %v4610_v56  ;;  %v3518_v26 = vadd.s32 %v3516_v51, %v3510_v38  ;;  %vm3519_vm9 = vc.u32 %v3517_v10, %v3513_v25  ;;  %v6185_v40 = vadd.s32 %v3517_v10, %v3513_v25 }
 0x682   : > { %v3496_v24 = vadd.s32 %v3494_v31, %v3488_v46  ;;  %vm3497_vm8 = vc.u32 %v3495_v4, %v3491_v55  ;;  %v3520_v12 = vsel %vm3519_vm9, 1, %v4610_v56  ;;  %v3597_v8 = vadd.s32 1, %v4142_v54 }
 0x683   : > { %v3498_v19 = vsel %vm3497_vm8, 1, %v4610_v56  ;;  %v3522_v15 = vadd.s32 %v3520_v12, %v3518_v26  ;;  %v3525_v32 = vmul.u32 %v6140_v14, %v3471_v16  ;;  %v3595_v62 = vor.u32 8388608, %v3594_v6 }
 0x684   : > { %v3500_v9 = vadd.s32 %v3498_v19, %v3496_v24  ;;  %vm3598_vm11 = vcmp.gt.s32.totalorder %v3597_v8, 0  ;;  %vm3434_vm7 = vcmp.lt.s32.totalorder %v6122_v43, 0  ;;  %vm6286_vm9 = vcmp.le.f32.partialorder %v3432_v23, 0.7853982 }
 0x685   : > { %v3523_v30 = vadd.s32 %v3522_v15, %v3512_v63  ;;  %v3599_v60 = vsel %vm3598_vm11, %v3597_v8, 0 }
 0x686   : > { %v3501_v21 = vadd.s32 %v3500_v9, %v3490_v20  ;;  %v3601_v3 = vand.u32 31, %v3599_v60  ;;  %v6196_v57 = vshrl.u32 %v3599_v60, 5 }
 0x687   : > { %v3524_v0 = vadd.s32 %v3523_v30, %v3514_v1 }
 0x688   : > { %v6183_v49 = vadd.s32 %v3501_v21, %v3492_v27  ;;  %v6194_v7 = vsub.s32 32, %v3601_v3  ;;  %v3604_v48 = vshll.u32 %v4604_v33, %v3601_v3  ;;  %v3607_v45 = vshll.u32 %v4605_v35, %v3601_v3 }
 0x689   : > { %v3528_v5 = vadd.s32 1, %v3524_v0  ;;  %v3610_v11 = vshll.u32 %v4606_v37, %v3601_v3  ;;  %v3613_v34 = vshll.u32 %v4607_v39, %v3601_v3  ;;  %v3616_v38 = vshll.u32 %v4608_v41, %v3601_v3  ;;  %v3426_v3 = vld [vmem:[%s6385_s7] sm:$0x1] }
 0x68a   : > { %vm3527_vm10 = vc.u32 %v6183_v49, %v6185_v40  ;;  %v3605_v52 = vshrl.u32 %v4605_v35, %v6194_v7  ;;  %v3608_v14 = vshrl.u32 %v4606_v37, %v6194_v7  ;;  %v3611_v46 = vshrl.u32 %v4607_v39, %v6194_v7 }
 0x68b   : > { %v3529_v42 = vsel %vm3527_vm10, %v3528_v5, %v3524_v0  ;;  %v3614_v53 = vshrl.u32 %v4608_v41, %v6194_v7  ;;  %v3617_v61 = vshrl.u32 %v4609_v50, %v6194_v7  ;;  %vm3619_vm12 = vcmp.lt.s32.totalorder %v6196_v57, 1 }
 0x68c   : > { %v3530_v59 = vadd.s32 %v3529_v42, %v3525_v32  ;;  %v6215_v4 = vor.u32 %v3605_v52, %v3604_v48  ;;  %v6217_v35 = vor.u32 %v3608_v14, %v3607_v45  ;;  %v6219_v37 = vor.u32 %v3611_v46, %v3610_v11 }
 0x68d   : > { %v3615_v25 = vor.u32 %v3614_v53, %v3613_v34  ;;  %v3618_v31 = vor.u32 %v3617_v61, %v3616_v38  ;;  %vm3622_vm13 = vcmp.lt.s32.totalorder %v6196_v57, 4  ;;  %v6228_v50 = vshll.u32 %v3595_v62, 8 }
 0x68e   : > { %v3531_v58 = vadd.s32 536870912, %v3530_v59  ;;  %v3627_v41 = vsel %vm3619_vm12, %v6215_v4, %v6217_v35  ;;  %vm3621_vm14 = vcmp.lt.s32.totalorder %v6196_v57, 3  ;;  %v3631_v22 = vsel %vm3619_vm12, %v6217_v35, %v6219_v37 }
 0x68f   : > { %v3628_v10 = vsel %vm3622_vm13, %v3615_v25, 920167782  ;;  %v3632_v47 = vsel %vm3622_vm13, %v3618_v31, 1326507024  ;;  %vm3620_vm15 = vcmp.lt.s32.totalorder %v6196_v57, 2  ;;  %v3636_v9 = vand.u32 65535, %v6228_v50 }
 0x690   : > { %v6213_v55 = vshrl.u32 %v3531_v58, 30  ;;  %v3629_v51 = vsel %vm3621_vm14, %v6219_v37, %v3628_v10  ;;  %v3633_v19 = vsel %vm3621_vm14, %v3615_v25, %v3632_v47  ;;  %v3637_v12 = vshrl.u32 %v6228_v50, 16 }
 0x691   : > { %v3630_v36 = vsel %vm3620_vm15, %v3627_v41, %v3629_v51  ;;  %v3634_v20 = vsel %vm3620_vm15, %v3631_v22, %v3633_v19  ;;  %v3526_v16 = vadd.s32 %v6185_v40, %v6183_v49  ;;  %v6257_v46 = vadd.f32 1e-09, %v3426_v3 }
 0x692   : > { %v3533_v39 = vshll.u32 %v6213_v55, 30  ;;  %v3638_v28 = vand.u32 65535, %v3634_v20  ;;  %v3639_v44 = vshrl.u32 %v3634_v20, 16  ;;  %v3661_v63 = vshrl.u32 %v3630_v36, 16 }
 0x693   : > { %v3660_v54 = vand.u32 65535, %v3630_v36  ;;  %4299 = vrcp.f32 %v6257_v46  ;;  %v3603_v51 = vshrl.u32 %v4604_v33, %v6194_v7  ;;  %vm3750_vm10 = vweird.f32 %v6257_v46 }
 0x694   : > { %v3534_v24 = vsub.s32 %v3530_v59, %v3533_v39  ;;  %v3641_v27 = vmul.u32 %v3639_v44, %v3636_v9  ;;  %v3642_v21 = vmul.u32 %v3638_v28, %v3637_v12  ;;  %v3640_v30 = vmul.u32 %v3638_v28, %v3636_v9 }
 0x695   : > { %v3643_v0 = vmul.u32 %v3639_v44, %v3637_v12  ;;  %v3663_v5 = vmul.u32 %v3661_v63, %v3636_v9  ;;  %v3662_v32 = vmul.u32 %v3660_v54, %v3636_v9  ;;  %v3664_v62 = vmul.u32 %v3660_v54, %v3637_v12 }
 0x696   : > { %vm3535_vm1 = vcmp.lt.s32.totalorder %v3534_v24, 0  ;;  %v3536_v26 = vsub.s32 0, %v3534_v24  ;;  %v3644_v8 = vshll.u32 %v3641_v27, 16  ;;  %v3646_v6 = vshll.u32 %v3642_v21, 16 }
 0x697   : > { %v3666_v48 = vshll.u32 %v3663_v5, 16  ;;  %v3645_v58 = vshrl.u32 %v3641_v27, 16  ;;  %v3665_v52 = vmul.u32 %v3661_v63, %v3637_v12  ;;  %v3668_v61 = vshll.u32 %v3664_v62, 16 }
 0x698   : > { %v3537_v13 = vsel %vm3535_vm1, %v3536_v26, %v3534_v24  ;;  %vm3648_vm3 = vc.u32 %v3640_v30, %v3644_v8  ;;  %v3650_v60 = vadd.s32 %v3644_v8, %v3640_v30  ;;  %v3647_v36 = vshrl.u32 %v3642_v21, 16 }
 0x699   : > { %v3538_v15 = vclz %v3537_v13  ;;  %v3649_v59 = vsel %vm3648_vm3, 1, %v4610_v56  ;;  %vm3670_vm5 = vc.u32 %v3662_v32, %v3666_v48  ;;  %v3672_v31 = vadd.s32 %v3666_v48, %v3662_v32  ;;  %v4300_v13 = vpop.eup %4299 }
 0x69a   : > { %v3651_v49 = vadd.s32 %v3649_v59, %v3643_v0  ;;  %vm3652_vm4 = vc.u32 %v3650_v60, %v3646_v6  ;;  %v3671_v25 = vsel %vm3670_vm5, 1, %v4610_v56  ;;  %v3667_v9 = vshrl.u32 %v3663_v5, 16 }
 0x69b   : > { %v4140_v1 = vadd.s32 4294967294, %v3538_v15  ;;  %v3653_v53 = vsel %vm3652_vm4, 1, %v4610_v56  ;;  %v3673_v10 = vadd.s32 %v3671_v25, %v3665_v52  ;;  %vm3674_vm6 = vc.u32 %v3672_v31, %v3668_v61 }
 0x69c   : > { %v3655_v38 = vadd.s32 %v3653_v53, %v3651_v49  ;;  %v3675_v19 = vsel %vm3674_vm6, 1, %v4610_v56  ;;  %v3623_v28 = vsel %vm3619_vm12, %v3603_v51, %v6215_v4  ;;  %v3669_v33 = vshrl.u32 %v3664_v62, 16 }
 0x69d   : > { %vm4141_vm2 = vcmp.lt.s32.totalorder %v4140_v1, 0  ;;  %v3677_v12 = vadd.s32 %v3675_v19, %v3673_v10  ;;  %v6276_v15 = vadd.s32 %v3672_v31, %v3668_v61  ;;  %v3746_v4 = vmul.f32 %v4300_v13, %v6257_v46 }
 0x69e   : > { %v3541_v42 = vsel %vm4141_vm2, 0, %v4140_v1  ;;  %v3656_v22 = vadd.s32 %v3655_v38, %v3645_v58  ;;  %v3556_v30 = vsub.s32 4, %v6213_v55  ;;  %vm3751_vm11 = vweird.f32 %v4300_v13 }
 0x69f   : > { %v3542_v45 = vsub.s32 32, %v3541_v42  ;;  %v3546_v11 = vsub.s32 4294967266, %v3541_v42  ;;  %v3543_v40 = vshll.u32 %v3534_v24, %v3541_v42  ;;  %v3624_v24 = vsel %vm3622_vm13, %v6219_v37, 2102212464  ;;  %vm3752_vm12 = vmor %vm3750_vm10, %vm3751_vm11 }
 0x6a0   : > { %v3625_v44 = vsel %vm3621_vm14, %v6217_v35, %v3624_v24  ;;  %v6274_v37 = vadd.s32 %v3656_v22, %v3647_v36  ;;  %v3678_v7 = vadd.s32 %v3677_v12, %v3667_v9  ;;  %v3747_v6 = vsub.f32 1.0, %v3746_v4 }
 0x6a1   : > { %v3544_v14 = vshrl.u32 %v3526_v16, %v3542_v45  ;;  %v3547_v34 = vadd.s32 127, %v3546_v11  ;;  %v3626_v27 = vsel %vm3620_vm15, %v3623_v28, %v3625_v44  ;;  %v3557_v23 = vsel %vm3434_vm7, %v3556_v30, %v6213_v55 }
 0x6a2   : > { %v3679_v21 = vadd.s32 %v3678_v7, %v3669_v33  ;;  %vm3682_vm8 = vc.u32 %v6274_v37, %v6276_v15  ;;  %v3680_v8 = vmul.u32 %v6228_v50, %v3626_v27  ;;  %v3748_v62 = vmul.f32 %v4300_v13, %v3747_v6 }
 0x6a3   : > { %v3545_v39 = vor.u32 %v3544_v14, %v3543_v40  ;;  %v3548_v41 = vshll.u32 %v3547_v34, 23  ;;  %v3559_v45 = vsel %vm6286_vm9, 0, %v3557_v23  ;;  %v3756_v55 = vand.u32 2147483648, %v6257_v46  ;;  %v3771_v23 = vld [vmem:[#allocation14] sm:$0xff] }
 0x6a4   : > { %v3683_v1 = vadd.s32 1, %v3679_v21  ;;  %v3576_v52 = vadd.s32 3, %v3559_v45  ;;  %v3749_v14 = vadd.f32 %v4300_v13, %v3748_v62  ;;  %v3754_v34 = vand.u32 2147483647, %v6257_v46 }
 0x6a5   : > { %v3549_v47 = vor.u32 4788187, %v3548_v41  ;;  %v3552_v20 = vcvt.s32.f32 %v3545_v39  ;;  %v3757_v41 = vor.u32 1.1754944e-38, %v3756_v55  ;;  %vm3575_vm4 = vweird.f32 %v6122_v43 }
 0x6a6   : > { %v3684_v0 = vsel %vm3682_vm8, %v3683_v1, %v3679_v21  ;;  %v3577_v10 = vand.u32 3, %v3576_v52  ;;  %v3753_v22 = vsel %vm3752_vm12, %v4300_v13, %v3749_v14  ;;  %vm3755_vm14 = vcmp.eq.f32.partialorder %v3754_v34, 8.507059e+37 }
 0x6a7   : > { %v3550_v26 = vand.u32 2147483647, %v3549_v47  ;;  %v3685_v5 = vadd.s32 %v3684_v0, %v3680_v8  ;;  %v3777_v0 = vld [vmem:[#allocation14 + $0x18] sm:$0xff]  ;;  %vm3589_vm5 = vcmp.lt.s32.totalorder %v6168_v29, 0  ;;  %vm6317_vm6 = vcmp.le.f32.partialorder %v3587_v18, 0.7853982 }
 0x6a8   : > { %vm3579_vm15 = vcmp.eq.s32.totalorder %v3577_v10, 0  ;;  %vm3582_vm1 = vcmp.eq.s32.totalorder %v3577_v10, 2  ;;  %vm3578_vm2 = vcmp.lt.s32.totalorder %v3577_v10, 2  ;;  %3795 = vmatpush.msra.mxu0 %v3777_v0  ;;  %vm3730_vm10 = vweird.f32 %v6168_v29 }
 0x6a9   : > { %v3553_v63 = vmul.f32 %v3552_v20, %v3550_v26  ;;  %v3686_v3 = vadd.s32 536870912, %v3685_v5  ;;  %v6304_v26 = vsel %vm3755_vm14, %v3757_v41, %v3753_v22 }
 0x6aa   : > { %v3761_v28 = vperm.slane %v6304_v26, 0 }
 0x6ab   : > { %v3554_v56 = vxor.u32 2147483648, %v3553_v63  ;;  %v6296_v48 = vshrl.u32 %v3686_v3, 30 }
 0x6ad   : > { %v3555_v54 = vsel %vm3434_vm7, %v3554_v56, %v3553_v63  ;;  %v3688_v50 = vshll.u32 %v6296_v48, 30  ;;  %v3681_v63 = vadd.s32 %v6276_v15, %v6274_v37  ;;  %v3828_v37 = vld [vmem:[#allocation14 + $0x28] sm:$0xff]  ;;  %v3857_v15 = vld [vmem:[#allocation14 + $0x38] sm:$0xff] }
 0x6ae   : > { %v3558_v57 = vsel %vm6286_vm9, %v6122_v43, %v3555_v54  ;;  %3846 = vmatpush.msra.mxu2 %v3828_v37  ;;  %3875 = vmatpush.msra.mxu3 %v3857_v15 }
 0x6af   : > { %v3560_v16 = vmul.f32 %v3558_v57, %v3558_v57  ;;  %v3689_v53 = vsub.s32 %v3685_v5, %v3688_v50  ;;  %v3772_v5 = vld [vmem:[#allocation14 + $0x8] sm:$0xff] }
 0x6b0   : > { %3818 = vmatpush.msra.mxu1 %v3772_v5 }
 0x6b1   : > { %v3561_v60 = vmul.f32 -0.001358992, %v3560_v16  ;;  %v3568_v32 = vmul.f32 -0.00019511016, %v3560_v16  ;;  %vm3690_vm13 = vcmp.lt.s32.totalorder %v3689_v53, 0  ;;  %v3691_v25 = vsub.s32 0, %v3689_v53 }
 0x6b2   : > { %3819 = vmatpush.msra.mxu1 %v3771_v23 }
 0x6b3   : > { %v3562_v42 = vadd.f32 0.041655596, %v3561_v60  ;;  %v3569_v59 = vadd.f32 0.008332121, %v3568_v32  ;;  %v3692_v47 = vsel %vm3690_vm13, %v3691_v25, %v3689_v53  ;;  %v3827_v60 = vld [vmem:[#allocation14 + $0x20] sm:$0xff]  ;;  %v3856_v32 = vld [vmem:[#allocation14 + $0x30] sm:$0xff] }
 0x6b4   : > { %v3693_v36 = vclz %v3692_v47  ;;  %3847 = vmatpush.msra.mxu2 %v3827_v60  ;;  %3876 = vmatpush.msra.mxu3 %v3856_v32 }
 0x6b5   : > { %v3563_v11 = vmul.f32 %v3562_v42, %v3560_v16  ;;  %v3570_v58 = vmul.f32 %v3569_v59, %v3560_v16  ;;  %v3711_v59 = vsub.s32 4, %v6296_v48 }
 0x6b6   : > { %v4143_v46 = vadd.s32 4294967294, %v3693_v36 }
 0x6b7   : > { %v3564_v49 = vadd.f32 -0.4999988, %v3563_v11  ;;  %v3571_v40 = vadd.f32 -0.16666654, %v3570_v58  ;;  %v3712_v18 = vsel %vm3589_vm5, %v3711_v59, %v6296_v48 }
 0x6b8   : > { %vm4144_vm3 = vcmp.lt.s32.totalorder %v4143_v46, 0 }
 0x6b9   : > { %v3565_v38 = vmul.f32 %v3564_v49, %v3560_v16  ;;  %v3572_v61 = vmul.f32 %v3571_v40, %v3560_v16  ;;  %v3696_v44 = vsel %vm4144_vm3, 0, %v4143_v46  ;;  %v3714_v40 = vsel %vm6317_vm6, 0, %v3712_v18 }
 0x6ba   : > { %v3697_v33 = vsub.s32 32, %v3696_v44  ;;  %v3701_v7 = vsub.s32 4294967266, %v3696_v44  ;;  %v3698_v27 = vshll.u32 %v3689_v53, %v3696_v44  ;;  %v3731_v53 = vadd.s32 3, %v3714_v40 }
 0x6bb   : > { %v3566_v31 = vadd.f32 1.0, %v3565_v38  ;;  %v3573_v39 = vadd.f32 1.0, %v3572_v61 }
 0x6bc   : > { %v3699_v21 = vshrl.u32 %v3681_v63, %v3697_v33  ;;  %v3702_v4 = vadd.s32 127, %v3701_v7  ;;  %v4286_v63 = vld [vmem:[%s6387_s9] ss:$0 sm:$0xff] }
 0x6bd   : > { %v3574_v24 = vmul.f32 %v3573_v39, %v3558_v57  ;;  %v3583_v51 = vxor.u32 2147483648, %v3566_v31  ;;  %v3732_v39 = vand.u32 3, %v3731_v53 }
 0x6be   : > { %v3700_v54 = vor.u32 %v3699_v21, %v3698_v27  ;;  %v3703_v1 = vshll.u32 %v3702_v4, 23 }
 0x6bf   : > { %v3580_v19 = vxor.u32 2147483648, %v3574_v24  ;;  %v3584_v9 = vsel %vm3582_vm1, %v3583_v51, %v3574_v24  ;;  %vm3734_vm7 = vcmp.eq.s32.totalorder %v3732_v39, 0  ;;  %vm3737_vm8 = vcmp.eq.s32.totalorder %v3732_v39, 2 }
 0x6c0   : > { %v3704_v30 = vor.u32 4788187, %v3703_v1  ;;  %v3707_v8 = vcvt.s32.f32 %v3700_v54  ;;  %vm3733_vm9 = vcmp.lt.s32.totalorder %v3732_v39, 2 }
 0x6c1   : > { %v3581_v20 = vsel %vm3579_vm15, %v3566_v31, %v3580_v19 }
 0x6c2   : > { %v3585_v12 = vsel %vm3578_vm2, %v3581_v20, %v3584_v9  ;;  %v3705_v57 = vand.u32 2147483647, %v3704_v30 }
 0x6c3   : > { %v3586_v13 = vsel %vm3575_vm4, nan, %v3585_v12 }
 0x6c4   : > { %v3742_v56 = vmul.f32 %v3586_v13, %v3586_v13  ;;  %v3708_v16 = vmul.f32 %v3707_v8, %v3705_v57 }
 0x6c6   : > { %v3763_v35 = vmul.f32 %v3761_v28, %v3742_v56  ;;  %v3709_v6 = vxor.u32 2147483648, %v3708_v16 }
 0x6c8   : > { %v3765_v43 = vadd.f32 %v3763_v35, %v6119_v17  ;;  %v3776_v17 = vld [vmem:[#allocation14 + $0x10] sm:$0xff]  ;;  %v3710_v42 = vsel %vm3589_vm5, %v3709_v6, %v3708_v16 }
 0x6c9   : > { %v3713_v62 = vsel %vm6317_vm6, %v6168_v29, %v3710_v42  ;;  %3796 = vmatpush.msra.mxu0 %v3776_v17 }
 0x6ca   : > { %3767 = vst.msk [vmem:[#allocation2 + $0x20] sm:$0xff] %vm479_vm0, %v3765_v43  ;;  %v3715_v45 = vmul.f32 %v3713_v62, %v3713_v62 }
 0x6cc   : > { %v3716_v11 = vmul.f32 -0.001358992, %v3715_v45  ;;  %v3723_v58 = vmul.f32 -0.00019511016, %v3715_v45 }
 0x6ce   : > { %v3717_v50 = vadd.f32 0.041655596, %v3716_v11  ;;  %v3724_v49 = vadd.f32 0.008332121, %v3723_v58 }
 0x6d0   : > { %v3718_v55 = vmul.f32 %v3717_v50, %v3715_v45  ;;  %v3725_v52 = vmul.f32 %v3724_v49, %v3715_v45 }
 0x6d2   : > { %v3719_v14 = vadd.f32 -0.4999988, %v3718_v55  ;;  %v3726_v34 = vadd.f32 -0.16666654, %v3725_v52 }
 0x6d4   : > { %v3720_v38 = vmul.f32 %v3719_v14, %v3715_v45  ;;  %v3727_v61 = vmul.f32 %v3726_v34, %v3715_v45 }
 0x6d6   : > { %v3721_v25 = vadd.f32 1.0, %v3720_v38  ;;  %v3728_v31 = vadd.f32 1.0, %v3727_v61 }
 0x6d8   : > { %v3729_v41 = vmul.f32 %v3728_v31, %v3713_v62  ;;  %v3738_v10 = vxor.u32 2147483648, %v3721_v25 }
 0x6da   : > { %v3735_v22 = vxor.u32 2147483648, %v3729_v41  ;;  %v3739_v47 = vsel %vm3737_vm8, %v3738_v10, %v3729_v41 }
 0x6dc   : > { %v3736_v48 = vsel %vm3734_vm7, %v3721_v25, %v3735_v22 }
 0x6dd   : > { %v3740_v24 = vsel %vm3733_vm9, %v3736_v48, %v3739_v47 }
 0x6de   : > { %v3741_v51 = vsel %vm3730_vm10, nan, %v3740_v24 }
 0x6df   : > { %v3743_v36 = vmul.f32 %v3741_v51, %v3741_v51 }
 0x6e1   : > { %v3764_v19 = vmul.f32 %v3761_v28, %v3743_v36 }
 0x6e3   : > { %v3766_v46 = vadd.f32 %v3764_v19, %v6165_v2 }
 0x6e5   : > { %3768 = vst.msk [vmem:[#allocation2 + $0x28] sm:$0xff] %vm479_vm0, %v3766_v46 }
 0x6ec   : > { %v3774_v20 = vld [vmem:[#allocation2 + $0x20] ss:$2 sm:$0xff]  ;;  %v3770_v9 = vld [vmem:[#allocation2 + $0x1f] ss:$2 sm:$0xff] }
 0x6ed   : > { %v3825_v12 = vld [vmem:[#allocation2 + $0x21] ss:$2 sm:$0xff]  ;;  %4145 = vmatmul.msk.f32.vlgmr.msra.gmra.mxu0 %vm479_vm0, %v3774_v20  ;;  %4146 = vmatmul.msk.f32.vlgmr.msra.gmra.mxu1 %vm479_vm0, %v3770_v9  ;;  %v3854_v29 = vld [vmem:[#allocation2 + $0x22] ss:$2 sm:$0xff] }
 0x6ee   : > { %4147 = vmatmul.msk.f32.vlgmr.msra.gmra.mxu2 %vm479_vm0, %v3825_v12  ;;  %4148 = vmatmul.msk.f32.vlgmr.msra.gmra.mxu3 %vm479_vm0, %v3854_v29  ;;  %vm3887_vm0 = vcmask 261120  }
 0x76a   : > { %v3798_v44 = vpop.f32.mrf.mxu0  ;;  %v3821_v13 = vpop.f32.mrf.mxu1 }
 0x76b   : > { %v3822_v2 = vadd.f32 %v3821_v13, %v3798_v44 }
 0x771   : > { %v3849_v26 = vpop.f32.mrf.mxu2  ;;  %v3878_v33 = vpop.f32.mrf.mxu3 }
 0x772   : > { %v3852_v28 = vadd.f32 %v3849_v26, %v3822_v2 }
 0x774   : > { %v3881_v7 = vadd.f32 %v3878_v33, %v3852_v28 }
 0x776   : > { %v3886_v56 = vadd.f32 %v4286_v63, %v3881_v7 }
 0x778   : > { %3888 = vst.msk [vmem:[%s478_s24] sm:$0xff] %vm3887_vm0, %v3886_v56 }
 0x779   : > { %4540 = shalt.err (!%p4537_p9)
}
 0x77a   : > { %4180 = dma.vmem_to_hbm [thread:$0]  (%p4772_p4), %s3903_s27, 128, %s3905_s3, %s3890_s20  }
 0x77b PF: > { %s3916_s1 = sand.u32 1, %s4579_s13   ;;  %p6448_p10 = scmp.ge.s32.totalorder %s4591_s16, 2 }
 0x77c   : > { %s3917_s23 = scalar_lea.sflag [#allocation5], %s3916_s1 }
 0x77d   : > { %p4206_p13 = pnand %p6448_p10, %p4776_p6 }
 0x77f   : > { %p4207_p11 = pneg %p4206_p13 }
 0x781   : > { %4574 = dma.done.wait (%p4207_p11), %s3917_s23, 128  }
 0x782   : > { %4576 = vsyncadd (%p4207_p11), %s3917_s23, 4294967168  ;;  %p26_p0 = scmp.ge.s32.totalorder %s4746_s28, 4   ;;  %s6449_s13 = smov %s4583_s14 }
 0x783   : > { %s6450_s14 = smov %s4587_s15  ;;  %s6451_s15 = smov %s4757_s26 }
 0x784   : > { %s6452_s16 = smov %s4746_s28  ;;  %28 = sbr.rel (!%p26_p0) target bundleno = 14 (0xe), region = 166 }
 0x789   :  { %3923 = vsyncpa [#allocation4], 1 }
 0x78a   :  { %3925 = vsyncpa [#allocation4 + $0x1], 1 }
 0x78b   :  { %3926 = vsyncpa [#allocation7], 1 }
 0x78c   :  { %3927 = vsyncpa [#allocation10], 1 }
 0x78d   :  { %3928 = vsyncpa [#allocation13], 1 }
 0x78e   :  { %3929 = vsyncpa [#allocation5], 1 }
 0x78f   :  { %3931 = vsyncpa [#allocation5 + $0x1], 1 }

</bundles_post_ra>
